<compile_context>
chip_gen: v7x
topology: tpu7x:2x2x1
jax: 0.10.0
libtpu: 0.0.40
codegen_flags: <defaults>
</compile_context>

<pallas_src>
import functools

import jax
import jax.numpy as jnp
from jax import lax
from jax.experimental import pallas as pl
from jax.experimental.pallas import tpu as pltpu


NEG_BIG = -1e30  # bias for padded vocab columns -> exp() == 0 after max-subtraction


def _round_up(x, m):
    return (x + m - 1) // m * m


# ----------------------------------------------------------------------------
# in-kernel coverage-attention helper (values in, values out)
# ----------------------------------------------------------------------------
def _attend(h, c, enc_out, enc_fea, mask, coverage, Wd_h, Wd_c, bd, wa, wc):
    """h, c: (B, H); enc_out/enc_fea: (B, S, 2H); mask/coverage: (B, S)."""
    dec_fea = (jnp.dot(h, Wd_h, preferred_element_type=jnp.float32)
               + jnp.dot(c, Wd_c, preferred_element_type=jnp.float32) + bd)        # (B, 2H)
    att = enc_fea + dec_fea[:, None, :] + coverage[:, :, None] * wc[None, :, :]     # (B, S, 2H)
    # att_fc is a width-1 Linear -> VPU lane reduction (no N=1 matmul, no reshape)
    scores = jnp.sum(jnp.tanh(att) * wa[None, :, :], axis=-1)                       # (B, S)
    scores = scores - jnp.max(scores, axis=1, keepdims=True)
    ex = jnp.exp(scores)
    attn = ex * pl.reciprocal(jnp.sum(ex, axis=1, keepdims=True), approx=True)
    attn = attn * mask
    attn = attn * pl.reciprocal(jnp.sum(attn, axis=1, keepdims=True), approx=True)
    c_t = jnp.sum(attn[:, :, None] * enc_out, axis=1)                               # (B, 2H)
    return c_t, attn, coverage + attn


# ----------------------------------------------------------------------------
# fused decoder-step kernel; grid = (num_vocab_tiles,)
# ----------------------------------------------------------------------------
def decoder_step_kernel(
    # data inputs
    y_emb_ref, c_t_ref, h0_ref, c0_ref,
    enc_out_ref, enc_fea_ref, mask_ref, cov_ref, ext_ids_ref,
    # parameters (host-side pre-transposed / split / fused)
    Wt_c_ref, Wt_y_ref, bt_ref,
    Wlstm_ref, blstm_ref,
    Wd_h_ref, Wd_c_ref, bd_ref, wa_ref, wc_ref,
    wp_ct_ref, wp_h_ref, wp_c_ref, wp_x_ref, bp_ref,
    W1_h_ref, W1_ct_ref, b1_ref,
    W2_ref, b2_ref,                       # vocab-tiled
    # outputs
    final_ref, h1_ref, c1_ref, ct_out_ref, attn_ref, cov_out_ref,
    # scratch (persists across vocab tiles)
    fc1_w, pgen_w, eprob_w,
    *, do_preattn: bool,
):
    j = pl.program_id(0)
    nv = pl.num_programs(0)
    H = h0_ref.shape[1]
    B, S = mask_ref.shape
    Vp = final_ref.shape[1]
    TILE_V = W2_ref.shape[1]

    # ---------------- step-invariant "small" compute: only on the first tile --
    @pl.when(j == 0)
    def _small():
        h0 = h0_ref[...]
        c0 = c0_ref[...]
        enc_out = enc_out_ref[...]
        enc_fea = enc_fea_ref[...]
        mask = mask_ref[...]
        cov0 = cov_ref[...]
        att_w = (Wd_h_ref[...], Wd_c_ref[...], bd_ref[...], wa_ref[...], wc_ref[...])

        if do_preattn:     # eval & t == 0 : fused pre-attention (static specialization)
            c_t_in, _, cov_in = _attend(h0, c0, enc_out, enc_fea, mask, cov0, *att_w)
        else:
            c_t_in = c_t_ref[...]
            cov_in = cov0

        # transform(cat(c_t, y_emb)) via split, pre-transposed weights (no concat)
        x = (jnp.dot(c_t_in, Wt_c_ref[...], preferred_element_type=jnp.float32)
             + jnp.dot(y_emb_ref[...], Wt_y_ref[...], preferred_element_type=jnp.float32)
             + bt_ref[...])

        # one-step LSTM with fused [Wih ; Whh] weight -> single MXU call
        xh = jnp.concatenate([x, h0], axis=1)
        gates = (jnp.dot(xh, Wlstm_ref[...], preferred_element_type=jnp.float32)
                 + blstm_ref[...])
        gi = jax.nn.sigmoid(gates[:, 0 * H:1 * H])
        gf = jax.nn.sigmoid(gates[:, 1 * H:2 * H])
        gg = jnp.tanh(gates[:, 2 * H:3 * H])
        go = jax.nn.sigmoid(gates[:, 3 * H:4 * H])
        c1 = gf * c0 + gi * gg
        h1 = go * jnp.tanh(c1)

        # attention with the new LSTM state
        c_t_new, attn, cov_next = _attend(h1, c1, enc_out, enc_fea, mask, cov_in, *att_w)

        # p_gen: width-1 Linear -> VPU reductions on split weight rows (no concat)
        p_gen = jax.nn.sigmoid(
            jnp.sum(c_t_new * wp_ct_ref[...], axis=-1, keepdims=True)
            + jnp.sum(h1 * wp_h_ref[...], axis=-1, keepdims=True)
            + jnp.sum(c1 * wp_c_ref[...], axis=-1, keepdims=True)
            + jnp.sum(x * wp_x_ref[...], axis=-1, keepdims=True)
            + bp_ref[...])

        # fc1 on split weights (no concat of [h1, c_t])
        fc1 = (jnp.dot(h1, W1_h_ref[...], preferred_element_type=jnp.float32)
               + jnp.dot(c_t_new, W1_ct_ref[...], preferred_element_type=jnp.float32)
               + b1_ref[...])

        # stash what later vocab tiles need
        fc1_w[...] = fc1
        pgen_w[...] = p_gen
        eprob_w[...] = attn * (1.0 - p_gen)

        # small outputs (resident across the vocab grid, flushed once at the end)
        h1_ref[...] = h1
        c1_ref[...] = c1
        ct_out_ref[...] = c_t_new
        attn_ref[...] = attn
        cov_out_ref[...] = cov_in if do_preattn else cov_next

    # ---------------- per-vocab-tile fc2 logits (W2 streams HBM->VMEM) --------
    off = pl.multiple_of(j * TILE_V, TILE_V)
    logits = (jnp.dot(fc1_w[...], W2_ref[...], preferred_element_type=jnp.float32)
              + b2_ref[...])
    final_ref[:, pl.ds(off, TILE_V)] = logits

    # ---------------- last tile: softmax over resident logits + copy mix ------
    @pl.when(j == nv - 1)
    def _finalize():
        logits_all = final_ref[...]                                   # (B, Vp)
        m = jnp.max(logits_all, axis=1, keepdims=True)
        e = jnp.exp(logits_all - m)                                   # padded cols -> 0
        probs = e * pl.reciprocal(jnp.sum(e, axis=1, keepdims=True), approx=True)
        final_ref[...] = probs * pgen_w[...]                          # vocab part * p_gen

        ids = ext_ids_ref[...]                                        # (B, S) int32
        eprob = eprob_w[...]                                          # (B, S)
        col = lax.broadcasted_iota(jnp.int32, (B, Vp), 1)
        row_sel = lax.broadcasted_iota(jnp.int32, (B, S), 1)

        # copy-mechanism scatter-add without a (B, S, Vp) one-hot temp
        @pl.loop(0, S)
        def _scatter(s):
            sel = row_sel == s
            ids_s = jnp.max(jnp.where(sel, ids, -1), axis=1, keepdims=True)     # (B, 1)
            ep_s = jnp.sum(jnp.where(sel, eprob, 0.0), axis=1, keepdims=True)   # (B, 1)
            final_ref[...] += jnp.where(ids_s == col, ep_s, 0.0)


# ----------------------------------------------------------------------------
# host-side one-time parameter prep (transpose / split / fuse / pad)
# ----------------------------------------------------------------------------
def prepare_kernel_params(p, oov_len, tile_v=512):
    assert tile_v % 128 == 0
    E = p['Wt'].shape[0]
    H = p['Whh'].shape[1]
    V = p['W2'].shape[0]
    Vp = _round_up(V + oov_len, tile_v)
    f32 = jnp.float32

    W2T = p['W2'].T.astype(f32)                                              # (H, V)
    W2p = jnp.zeros((H, Vp), f32).at[:, :V].set(W2T)
    b2p = jnp.full((1, Vp), NEG_BIG, f32).at[:, :V].set(p['b2'].reshape(1, V))

    return dict(
        tile_v=tile_v,
        Wt_c=p['Wt'][:, :2 * H].T, Wt_y=p['Wt'][:, 2 * H:].T, bt=p['bt'].reshape(1, E),
        Wlstm=jnp.concatenate([p['Wih'].T, p['Whh'].T], axis=0),              # (E+H, 4H)
        blstm=(p['bih'] + p['bhh']).reshape(1, 4 * H),
        Wd_h=p['Wd'][:, :H].T, Wd_c=p['Wd'][:, H:].T, bd=p['bd'].reshape(1, 2 * H),
        wa=p['wa'].reshape(1, 2 * H), wc=p['Wc'].reshape(1, 2 * H),
        wp_ct=p['Wp'][:, :2 * H].reshape(1, 2 * H),
        wp_h=p['Wp'][:, 2 * H:3 * H].reshape(1, H),
        wp_c=p['Wp'][:, 3 * H:4 * H].reshape(1, H),
        wp_x=p['Wp'][:, 4 * H:].reshape(1, E),
        bp=p['bp'].reshape(1, 1),
        W1_h=p['W1'][:, :H].T, W1_ct=p['W1'][:, H:].T, b1=p['b1'].reshape(1, H),
        W2p=W2p, b2p=b2p,
    )


# ----------------------------------------------------------------------------
# pallas_call wrapper
# ----------------------------------------------------------------------------
def _full_spec(shape):
    nd = len(shape)
    return pl.BlockSpec(shape, lambda j, _nd=nd: (0,) * _nd)


def decoder_pallas_call(kp, y_emb, c_t, h0, c0, enc_out, enc_fea3, mask, coverage,
                        ext_ids, *, do_preattn):
    B, S, D = enc_out.shape
    H = h0.shape[1]
    Vp = kp['W2p'].shape[1]
    tile_v = kp['tile_v']
    assert Vp % tile_v == 0
    n_tiles = Vp // tile_v

    kernel = functools.partial(decoder_step_kernel, do_preattn=do_preattn)

    data_in = (y_emb, c_t, h0, c0, enc_out, enc_fea3, mask, coverage, ext_ids)
    w_in = (kp['Wt_c'], kp['Wt_y'], kp['bt'],
            kp['Wlstm'], kp['blstm'],
            kp['Wd_h'], kp['Wd_c'], kp['bd'], kp['wa'], kp['wc'],
            kp['wp_ct'], kp['wp_h'], kp['wp_c'], kp['wp_x'], kp['bp'],
            kp['W1_h'], kp['W1_ct'], kp['b1'])

    in_specs = [_full_spec(a.shape) for a in data_in + w_in]
    in_specs += [pl.BlockSpec((H, tile_v), lambda j: (0, j)),   # W2p: streamed per tile
                 pl.BlockSpec((1, tile_v), lambda j: (0, j))]   # b2p: streamed per tile

    out_shape = (jax.ShapeDtypeStruct((B, Vp), jnp.float32),    # final (lane-padded)
                 jax.ShapeDtypeStruct((B, H), jnp.float32),     # h1
                 jax.ShapeDtypeStruct((B, H), jnp.float32),     # c1
                 jax.ShapeDtypeStruct((B, D), jnp.float32),     # c_t
                 jax.ShapeDtypeStruct((B, S), jnp.float32),     # attn (extra_prob)
                 jax.ShapeDtypeStruct((B, S), jnp.float32))     # coverage
    out_specs = (_full_spec((B, Vp)), _full_spec((B, H)), _full_spec((B, H)),
                 _full_spec((B, D)), _full_spec((B, S)), _full_spec((B, S)))

    return pl.pallas_call(
        kernel,
        grid=(n_tiles,),
        in_specs=in_specs,
        out_specs=out_specs,
        out_shape=out_shape,
        scratch_shapes=[pltpu.VMEM((B, H), jnp.float32),     # fc1 output
                        pltpu.VMEM((B, 1), jnp.float32),     # p_gen
                        pltpu.VMEM((B, S), jnp.float32)],    # attn * (1 - p_gen)
        compiler_params=pltpu.CompilerParams(
            # vocab tiles carry state (resident logits / scratch) -> arbitrary
            dimension_semantics=("arbitrary",),
            vmem_limit_bytes=48 * 1024 * 1024),
    )(*data_in, *w_in, kp['W2p'], kp['b2p'])


# ----------------------------------------------------------------------------
# forward wrapper mirroring Decoder.forward (is_copy=True, is_coverage=True)
# ----------------------------------------------------------------------------
def decoder_forward(params, kparams, y_t, s_t, c_t, enc_out, enc_fea, enc_pad_mask,
                    enc_inp_extend_vocab, extra_zeros, coverage, t, training=True):
    h0, c0 = s_t                                  # (1, B, H) each
    B = y_t.shape[0]
    H = h0.shape[-1]
    S = enc_out.shape[1]
    V = params['W2'].shape[0]
    oov = 0 if extra_zeros is None else extra_zeros.shape[1]

    h0 = h0.reshape(B, H)
    c0 = c0.reshape(B, H)
    enc_fea3 = enc_fea.reshape(B, S, 2 * H)

    # embedding lookup: data-dependent row gather, left to XLA outside the kernel
    y_emb = params['embedding'][y_t]

    # pad the batch to a sublane multiple (padded mask rows are all-ones so the
    # padded rows stay finite; they are sliced away below)
    Bp = _round_up(B, 8)

    def pad(a, v=0):
        return jnp.pad(a, ((0, Bp - B),) + ((0, 0),) * (a.ndim - 1), constant_values=v)

    do_preattn = (not training) and t == 0

    final_p, h1, c1, c_t_new, attn, cov_out = decoder_pallas_call(
        kparams,
        pad(y_emb), pad(c_t), pad(h0), pad(c0),
        pad(enc_out), pad(enc_fea3),
        pad(enc_pad_mask, 1.0), pad(coverage),
        pad(enc_inp_extend_vocab.astype(jnp.int32)),
        do_preattn=do_preattn)

    final = final_p[:B, :V + oov]
    s_t_next = (h1[:B][None], c1[:B][None])
    return final, s_t_next, c_t_new[:B], attn[:B], cov_out[:B]


# ----------------------------------------------------------------------------
# pure-JAX reference (direct transcription of the PyTorch forward)
# ----------------------------------------------------------------------------
def _ref_attention(p, s_t_hat, enc_out, enc_fea, mask, coverage):
    B, S, D = enc_out.shape
    dec_fea = s_t_hat @ p['Wd'].T + p['bd'][0]
    dec_fea = jnp.broadcast_to(dec_fea[:, None, :], (B, S, D)).reshape(-1, D)
    att_fea = enc_fea + dec_fea
    att_fea = att_fea + coverage.reshape(-1, 1) @ p['Wc']
    scores = (jnp.tanh(att_fea) @ p['wa'].T).reshape(B, S)
    attn = jax.nn.softmax(scores, axis=1) * mask
    attn = attn / jnp.sum(attn, axis=1, keepdims=True)
    c_t = jnp.einsum('bs,bsd->bd', attn, enc_out)
    return c_t, attn, coverage + attn


def ref_forward(p, y_t, s_t, c_t, enc_out, enc_fea, mask, ext_ids, extra_zeros,
                coverage, t, training=True):
    h0, c0 = s_t
    B = y_t.shape[0]
    H = h0.shape[-1]
    h0 = h0.reshape(B, H)
    c0 = c0.reshape(B, H)
    if (not training) and t == 0:
        s_t_hat = jnp.concatenate([h0, c0], axis=1)
        c_t, _, coverage = _ref_attention(p, s_t_hat, enc_out, enc_fea, mask, coverage)
    y_emb = p['embedding'][y_t]
    x = jnp.concatenate([c_t, y_emb], axis=1) @ p['Wt'].T + p['bt'][0]
    gates = x @ p['Wih'].T + p['bih'][0] + h0 @ p['Whh'].T + p['bhh'][0]
    i, f, g, o = jnp.split(gates, 4, axis=1)
    i, f, g, o = jax.nn.sigmoid(i), jax.nn.sigmoid(f), jnp.tanh(g), jax.nn.sigmoid(o)
    c1 = f * c0 + i * g
    h1 = o * jnp.tanh(c1)
    s_t_hat = jnp.concatenate([h1, c1], axis=1)
    c_t_new, attn, cov_next = _ref_attention(p, s_t_hat, enc_out, enc_fea, mask, coverage)
    if training or t > 0:
        coverage = cov_next
    p_gen = jax.nn.sigmoid(
        jnp.concatenate([c_t_new, s_t_hat, x], axis=1) @ p['Wp'].T + p['bp'][0])
    out = jnp.concatenate([h1, c_t_new], axis=1) @ p['W1'].T + p['b1'][0]
    out = out @ p['W2'].T + p['b2'][0]
    vocab_prob = jax.nn.softmax(out, axis=1)
    vocab_prob_ = vocab_prob * p_gen
    extra_prob_ = attn * (1.0 - p_gen)
    vocab_ext = jnp.concatenate([vocab_prob_, extra_zeros], axis=1)
    rows = jnp.arange(B)[:, None]
    final = vocab_ext.at[rows, ext_ids].add(extra_prob_)
    return final, (h1[None], c1[None]), c_t_new, attn, coverage


# ----------------------------------------------------------------------------
# deterministic parameter init (synthetic; shapes follow Decoder.__init__)
# ----------------------------------------------------------------------------
def init_params(key, vocab_size, emb_dim, hid_dim):
    ks = jax.random.split(key, 20)
    n = lambda k, shape, s=0.1: (jax.random.normal(k, shape, jnp.float32) * s)
    H, E, V = hid_dim, emb_dim, vocab_size
    return {
        'embedding': n(ks[0], (V, E)),
        'Wt': n(ks[1], (E, 2 * H + E)),  'bt': n(ks[2], (1, E)),
        'Wih': n(ks[3], (4 * H, E)),     'bih': n(ks[4], (1, 4 * H)),
        'Whh': n(ks[5], (4 * H, H)),     'bhh': n(ks[6], (1, 4 * H)),
        'Wd': n(ks[7], (2 * H, 2 * H)),  'bd': n(ks[8], (1, 2 * H)),
        'wa': n(ks[9], (1, 2 * H)),      'Wc': n(ks[10], (1, 2 * H)),  # cov_fc.weight.T
        'Wp': n(ks[11], (1, 4 * H + E)), 'bp': n(ks[12], (1, 1)),
        'W1': n(ks[13], (H, 3 * H)),     'b1': n(ks[14], (1, H)),
        'W2': n(ks[15], (V, H)),         'b2': n(ks[16], (1, V)),
    }


if __name__ == "__main__":
    B, S, H, E, V, OOV = 2, 8, 32, 32, 250, 4
    TILE_V = 128   # -> vocab padded to 256, two vocab tiles exercise the grid

    params = init_params(jax.random.PRNGKey(0), V, E, H)
    kparams = prepare_kernel_params(params, oov_len=OOV, tile_v=TILE_V)

    keys = jax.random.split(jax.random.PRNGKey(1), 10)
    y_t = jax.random.randint(keys[0], (B,), 0, V)
    h0 = jax.random.normal(keys[1], (1, B, H), jnp.float32) * 0.1
    c0 = jax.random.normal(keys[2], (1, B, H), jnp.float32) * 0.1
    c_t = jax.random.normal(keys[3], (B, 2 * H), jnp.float32) * 0.1
    enc_out = jax.random.normal(keys[4], (B, S, 2 * H), jnp.float32)
    enc_fea = jax.random.normal(keys[5], (B * S, 2 * H), jnp.float32)
    enc_pad_mask = (jnp.arange(S)[None, :] < jnp.array([[S], [S - 2]])).astype(jnp.float32)
    ext_ids = jax.random.randint(keys[6], (B, S), 0, V + OOV)
    extra_zeros = jnp.zeros((B, OOV), jnp.float32)
    coverage = jax.random.uniform(keys[7], (B, S), jnp.float32) * 0.1

    def check(got, want):
        # slightly loose tolerance: pl.reciprocal(approx=True) is used in the
        # softmax / renormalization denominators inside the kernel
        for g, w in zip(jax.tree_util.tree_leaves(got), jax.tree_util.tree_leaves(want)):
            assert g.shape == w.shape, (g.shape, w.shape)
            assert jnp.allclose(g, w, rtol=1e-2, atol=2e-3), float(jnp.max(jnp.abs(g - w)))

    # training path (t > 0 behaves identically in training)
    out = decoder_forward(params, kparams, y_t, (h0, c0), c_t, enc_out, enc_fea,
                          enc_pad_mask, ext_ids, extra_zeros, coverage, t=3, training=True)
    jax.block_until_ready(out)
    ref = ref_forward(params, y_t, (h0, c0), c_t, enc_out, enc_fea, enc_pad_mask,
                      ext_ids, extra_zeros, coverage, t=3, training=True)
    check(out, ref)

    # eval / t == 0 path (fused pre-attention step)
    out0 = decoder_forward(params, kparams, y_t, (h0, c0), c_t, enc_out, enc_fea,
                           enc_pad_mask, ext_ids, extra_zeros, coverage, t=0, training=False)
    jax.block_until_ready(out0)
    ref0 = ref_forward(params, y_t, (h0, c0), c_t, enc_out, enc_fea, enc_pad_mask,
                       ext_ids, extra_zeros, coverage, t=0, training=False)
    check(out0, ref0)

    print("KERNEL_OK")
</pallas_src>

<mosaic_0001>
module attributes {stable_mosaic.version = 11 : i64} {
  func.func @decoder_step_kernel(%arg0: i32, %arg1: memref<8x32xf32, #tpu.memory_space<vmem>>, %arg2: memref<8x64xf32, #tpu.memory_space<vmem>>, %arg3: memref<8x32xf32, #tpu.memory_space<vmem>>, %arg4: memref<8x32xf32, #tpu.memory_space<vmem>>, %arg5: memref<8x8x64xf32, #tpu.memory_space<vmem>>, %arg6: memref<8x8x64xf32, #tpu.memory_space<vmem>>, %arg7: memref<8x8xf32, #tpu.memory_space<vmem>>, %arg8: memref<8x8xf32, #tpu.memory_space<vmem>>, %arg9: memref<8x8xi32, #tpu.memory_space<vmem>>, %arg10: memref<64x32xf32, #tpu.memory_space<vmem>>, %arg11: memref<32x32xf32, #tpu.memory_space<vmem>>, %arg12: memref<1x32xf32, #tpu.memory_space<vmem>>, %arg13: memref<64x128xf32, #tpu.memory_space<vmem>>, %arg14: memref<1x128xf32, #tpu.memory_space<vmem>>, %arg15: memref<32x64xf32, #tpu.memory_space<vmem>>, %arg16: memref<32x64xf32, #tpu.memory_space<vmem>>, %arg17: memref<1x64xf32, #tpu.memory_space<vmem>>, %arg18: memref<1x64xf32, #tpu.memory_space<vmem>>, %arg19: memref<1x64xf32, #tpu.memory_space<vmem>>, %arg20: memref<1x64xf32, #tpu.memory_space<vmem>>, %arg21: memref<1x32xf32, #tpu.memory_space<vmem>>, %arg22: memref<1x32xf32, #tpu.memory_space<vmem>>, %arg23: memref<1x32xf32, #tpu.memory_space<vmem>>, %arg24: memref<1x1xf32, #tpu.memory_space<vmem>>, %arg25: memref<32x32xf32, #tpu.memory_space<vmem>>, %arg26: memref<64x32xf32, #tpu.memory_space<vmem>>, %arg27: memref<1x32xf32, #tpu.memory_space<vmem>>, %arg28: memref<32x128xf32, #tpu.memory_space<vmem>>, %arg29: memref<1x128xf32, #tpu.memory_space<vmem>>, %arg30: memref<8x256xf32, #tpu.memory_space<vmem>>, %arg31: memref<8x32xf32, #tpu.memory_space<vmem>>, %arg32: memref<8x32xf32, #tpu.memory_space<vmem>>, %arg33: memref<8x64xf32, #tpu.memory_space<vmem>>, %arg34: memref<8x8xf32, #tpu.memory_space<vmem>>, %arg35: memref<8x8xf32, #tpu.memory_space<vmem>>, %arg36: memref<8x32xf32, #tpu.memory_space<vmem>>, %arg37: memref<8x1xf32, #tpu.memory_space<vmem>>, %arg38: memref<8x8xf32, #tpu.memory_space<vmem>>) attributes {dimension_semantics = [#tpu.dimension_semantics<arbitrary>], iteration_bounds = array<i64: 2>, scalar_prefetch = 0 : i64, scratch_operands = 3 : i64, tpu.core_type = #tpu.core_type<tc>, window_params = [{pipeline_mode = #tpu.pipeline_mode<synchronous>, transform_indices = @transform_0, window_bounds = array<i64: 8, 32>}, {pipeline_mode = #tpu.pipeline_mode<synchronous>, transform_indices = @transform_1, window_bounds = array<i64: 8, 64>}, {pipeline_mode = #tpu.pipeline_mode<synchronous>, transform_indices = @transform_2, window_bounds = array<i64: 8, 32>}, {pipeline_mode = #tpu.pipeline_mode<synchronous>, transform_indices = @transform_3, window_bounds = array<i64: 8, 32>}, {pipeline_mode = #tpu.pipeline_mode<synchronous>, transform_indices = @transform_4, window_bounds = array<i64: 8, 8, 64>}, {pipeline_mode = #tpu.pipeline_mode<synchronous>, transform_indices = @transform_5, window_bounds = array<i64: 8, 8, 64>}, {pipeline_mode = #tpu.pipeline_mode<synchronous>, transform_indices = @transform_6, window_bounds = array<i64: 8, 8>}, {pipeline_mode = #tpu.pipeline_mode<synchronous>, transform_indices = @transform_7, window_bounds = array<i64: 8, 8>}, {pipeline_mode = #tpu.pipeline_mode<synchronous>, transform_indices = @transform_8, window_bounds = array<i64: 8, 8>}, {pipeline_mode = #tpu.pipeline_mode<synchronous>, transform_indices = @transform_9, window_bounds = array<i64: 64, 32>}, {pipeline_mode = #tpu.pipeline_mode<synchronous>, transform_indices = @transform_10, window_bounds = array<i64: 32, 32>}, {pipeline_mode = #tpu.pipeline_mode<synchronous>, transform_indices = @transform_11, window_bounds = array<i64: 1, 32>}, {pipeline_mode = #tpu.pipeline_mode<synchronous>, transform_indices = @transform_12, window_bounds = array<i64: 64, 128>}, {pipeline_mode = #tpu.pipeline_mode<synchronous>, transform_indices = @transform_13, window_bounds = array<i64: 1, 128>}, {pipeline_mode = #tpu.pipeline_mode<synchronous>, transform_indices = @transform_14, window_bounds = array<i64: 32, 64>}, {pipeline_mode = #tpu.pipeline_mode<synchronous>, transform_indices = @transform_15, window_bounds = array<i64: 32, 64>}, {pipeline_mode = #tpu.pipeline_mode<synchronous>, transform_indices = @transform_16, window_bounds = array<i64: 1, 64>}, {pipeline_mode = #tpu.pipeline_mode<synchronous>, transform_indices = @transform_17, window_bounds = array<i64: 1, 64>}, {pipeline_mode = #tpu.pipeline_mode<synchronous>, transform_indices = @transform_18, window_bounds = array<i64: 1, 64>}, {pipeline_mode = #tpu.pipeline_mode<synchronous>, transform_indices = @transform_19, window_bounds = array<i64: 1, 64>}, {pipeline_mode = #tpu.pipeline_mode<synchronous>, transform_indices = @transform_20, window_bounds = array<i64: 1, 32>}, {pipeline_mode = #tpu.pipeline_mode<synchronous>, transform_indices = @transform_21, window_bounds = array<i64: 1, 32>}, {pipeline_mode = #tpu.pipeline_mode<synchronous>, transform_indices = @transform_22, window_bounds = array<i64: 1, 32>}, {pipeline_mode = #tpu.pipeline_mode<synchronous>, transform_indices = @transform_23, window_bounds = array<i64: 1, 1>}, {pipeline_mode = #tpu.pipeline_mode<synchronous>, transform_indices = @transform_24, window_bounds = array<i64: 32, 32>}, {pipeline_mode = #tpu.pipeline_mode<synchronous>, transform_indices = @transform_25, window_bounds = array<i64: 64, 32>}, {pipeline_mode = #tpu.pipeline_mode<synchronous>, transform_indices = @transform_26, window_bounds = array<i64: 1, 32>}, {transform_indices = @transform_27, window_bounds = array<i64: 32, 128>}, {transform_indices = @transform_28, window_bounds = array<i64: 1, 128>}, {pipeline_mode = #tpu.pipeline_mode<synchronous>, transform_indices = @transform_29, window_bounds = array<i64: 8, 256>}, {pipeline_mode = #tpu.pipeline_mode<synchronous>, transform_indices = @transform_30, window_bounds = array<i64: 8, 32>}, {pipeline_mode = #tpu.pipeline_mode<synchronous>, transform_indices = @transform_31, window_bounds = array<i64: 8, 32>}, {pipeline_mode = #tpu.pipeline_mode<synchronous>, transform_indices = @transform_32, window_bounds = array<i64: 8, 64>}, {pipeline_mode = #tpu.pipeline_mode<synchronous>, transform_indices = @transform_33, window_bounds = array<i64: 8, 8>}, {pipeline_mode = #tpu.pipeline_mode<synchronous>, transform_indices = @transform_34, window_bounds = array<i64: 8, 8>}]} {
    %c0_i32 = arith.constant 0 : i32
    %0 = arith.cmpi eq, %arg0, %c0_i32 : i32
    %1 = arith.extui %0 : i1 to i32
    %c0_i32_0 = arith.constant 0 : i32
    %2 = arith.cmpi ne, %1, %c0_i32_0 : i32
    scf.if %2 {
      %c0_8 = arith.constant 0 : index
      %c0_9 = arith.constant 0 : index
      %16 = vector.load %arg3[%c0_8, %c0_9] : memref<8x32xf32, #tpu.memory_space<vmem>>, vector<8x32xf32>
      %c0_10 = arith.constant 0 : index
      %c0_11 = arith.constant 0 : index
      %17 = vector.load %arg4[%c0_10, %c0_11] : memref<8x32xf32, #tpu.memory_space<vmem>>, vector<8x32xf32>
      %c0_12 = arith.constant 0 : index
      %c0_13 = arith.constant 0 : index
      %c0_14 = arith.constant 0 : index
      %18 = vector.load %arg5[%c0_12, %c0_13, %c0_14] : memref<8x8x64xf32, #tpu.memory_space<vmem>>, vector<8x8x64xf32>
      %c0_15 = arith.constant 0 : index
      %c0_16 = arith.constant 0 : index
      %c0_17 = arith.constant 0 : index
      %19 = vector.load %arg6[%c0_15, %c0_16, %c0_17] : memref<8x8x64xf32, #tpu.memory_space<vmem>>, vector<8x8x64xf32>
      %c0_18 = arith.constant 0 : index
      %c0_19 = arith.constant 0 : index
      %20 = vector.load %arg7[%c0_18, %c0_19] : memref<8x8xf32, #tpu.memory_space<vmem>>, vector<8x8xf32>
      %c0_20 = arith.constant 0 : index
      %c0_21 = arith.constant 0 : index
      %21 = vector.load %arg8[%c0_20, %c0_21] : memref<8x8xf32, #tpu.memory_space<vmem>>, vector<8x8xf32>
      %c0_22 = arith.constant 0 : index
      %c0_23 = arith.constant 0 : index
      %22 = vector.load %arg15[%c0_22, %c0_23] : memref<32x64xf32, #tpu.memory_space<vmem>>, vector<32x64xf32>
      %c0_24 = arith.constant 0 : index
      %c0_25 = arith.constant 0 : index
      %23 = vector.load %arg16[%c0_24, %c0_25] : memref<32x64xf32, #tpu.memory_space<vmem>>, vector<32x64xf32>
      %c0_26 = arith.constant 0 : index
      %c0_27 = arith.constant 0 : index
      %24 = vector.load %arg17[%c0_26, %c0_27] : memref<1x64xf32, #tpu.memory_space<vmem>>, vector<1x64xf32>
      %c0_28 = arith.constant 0 : index
      %c0_29 = arith.constant 0 : index
      %25 = vector.load %arg18[%c0_28, %c0_29] : memref<1x64xf32, #tpu.memory_space<vmem>>, vector<1x64xf32>
      %c0_30 = arith.constant 0 : index
      %c0_31 = arith.constant 0 : index
      %26 = vector.load %arg19[%c0_30, %c0_31] : memref<1x64xf32, #tpu.memory_space<vmem>>, vector<1x64xf32>
      %c0_32 = arith.constant 0 : index
      %c0_33 = arith.constant 0 : index
      %27 = vector.load %arg2[%c0_32, %c0_33] : memref<8x64xf32, #tpu.memory_space<vmem>>, vector<8x64xf32>
      %c0_34 = arith.constant 0 : index
      %c0_35 = arith.constant 0 : index
      %28 = vector.load %arg10[%c0_34, %c0_35] : memref<64x32xf32, #tpu.memory_space<vmem>>, vector<64x32xf32>
      %cst_36 = arith.constant dense<0.000000e+00> : vector<8x32xf32>
      %29 = tpu.matmul %27, %28, %cst_36 {dimension_numbers = #tpu.dot_dimension_numbers<[1], [0], [0], [1], [0, 0, 1, 1], [], []>} : vector<8x64xf32>, vector<64x32xf32>, vector<8x32xf32> -> vector<8x32xf32>
      %c0_37 = arith.constant 0 : index
      %c0_38 = arith.constant 0 : index
      %30 = vector.load %arg1[%c0_37, %c0_38] : memref<8x32xf32, #tpu.memory_space<vmem>>, vector<8x32xf32>
      %c0_39 = arith.constant 0 : index
      %c0_40 = arith.constant 0 : index
      %31 = vector.load %arg11[%c0_39, %c0_40] : memref<32x32xf32, #tpu.memory_space<vmem>>, vector<32x32xf32>
      %cst_41 = arith.constant dense<0.000000e+00> : vector<8x32xf32>
      %32 = tpu.matmul %30, %31, %cst_41 {dimension_numbers = #tpu.dot_dimension_numbers<[1], [0], [0], [1], [0, 0, 1, 1], [], []>} : vector<8x32xf32>, vector<32x32xf32>, vector<8x32xf32> -> vector<8x32xf32>
      %33 = arith.addf %29, %32 : vector<8x32xf32>
      %c0_42 = arith.constant 0 : index
      %c0_43 = arith.constant 0 : index
      %34 = vector.load %arg12[%c0_42, %c0_43] : memref<1x32xf32, #tpu.memory_space<vmem>>, vector<1x32xf32>
      %35 = vector.broadcast %34 : vector<1x32xf32> to vector<8x32xf32>
      %36 = arith.addf %33, %35 : vector<8x32xf32>
      %37 = tpu.concatenate %36, %16 in 1 : vector<8x32xf32>, vector<8x32xf32> -> vector<8x64xf32>
      %c0_44 = arith.constant 0 : index
      %c0_45 = arith.constant 0 : index
      %38 = vector.load %arg13[%c0_44, %c0_45] : memref<64x128xf32, #tpu.memory_space<vmem>>, vector<64x128xf32>
      %cst_46 = arith.constant dense<0.000000e+00> : vector<8x128xf32>
      %39 = tpu.matmul %37, %38, %cst_46 {dimension_numbers = #tpu.dot_dimension_numbers<[1], [0], [0], [1], [0, 0, 1, 1], [], []>} : vector<8x64xf32>, vector<64x128xf32>, vector<8x128xf32> -> vector<8x128xf32>
      %c0_47 = arith.constant 0 : index
      %c0_48 = arith.constant 0 : index
      %40 = vector.load %arg14[%c0_47, %c0_48] : memref<1x128xf32, #tpu.memory_space<vmem>>, vector<1x128xf32>
      %41 = vector.broadcast %40 : vector<1x128xf32> to vector<8x128xf32>
      %42 = arith.addf %39, %41 : vector<8x128xf32>
      %43 = vector.extract_strided_slice %42 {offsets = [0, 0], sizes = [8, 32], strides = [1, 1]} : vector<8x128xf32> to vector<8x32xf32>
      %44 = arith.negf %43 : vector<8x32xf32>
      %45 = math.exp %44 : vector<8x32xf32>
      %cst_49 = arith.constant 1.000000e+00 : f32
      %46 = vector.broadcast %cst_49 : f32 to vector<8x32xf32>
      %47 = arith.addf %46, %45 : vector<8x32xf32>
      %48 = arith.divf %46, %47 : vector<8x32xf32>
      %49 = vector.extract_strided_slice %42 {offsets = [0, 32], sizes = [8, 32], strides = [1, 1]} : vector<8x128xf32> to vector<8x32xf32>
      %50 = arith.negf %49 : vector<8x32xf32>
      %51 = math.exp %50 : vector<8x32xf32>
      %cst_50 = arith.constant 1.000000e+00 : f32
      %52 = vector.broadcast %cst_50 : f32 to vector<8x32xf32>
      %53 = arith.addf %52, %51 : vector<8x32xf32>
      %54 = arith.divf %52, %53 : vector<8x32xf32>
      %55 = vector.extract_strided_slice %42 {offsets = [0, 64], sizes = [8, 32], strides = [1, 1]} : vector<8x128xf32> to vector<8x32xf32>
      %56 = math.tanh %55 : vector<8x32xf32>
      %57 = vector.extract_strided_slice %42 {offsets = [0, 96], sizes = [8, 32], strides = [1, 1]} : vector<8x128xf32> to vector<8x32xf32>
      %58 = arith.negf %57 : vector<8x32xf32>
      %59 = math.exp %58 : vector<8x32xf32>
      %cst_51 = arith.constant 1.000000e+00 : f32
      %60 = vector.broadcast %cst_51 : f32 to vector<8x32xf32>
      %61 = arith.addf %60, %59 : vector<8x32xf32>
      %62 = arith.divf %60, %61 : vector<8x32xf32>
      %63 = arith.mulf %54, %17 : vector<8x32xf32>
      %64 = arith.mulf %48, %56 : vector<8x32xf32>
      %65 = arith.addf %63, %64 : vector<8x32xf32>
      %66 = math.tanh %65 : vector<8x32xf32>
      %67 = arith.mulf %62, %66 : vector<8x32xf32>
      %cst_52 = arith.constant dense<0.000000e+00> : vector<8x64xf32>
      %68 = tpu.matmul %67, %22, %cst_52 {dimension_numbers = #tpu.dot_dimension_numbers<[1], [0], [0], [1], [0, 0, 1, 1], [], []>} : vector<8x32xf32>, vector<32x64xf32>, vector<8x64xf32> -> vector<8x64xf32>
      %cst_53 = arith.constant dense<0.000000e+00> : vector<8x64xf32>
      %69 = tpu.matmul %65, %23, %cst_53 {dimension_numbers = #tpu.dot_dimension_numbers<[1], [0], [0], [1], [0, 0, 1, 1], [], []>} : vector<8x32xf32>, vector<32x64xf32>, vector<8x64xf32> -> vector<8x64xf32>
      %70 = arith.addf %68, %69 : vector<8x64xf32>
      %71 = vector.broadcast %24 : vector<1x64xf32> to vector<8x64xf32>
      %72 = arith.addf %70, %71 : vector<8x64xf32>
      %73 = vector.shape_cast %72 : vector<8x64xf32> to vector<8x1x64xf32>
      %74 = vector.broadcast %73 : vector<8x1x64xf32> to vector<8x8x64xf32>
      %75 = arith.addf %19, %74 : vector<8x8x64xf32>
      %76 = vector.shape_cast %21 : vector<8x8xf32> to vector<8x8x1xf32>
      %77 = vector.shape_cast %26 : vector<1x64xf32> to vector<1x1x64xf32>
      %78 = vector.broadcast %76 : vector<8x8x1xf32> to vector<8x8x64xf32>
      %79 = vector.broadcast %77 : vector<1x1x64xf32> to vector<8x8x64xf32>
      %80 = arith.mulf %78, %79 : vector<8x8x64xf32>
      %81 = arith.addf %75, %80 : vector<8x8x64xf32>
      %82 = math.tanh %81 : vector<8x8x64xf32>
      %83 = vector.shape_cast %25 : vector<1x64xf32> to vector<1x1x64xf32>
      %84 = vector.broadcast %83 : vector<1x1x64xf32> to vector<8x8x64xf32>
      %85 = arith.mulf %82, %84 : vector<8x8x64xf32>
      %cst_54 = arith.constant dense<0.000000e+00> : vector<8x8xf32>
      %86 = vector.multi_reduction <add>, %85, %cst_54 [2] : vector<8x8x64xf32> to vector<8x8xf32>
      %cst_55 = arith.constant dense<0xFF800000> : vector<8xf32>
      %87 = vector.multi_reduction <maximumf>, %86, %cst_55 [1] : vector<8x8xf32> to vector<8xf32>
      %88 = vector.shape_cast %87 : vector<8xf32> to vector<8x1xf32>
      %89 = vector.broadcast %88 : vector<8x1xf32> to vector<8x8xf32>
      %90 = arith.subf %86, %89 : vector<8x8xf32>
      %91 = math.exp %90 : vector<8x8xf32>
      %cst_56 = arith.constant dense<0.000000e+00> : vector<8xf32>
      %92 = vector.multi_reduction <add>, %91, %cst_56 [1] : vector<8x8xf32> to vector<8xf32>
      %93 = vector.shape_cast %92 : vector<8xf32> to vector<8x1xf32>
      %94 = tpu.reciprocal %93 {approx = true} : vector<8x1xf32> -> vector<8x1xf32>
      %95 = vector.broadcast %94 : vector<8x1xf32> to vector<8x8xf32>
      %96 = arith.mulf %91, %95 : vector<8x8xf32>
      %97 = arith.mulf %96, %20 : vector<8x8xf32>
      %cst_57 = arith.constant dense<0.000000e+00> : vector<8xf32>
      %98 = vector.multi_reduction <add>, %97, %cst_57 [1] : vector<8x8xf32> to vector<8xf32>
      %99 = vector.shape_cast %98 : vector<8xf32> to vector<8x1xf32>
      %100 = tpu.reciprocal %99 {approx = true} : vector<8x1xf32> -> vector<8x1xf32>
      %101 = vector.broadcast %100 : vector<8x1xf32> to vector<8x8xf32>
      %102 = arith.mulf %97, %101 : vector<8x8xf32>
      %103 = vector.shape_cast %102 : vector<8x8xf32> to vector<8x8x1xf32>
      %104 = vector.broadcast %103 : vector<8x8x1xf32> to vector<8x8x64xf32>
      %105 = arith.mulf %104, %18 : vector<8x8x64xf32>
      %cst_58 = arith.constant dense<0.000000e+00> : vector<8x64xf32>
      %106 = vector.multi_reduction <add>, %105, %cst_58 [1] : vector<8x8x64xf32> to vector<8x64xf32>
      %107 = arith.addf %21, %102 : vector<8x8xf32>
      %c0_59 = arith.constant 0 : index
      %c0_60 = arith.constant 0 : index
      %108 = vector.load %arg20[%c0_59, %c0_60] : memref<1x64xf32, #tpu.memory_space<vmem>>, vector<1x64xf32>
      %109 = vector.broadcast %108 : vector<1x64xf32> to vector<8x64xf32>
      %110 = arith.mulf %106, %109 : vector<8x64xf32>
      %cst_61 = arith.constant dense<0.000000e+00> : vector<8xf32>
      %111 = vector.multi_reduction <add>, %110, %cst_61 [1] : vector<8x64xf32> to vector<8xf32>
      %112 = vector.shape_cast %111 : vector<8xf32> to vector<8x1xf32>
      %c0_62 = arith.constant 0 : index
      %c0_63 = arith.constant 0 : index
      %113 = vector.load %arg21[%c0_62, %c0_63] : memref<1x32xf32, #tpu.memory_space<vmem>>, vector<1x32xf32>
      %114 = vector.broadcast %113 : vector<1x32xf32> to vector<8x32xf32>
      %115 = arith.mulf %67, %114 : vector<8x32xf32>
      %cst_64 = arith.constant dense<0.000000e+00> : vector<8xf32>
      %116 = vector.multi_reduction <add>, %115, %cst_64 [1] : vector<8x32xf32> to vector<8xf32>
      %117 = vector.shape_cast %116 : vector<8xf32> to vector<8x1xf32>
      %118 = arith.addf %112, %117 : vector<8x1xf32>
      %c0_65 = arith.constant 0 : index
      %c0_66 = arith.constant 0 : index
      %119 = vector.load %arg22[%c0_65, %c0_66] : memref<1x32xf32, #tpu.memory_space<vmem>>, vector<1x32xf32>
      %120 = vector.broadcast %119 : vector<1x32xf32> to vector<8x32xf32>
      %121 = arith.mulf %65, %120 : vector<8x32xf32>
      %cst_67 = arith.constant dense<0.000000e+00> : vector<8xf32>
      %122 = vector.multi_reduction <add>, %121, %cst_67 [1] : vector<8x32xf32> to vector<8xf32>
      %123 = vector.shape_cast %122 : vector<8xf32> to vector<8x1xf32>
      %124 = arith.addf %118, %123 : vector<8x1xf32>
      %c0_68 = arith.constant 0 : index
      %c0_69 = arith.constant 0 : index
      %125 = vector.load %arg23[%c0_68, %c0_69] : memref<1x32xf32, #tpu.memory_space<vmem>>, vector<1x32xf32>
      %126 = vector.broadcast %125 : vector<1x32xf32> to vector<8x32xf32>
      %127 = arith.mulf %36, %126 : vector<8x32xf32>
      %cst_70 = arith.constant dense<0.000000e+00> : vector<8xf32>
      %128 = vector.multi_reduction <add>, %127, %cst_70 [1] : vector<8x32xf32> to vector<8xf32>
      %129 = vector.shape_cast %128 : vector<8xf32> to vector<8x1xf32>
      %130 = arith.addf %124, %129 : vector<8x1xf32>
      %c0_71 = arith.constant 0 : index
      %c0_72 = arith.constant 0 : index
      %131 = vector.load %arg24[%c0_71, %c0_72] : memref<1x1xf32, #tpu.memory_space<vmem>>, vector<1x1xf32>
      %132 = vector.broadcast %131 : vector<1x1xf32> to vector<8x1xf32>
      %133 = arith.addf %130, %132 : vector<8x1xf32>
      %134 = arith.negf %133 : vector<8x1xf32>
      %135 = math.exp %134 : vector<8x1xf32>
      %cst_73 = arith.constant 1.000000e+00 : f32
      %136 = vector.broadcast %cst_73 : f32 to vector<8x1xf32>
      %137 = arith.addf %136, %135 : vector<8x1xf32>
      %138 = arith.divf %136, %137 : vector<8x1xf32>
      %c0_74 = arith.constant 0 : index
      %c0_75 = arith.constant 0 : index
      %139 = vector.load %arg25[%c0_74, %c0_75] : memref<32x32xf32, #tpu.memory_space<vmem>>, vector<32x32xf32>
      %cst_76 = arith.constant dense<0.000000e+00> : vector<8x32xf32>
      %140 = tpu.matmul %67, %139, %cst_76 {dimension_numbers = #tpu.dot_dimension_numbers<[1], [0], [0], [1], [0, 0, 1, 1], [], []>} : vector<8x32xf32>, vector<32x32xf32>, vector<8x32xf32> -> vector<8x32xf32>
      %c0_77 = arith.constant 0 : index
      %c0_78 = arith.constant 0 : index
      %141 = vector.load %arg26[%c0_77, %c0_78] : memref<64x32xf32, #tpu.memory_space<vmem>>, vector<64x32xf32>
      %cst_79 = arith.constant dense<0.000000e+00> : vector<8x32xf32>
      %142 = tpu.matmul %106, %141, %cst_79 {dimension_numbers = #tpu.dot_dimension_numbers<[1], [0], [0], [1], [0, 0, 1, 1], [], []>} : vector<8x64xf32>, vector<64x32xf32>, vector<8x32xf32> -> vector<8x32xf32>
      %143 = arith.addf %140, %142 : vector<8x32xf32>
      %c0_80 = arith.constant 0 : index
      %c0_81 = arith.constant 0 : index
      %144 = vector.load %arg27[%c0_80, %c0_81] : memref<1x32xf32, #tpu.memory_space<vmem>>, vector<1x32xf32>
      %145 = vector.broadcast %144 : vector<1x32xf32> to vector<8x32xf32>
      %146 = arith.addf %143, %145 : vector<8x32xf32>
      %c0_82 = arith.constant 0 : index
      %c0_83 = arith.constant 0 : index
      %147 = vector.load %arg36[%c0_82, %c0_83] : memref<8x32xf32, #tpu.memory_space<vmem>>, vector<8x32xf32>
      tpu.vector_store %arg36[%c0_82, %c0_83], %146 {strides = array<i32>} : memref<8x32xf32, #tpu.memory_space<vmem>>, vector<8x32xf32>,
      %c0_84 = arith.constant 0 : index
      %c0_85 = arith.constant 0 : index
      %148 = vector.load %arg37[%c0_84, %c0_85] : memref<8x1xf32, #tpu.memory_space<vmem>>, vector<8x1xf32>
      tpu.vector_store %arg37[%c0_84, %c0_85], %138 {strides = array<i32>} : memref<8x1xf32, #tpu.memory_space<vmem>>, vector<8x1xf32>,
      %cst_86 = arith.constant 1.000000e+00 : f32
      %149 = vector.broadcast %cst_86 : f32 to vector<8x1xf32>
      %150 = arith.subf %149, %138 : vector<8x1xf32>
      %151 = vector.broadcast %150 : vector<8x1xf32> to vector<8x8xf32>
      %152 = arith.mulf %102, %151 : vector<8x8xf32>
      %c0_87 = arith.constant 0 : index
      %c0_88 = arith.constant 0 : index
      %153 = vector.load %arg38[%c0_87, %c0_88] : memref<8x8xf32, #tpu.memory_space<vmem>>, vector<8x8xf32>
      tpu.vector_store %arg38[%c0_87, %c0_88], %152 {strides = array<i32>} : memref<8x8xf32, #tpu.memory_space<vmem>>, vector<8x8xf32>,
      %c0_89 = arith.constant 0 : index
      %c0_90 = arith.constant 0 : index
      %154 = vector.load %arg31[%c0_89, %c0_90] : memref<8x32xf32, #tpu.memory_space<vmem>>, vector<8x32xf32>
      tpu.vector_store %arg31[%c0_89, %c0_90], %67 {strides = array<i32>} : memref<8x32xf32, #tpu.memory_space<vmem>>, vector<8x32xf32>,
      %c0_91 = arith.constant 0 : index
      %c0_92 = arith.constant 0 : index
      %155 = vector.load %arg32[%c0_91, %c0_92] : memref<8x32xf32, #tpu.memory_space<vmem>>, vector<8x32xf32>
      tpu.vector_store %arg32[%c0_91, %c0_92], %65 {strides = array<i32>} : memref<8x32xf32, #tpu.memory_space<vmem>>, vector<8x32xf32>,
      %c0_93 = arith.constant 0 : index
      %c0_94 = arith.constant 0 : index
      %156 = vector.load %arg33[%c0_93, %c0_94] : memref<8x64xf32, #tpu.memory_space<vmem>>, vector<8x64xf32>
      tpu.vector_store %arg33[%c0_93, %c0_94], %106 {strides = array<i32>} : memref<8x64xf32, #tpu.memory_space<vmem>>, vector<8x64xf32>,
      %c0_95 = arith.constant 0 : index
      %c0_96 = arith.constant 0 : index
      %157 = vector.load %arg34[%c0_95, %c0_96] : memref<8x8xf32, #tpu.memory_space<vmem>>, vector<8x8xf32>
      tpu.vector_store %arg34[%c0_95, %c0_96], %102 {strides = array<i32>} : memref<8x8xf32, #tpu.memory_space<vmem>>, vector<8x8xf32>,
      %c0_97 = arith.constant 0 : index
      %c0_98 = arith.constant 0 : index
      %158 = vector.load %arg35[%c0_97, %c0_98] : memref<8x8xf32, #tpu.memory_space<vmem>>, vector<8x8xf32>
      tpu.vector_store %arg35[%c0_97, %c0_98], %107 {strides = array<i32>} : memref<8x8xf32, #tpu.memory_space<vmem>>, vector<8x8xf32>,
    } else {
    }
    %c128_i32 = arith.constant 128 : i32
    %3 = arith.muli %arg0, %c128_i32 : i32
    %4 = tpu.assume_multiple %3, 128 : i32
    %c0 = arith.constant 0 : index
    %c0_1 = arith.constant 0 : index
    %5 = vector.load %arg36[%c0, %c0_1] : memref<8x32xf32, #tpu.memory_space<vmem>>, vector<8x32xf32>
    %c0_2 = arith.constant 0 : index
    %c0_3 = arith.constant 0 : index
    %6 = vector.load %arg28[%c0_2, %c0_3] : memref<32x128xf32, #tpu.memory_space<vmem>>, vector<32x128xf32>
    %cst = arith.constant dense<0.000000e+00> : vector<8x128xf32>
    %7 = tpu.matmul %5, %6, %cst {dimension_numbers = #tpu.dot_dimension_numbers<[1], [0], [0], [1], [0, 0, 1, 1], [], []>} : vector<8x32xf32>, vector<32x128xf32>, vector<8x128xf32> -> vector<8x128xf32>
    %c0_4 = arith.constant 0 : index
    %c0_5 = arith.constant 0 : index
    %8 = vector.load %arg29[%c0_4, %c0_5] : memref<1x128xf32, #tpu.memory_space<vmem>>, vector<1x128xf32>
    %9 = vector.broadcast %8 : vector<1x128xf32> to vector<8x128xf32>
    %10 = arith.addf %7, %9 : vector<8x128xf32>
    %c0_6 = arith.constant 0 : index
    %11 = arith.index_cast %4 : i32 to index
    %12 = vector.load %arg30[%c0_6, %11] : memref<8x256xf32, #tpu.memory_space<vmem>>, vector<8x128xf32>
    tpu.vector_store %arg30[%c0_6, %11], %10 {strides = array<i32>} : memref<8x256xf32, #tpu.memory_space<vmem>>, vector<8x128xf32>,
    %c1_i32 = arith.constant 1 : i32
    %13 = arith.cmpi eq, %arg0, %c1_i32 : i32
    %14 = arith.extui %13 : i1 to i32
    %c0_i32_7 = arith.constant 0 : i32
    %15 = arith.cmpi ne, %14, %c0_i32_7 : i32
    scf.if %15 {
      %c0_8 = arith.constant 0 : index
      %c0_9 = arith.constant 0 : index
      %16 = vector.load %arg30[%c0_8, %c0_9] : memref<8x256xf32, #tpu.memory_space<vmem>>, vector<8x256xf32>
      %cst_10 = arith.constant dense<0xFF800000> : vector<8xf32>
      %17 = vector.multi_reduction <maximumf>, %16, %cst_10 [1] : vector<8x256xf32> to vector<8xf32>
      %18 = vector.shape_cast %17 : vector<8xf32> to vector<8x1xf32>
      %19 = vector.broadcast %18 : vector<8x1xf32> to vector<8x256xf32>
      %20 = arith.subf %16, %19 : vector<8x256xf32>
      %21 = math.exp %20 : vector<8x256xf32>
      %cst_11 = arith.constant dense<0.000000e+00> : vector<8xf32>
      %22 = vector.multi_reduction <add>, %21, %cst_11 [1] : vector<8x256xf32> to vector<8xf32>
      %23 = vector.shape_cast %22 : vector<8xf32> to vector<8x1xf32>
      %24 = tpu.reciprocal %23 {approx = true} : vector<8x1xf32> -> vector<8x1xf32>
      %25 = vector.broadcast %24 : vector<8x1xf32> to vector<8x256xf32>
      %26 = arith.mulf %21, %25 : vector<8x256xf32>
      %c0_12 = arith.constant 0 : index
      %c0_13 = arith.constant 0 : index
      %27 = vector.load %arg37[%c0_12, %c0_13] : memref<8x1xf32, #tpu.memory_space<vmem>>, vector<8x1xf32>
      %28 = vector.broadcast %27 : vector<8x1xf32> to vector<8x256xf32>
      %29 = arith.mulf %26, %28 : vector<8x256xf32>
      %c0_14 = arith.constant 0 : index
      %c0_15 = arith.constant 0 : index
      %30 = vector.load %arg30[%c0_14, %c0_15] : memref<8x256xf32, #tpu.memory_space<vmem>>, vector<8x256xf32>
      tpu.vector_store %arg30[%c0_14, %c0_15], %29 {strides = array<i32>} : memref<8x256xf32, #tpu.memory_space<vmem>>, vector<8x256xf32>,
      %c0_16 = arith.constant 0 : index
      %c0_17 = arith.constant 0 : index
      %31 = vector.load %arg9[%c0_16, %c0_17] : memref<8x8xi32, #tpu.memory_space<vmem>>, vector<8x8xi32>
      %c0_18 = arith.constant 0 : index
      %c0_19 = arith.constant 0 : index
      %32 = vector.load %arg38[%c0_18, %c0_19] : memref<8x8xf32, #tpu.memory_space<vmem>>, vector<8x8xf32>
      %33 = tpu.iota {dimensions = array<i32: 1>} : vector<8x256xi32>
      %34 = tpu.iota {dimensions = array<i32: 1>} : vector<8x8xi32>
      %c0_i32_20 = arith.constant 0 : i32
      %c8_i32 = arith.constant 8 : i32
      %35 = arith.addi %c0_i32_20, %c8_i32 : i32
      %c1_i32_21 = arith.constant 1 : i32
      scf.for %arg39 = %c0_i32_20 to %35 step %c1_i32_21  : i32 {
        %c1_i32_23 = arith.constant 1 : i32
        %36 = arith.muli %arg39, %c1_i32_23 : i32
        %c0_i32_24 = arith.constant 0 : i32
        %37 = arith.addi %c0_i32_24, %36 : i32
        %38 = vector.broadcast %37 : i32 to vector<8x8xi32>
        %39 = arith.cmpi eq, %34, %38 : vector<8x8xi32>
        %c-1_i32 = arith.constant -1 : i32
        %40 = vector.broadcast %c-1_i32 : i32 to vector<8x8xi32>
        %41 = arith.select %39, %31, %40 : vector<8x8xi1>, vector<8x8xi32>
        %cst_25 = arith.constant dense<-2147483648> : vector<8xi32>
        %42 = vector.multi_reduction <maxsi>, %41, %cst_25 [1] : vector<8x8xi32> to vector<8xi32>
        %43 = vector.shape_cast %42 : vector<8xi32> to vector<8x1xi32>
        %cst_26 = arith.constant 0.000000e+00 : f32
        %44 = vector.broadcast %cst_26 : f32 to vector<8x8xf32>
        %45 = arith.select %39, %32, %44 : vector<8x8xi1>, vector<8x8xf32>
        %cst_27 = arith.constant dense<0.000000e+00> : vector<8xf32>
        %46 = vector.multi_reduction <add>, %45, %cst_27 [1] : vector<8x8xf32> to vector<8xf32>
        %47 = vector.shape_cast %46 : vector<8xf32> to vector<8x1xf32>
        %c0_28 = arith.constant 0 : index
        %c0_29 = arith.constant 0 : index
        %48 = vector.load %arg30[%c0_28, %c0_29] : memref<8x256xf32, #tpu.memory_space<vmem>>, vector<8x256xf32>
        %49 = vector.broadcast %43 : vector<8x1xi32> to vector<8x256xi32>
        %50 = arith.cmpi eq, %49, %33 : vector<8x256xi32>
        %cst_30 = arith.constant 0.000000e+00 : f32
        %51 = vector.shape_cast %47 : vector<8x1xf32> to vector<8x1xf32>
        %52 = vector.broadcast %51 : vector<8x1xf32> to vector<8x256xf32>
        %53 = vector.broadcast %cst_30 : f32 to vector<8x256xf32>
        %54 = arith.select %50, %52, %53 : vector<8x256xi1>, vector<8x256xf32>
        %55 = arith.addf %48, %54 : vector<8x256xf32>
        %c0_31 = arith.constant 0 : index
        %c0_32 = arith.constant 0 : index
        %56 = vector.load %arg30[%c0_31, %c0_32] : memref<8x256xf32, #tpu.memory_space<vmem>>, vector<8x256xf32>
        tpu.vector_store %arg30[%c0_31, %c0_32], %55 {strides = array<i32>} : memref<8x256xf32, #tpu.memory_space<vmem>>, vector<8x256xf32>,
      }
      %c8_i32_22 = arith.constant 8 : i32
    } else {
    }
    return
  }
  func.func @transform_0(%arg0: i32) -> (i32, i32) {
    %c0_i32 = arith.constant 0 : i32
    %c0_i32_0 = arith.constant 0 : i32
    %c0_i32_1 = arith.constant 0 : i32
    return %c0_i32, %c0_i32_0 : i32, i32
  }
  func.func @transform_1(%arg0: i32) -> (i32, i32) {
    %c0_i32 = arith.constant 0 : i32
    %c0_i32_0 = arith.constant 0 : i32
    %c0_i32_1 = arith.constant 0 : i32
    return %c0_i32, %c0_i32_0 : i32, i32
  }
  func.func @transform_2(%arg0: i32) -> (i32, i32) {
    %c0_i32 = arith.constant 0 : i32
    %c0_i32_0 = arith.constant 0 : i32
    %c0_i32_1 = arith.constant 0 : i32
    return %c0_i32, %c0_i32_0 : i32, i32
  }
  func.func @transform_3(%arg0: i32) -> (i32, i32) {
    %c0_i32 = arith.constant 0 : i32
    %c0_i32_0 = arith.constant 0 : i32
    %c0_i32_1 = arith.constant 0 : i32
    return %c0_i32, %c0_i32_0 : i32, i32
  }
  func.func @transform_4(%arg0: i32) -> (i32, i32, i32) {
    %c0_i32 = arith.constant 0 : i32
    %c0_i32_0 = arith.constant 0 : i32
    %c0_i32_1 = arith.constant 0 : i32
    %c0_i32_2 = arith.constant 0 : i32
    return %c0_i32, %c0_i32_0, %c0_i32_1 : i32, i32, i32
  }
  func.func @transform_5(%arg0: i32) -> (i32, i32, i32) {
    %c0_i32 = arith.constant 0 : i32
    %c0_i32_0 = arith.constant 0 : i32
    %c0_i32_1 = arith.constant 0 : i32
    %c0_i32_2 = arith.constant 0 : i32
    return %c0_i32, %c0_i32_0, %c0_i32_1 : i32, i32, i32
  }
  func.func @transform_6(%arg0: i32) -> (i32, i32) {
    %c0_i32 = arith.constant 0 : i32
    %c0_i32_0 = arith.constant 0 : i32
    %c0_i32_1 = arith.constant 0 : i32
    return %c0_i32, %c0_i32_0 : i32, i32
  }
  func.func @transform_7(%arg0: i32) -> (i32, i32) {
    %c0_i32 = arith.constant 0 : i32
    %c0_i32_0 = arith.constant 0 : i32
    %c0_i32_1 = arith.constant 0 : i32
    return %c0_i32, %c0_i32_0 : i32, i32
  }
  func.func @transform_8(%arg0: i32) -> (i32, i32) {
    %c0_i32 = arith.constant 0 : i32
    %c0_i32_0 = arith.constant 0 : i32
    %c0_i32_1 = arith.constant 0 : i32
    return %c0_i32, %c0_i32_0 : i32, i32
  }
  func.func @transform_9(%arg0: i32) -> (i32, i32) {
    %c0_i32 = arith.constant 0 : i32
    %c0_i32_0 = arith.constant 0 : i32
    %c0_i32_1 = arith.constant 0 : i32
    return %c0_i32, %c0_i32_0 : i32, i32
  }
  func.func @transform_10(%arg0: i32) -> (i32, i32) {
    %c0_i32 = arith.constant 0 : i32
    %c0_i32_0 = arith.constant 0 : i32
    %c0_i32_1 = arith.constant 0 : i32
    return %c0_i32, %c0_i32_0 : i32, i32
  }
  func.func @transform_11(%arg0: i32) -> (i32, i32) {
    %c0_i32 = arith.constant 0 : i32
    %c0_i32_0 = arith.constant 0 : i32
    %c0_i32_1 = arith.constant 0 : i32
    return %c0_i32, %c0_i32_0 : i32, i32
  }
  func.func @transform_12(%arg0: i32) -> (i32, i32) {
    %c0_i32 = arith.constant 0 : i32
    %c0_i32_0 = arith.constant 0 : i32
    %c0_i32_1 = arith.constant 0 : i32
    return %c0_i32, %c0_i32_0 : i32, i32
  }
  func.func @transform_13(%arg0: i32) -> (i32, i32) {
    %c0_i32 = arith.constant 0 : i32
    %c0_i32_0 = arith.constant 0 : i32
    %c0_i32_1 = arith.constant 0 : i32
    return %c0_i32, %c0_i32_0 : i32, i32
  }
  func.func @transform_14(%arg0: i32) -> (i32, i32) {
    %c0_i32 = arith.constant 0 : i32
    %c0_i32_0 = arith.constant 0 : i32
    %c0_i32_1 = arith.constant 0 : i32
    return %c0_i32, %c0_i32_0 : i32, i32
  }
  func.func @transform_15(%arg0: i32) -> (i32, i32) {
    %c0_i32 = arith.constant 0 : i32
    %c0_i32_0 = arith.constant 0 : i32
    %c0_i32_1 = arith.constant 0 : i32
    return %c0_i32, %c0_i32_0 : i32, i32
  }
  func.func @transform_16(%arg0: i32) -> (i32, i32) {
    %c0_i32 = arith.constant 0 : i32
    %c0_i32_0 = arith.constant 0 : i32
    %c0_i32_1 = arith.constant 0 : i32
    return %c0_i32, %c0_i32_0 : i32, i32
  }
  func.func @transform_17(%arg0: i32) -> (i32, i32) {
    %c0_i32 = arith.constant 0 : i32
    %c0_i32_0 = arith.constant 0 : i32
    %c0_i32_1 = arith.constant 0 : i32
    return %c0_i32, %c0_i32_0 : i32, i32
  }
  func.func @transform_18(%arg0: i32) -> (i32, i32) {
    %c0_i32 = arith.constant 0 : i32
    %c0_i32_0 = arith.constant 0 : i32
    %c0_i32_1 = arith.constant 0 : i32
    return %c0_i32, %c0_i32_0 : i32, i32
  }
  func.func @transform_19(%arg0: i32) -> (i32, i32) {
    %c0_i32 = arith.constant 0 : i32
    %c0_i32_0 = arith.constant 0 : i32
    %c0_i32_1 = arith.constant 0 : i32
    return %c0_i32, %c0_i32_0 : i32, i32
  }
  func.func @transform_20(%arg0: i32) -> (i32, i32) {
    %c0_i32 = arith.constant 0 : i32
    %c0_i32_0 = arith.constant 0 : i32
    %c0_i32_1 = arith.constant 0 : i32
    return %c0_i32, %c0_i32_0 : i32, i32
  }
  func.func @transform_21(%arg0: i32) -> (i32, i32) {
    %c0_i32 = arith.constant 0 : i32
    %c0_i32_0 = arith.constant 0 : i32
    %c0_i32_1 = arith.constant 0 : i32
    return %c0_i32, %c0_i32_0 : i32, i32
  }
  func.func @transform_22(%arg0: i32) -> (i32, i32) {
    %c0_i32 = arith.constant 0 : i32
    %c0_i32_0 = arith.constant 0 : i32
    %c0_i32_1 = arith.constant 0 : i32
    return %c0_i32, %c0_i32_0 : i32, i32
  }
  func.func @transform_23(%arg0: i32) -> (i32, i32) {
    %c0_i32 = arith.constant 0 : i32
    %c0_i32_0 = arith.constant 0 : i32
    %c0_i32_1 = arith.constant 0 : i32
    return %c0_i32, %c0_i32_0 : i32, i32
  }
  func.func @transform_24(%arg0: i32) -> (i32, i32) {
    %c0_i32 = arith.constant 0 : i32
    %c0_i32_0 = arith.constant 0 : i32
    %c0_i32_1 = arith.constant 0 : i32
    return %c0_i32, %c0_i32_0 : i32, i32
  }
  func.func @transform_25(%arg0: i32) -> (i32, i32) {
    %c0_i32 = arith.constant 0 : i32
    %c0_i32_0 = arith.constant 0 : i32
    %c0_i32_1 = arith.constant 0 : i32
    return %c0_i32, %c0_i32_0 : i32, i32
  }
  func.func @transform_26(%arg0: i32) -> (i32, i32) {
    %c0_i32 = arith.constant 0 : i32
    %c0_i32_0 = arith.constant 0 : i32
    %c0_i32_1 = arith.constant 0 : i32
    return %c0_i32, %c0_i32_0 : i32, i32
  }
  func.func @transform_27(%arg0: i32) -> (i32, i32) {
    %c0_i32 = arith.constant 0 : i32
    %c0_i32_0 = arith.constant 0 : i32
    return %c0_i32, %arg0 : i32, i32
  }
  func.func @transform_28(%arg0: i32) -> (i32, i32) {
    %c0_i32 = arith.constant 0 : i32
    %c0_i32_0 = arith.constant 0 : i32
    return %c0_i32, %arg0 : i32, i32
  }
  func.func @transform_29(%arg0: i32) -> (i32, i32) {
    %c0_i32 = arith.constant 0 : i32
    %c0_i32_0 = arith.constant 0 : i32
    %c0_i32_1 = arith.constant 0 : i32
    return %c0_i32, %c0_i32_0 : i32, i32
  }
  func.func @transform_30(%arg0: i32) -> (i32, i32) {
    %c0_i32 = arith.constant 0 : i32
    %c0_i32_0 = arith.constant 0 : i32
    %c0_i32_1 = arith.constant 0 : i32
    return %c0_i32, %c0_i32_0 : i32, i32
  }
  func.func @transform_31(%arg0: i32) -> (i32, i32) {
    %c0_i32 = arith.constant 0 : i32
    %c0_i32_0 = arith.constant 0 : i32
    %c0_i32_1 = arith.constant 0 : i32
    return %c0_i32, %c0_i32_0 : i32, i32
  }
  func.func @transform_32(%arg0: i32) -> (i32, i32) {
    %c0_i32 = arith.constant 0 : i32
    %c0_i32_0 = arith.constant 0 : i32
    %c0_i32_1 = arith.constant 0 : i32
    return %c0_i32, %c0_i32_0 : i32, i32
  }
  func.func @transform_33(%arg0: i32) -> (i32, i32) {
    %c0_i32 = arith.constant 0 : i32
    %c0_i32_0 = arith.constant 0 : i32
    %c0_i32_1 = arith.constant 0 : i32
    return %c0_i32, %c0_i32_0 : i32, i32
  }
  func.func @transform_34(%arg0: i32) -> (i32, i32) {
    %c0_i32 = arith.constant 0 : i32
    %c0_i32_0 = arith.constant 0 : i32
    %c0_i32_1 = arith.constant 0 : i32
    return %c0_i32, %c0_i32_0 : i32, i32
  }
}

</mosaic_0001>

<bundles_post_ra>
// kernel: tpu_custom_call.1
= control target key start
LH: loop header
LB: loop body
LE: loop exit
PB: predicated region body
PF: predicated region fallthrough
CT: control target
= control target key end

     0   :  { %s4747_s6 = smov 1   ;;  %s4748_s10 = smov 2   ;;  %s5826_s0 = inlined_call_operand.smem [shape: u32[35], index: -1, kind: input, shape index: {}] }
   0x1   :  { %s4823_s5 = sld [smem:[%s5826_s0]]   ;;  %s4749_s14 = smov 3  }
   0x2   :  { %s4828_s9 = sld [smem:[%s5826_s0 + %s4747_s6]]   ;;  %s4750_s18 = smov 4  }
   0x3   :  { %s4833_s13 = sld [smem:[%s5826_s0 + %s4748_s10]]   ;;  %s4751_s22 = smov 5  }
   0x4   :  { %s4838_s17 = sld [smem:[%s5826_s0 + %s4749_s14]]   ;;  %s4752_s26 = smov 6  }
   0x5   :  { %s4843_s21 = sld [smem:[%s5826_s0 + %s4750_s18]]   ;;  %s4753_s30 = smov 7  }
   0x6   :  { %s4848_s25 = sld [smem:[%s5826_s0 + %s4751_s22]]   ;;  %s4754_s4 = smov 8  }
   0x7   :  { %s4853_s29 = sld [smem:[%s5826_s0 + %s4752_s26]]   ;;  %s4755_s10 = smov 9  }
   0x8   :  { %5843 = sst [smem:[#allocation51_spill]] %s4828_s9  ;;  %s4756_s15 = smov 10  }
   0x9   :  { %s4858_s3 = sld [smem:[%s5826_s0 + %s4753_s30]]   ;;  %s4757_s20 = smov 11  }
   0xa   :  { %5844 = sst [smem:[#allocation52_spill]] %s4838_s17  ;;  %s4758_s26 = smov 12  }
   0xb   :  { %5845 = sst [smem:[#allocation53_spill]] %s4843_s21  ;;  %s4759_s1 = smov 13  }
   0xc   :  { %5846 = sst [smem:[#allocation54_spill]] %s4848_s25  ;;  %s4760_s7 = smov 14  }
   0xd   :  { %s4863_s8 = sld [smem:[%s5826_s0 + %s4754_s4]]   ;;  %s4762_s22 = smov 16  }
   0xe   :  { %s4868_s14 = sld [smem:[%s5826_s0 + %s4755_s10]]   ;;  %s4763_s28 = smov 17  }
   0xf   :  { %5847 = sst [smem:[#allocation55_spill]] %s4858_s3  ;;  %s4770_s23 = smov 24  }
  0x10   :  { %s4873_s19 = sld [smem:[%s5826_s0 + %s4756_s15]]   ;;  %s4761_s15 = smov 15  }
  0x11   :  { %s4878_s24 = sld [smem:[%s5826_s0 + %s4757_s20]]   ;;  %s4772_s10 = smov 26  }
  0x12   :  { %s4883_s30 = sld [smem:[%s5826_s0 + %s4758_s26]]   ;;  %s4773_s16 = smov 27  }
  0x13   :  { %s4888_s6 = sld [smem:[%s5826_s0 + %s4759_s1]]   ;;  %s4771_s1 = smov 25  }
  0x14   :  { %5848 = sst [smem:[#allocation56_spill]] %s4868_s14 }
  0x15   :  { %s4893_s12 = sld [smem:[%s5826_s0 + %s4760_s7]]   ;;  %s4764_s7 = smov 18  }
  0x16   :  { %s4898_s20 = sld [smem:[%s5826_s0 + %s4761_s15]]   ;;  %s4765_s15 = smov 19  }
  0x17   :  { %s4903_s27 = sld [smem:[%s5826_s0 + %s4762_s22]]   ;;  %s4766_s22 = smov 20  }
  0x18   :  { %5849 = sst [smem:[#allocation57_spill]] %s4883_s30 }
  0x19   :  { %s4908_s4 = sld [smem:[%s5826_s0 + %s4763_s28]]   ;;  %s4767_s28 = smov 21  }
  0x1a   :  { %s4913_s21 = sld [smem:[%s5826_s0 + %s4764_s7]]   ;;  %s4768_s7 = smov 22  }
  0x1b   :  { %s4918_s25 = sld [smem:[%s5826_s0 + %s4765_s15]]   ;;  %s4769_s15 = smov 23  }
  0x1c   :  { %s4923_s30 = sld [smem:[%s5826_s0 + %s4766_s22]]   ;;  %s4778_s22 = smov 32  }
  0x1d   :  { %s4956_s14 = sld [smem:[%s5826_s0 + %s4773_s16]]   ;;  %s4777_s16 = smov 31  }
  0x1f   :  { %5850 = sst [smem:[#allocation58_spill]] %s4908_s4 }
  0x20   :  { %5851 = sst [smem:[#allocation59_spill]] %s4913_s21 }
  0x21   :  { %5852 = sst [smem:[#allocation60_spill]] %s4918_s25 }
  0x22   :  { %5853 = sst [smem:[#allocation61_spill]] %s4923_s30 }
  0x23   :  { %s4928_s4 = sld [smem:[%s5826_s0 + %s4767_s28]]  }
  0x24   :  { %s4933_s21 = sld [smem:[%s5826_s0 + %s4768_s7]]  }
  0x25   :  { %s3481_s25 = sld [smem:[%s5826_s0 + %s4769_s15]]  }
  0x26   :  { %s4941_s30 = sld [smem:[%s5826_s0 + %s4770_s23]]   ;;  %s4774_s23 = smov 28  }
  0x29   :  { %5854 = sst [smem:[#allocation62_spill]] %s4928_s4 }
  0x2a   :  { %5855 = sst [smem:[#allocation63_spill]] %s4933_s21 }
  0x2b   :  { %s4946_s4 = sld [smem:[%s5826_s0 + %s4771_s1]]   ;;  %s4775_s1 = smov 29   ;;  %v75_v0 = vstv %s3481_s25 }
  0x2c   :  { %5856 = sst [smem:[#allocation64_spill]] %s4941_s30  ;;  %76 = vst [vmem:[#allocation5] sm:$0x1] %v75_v0  ;;  %s4779_s25 = smov 33  }
  0x2d   :  { %s4951_s21 = sld [smem:[%s5826_s0 + %s4772_s10]]   ;;  %s4776_s10 = smov 30  }
  0x2e   :  { %s4961_s30 = sld [smem:[%s5826_s0 + %s4774_s23]]  }
  0x2f   :  { %s4971_s15 = sld [smem:[%s5826_s0 + %s4776_s10]]   ;;  %s4780_s10 = smov 34  }
  0x30   :  { %s4976_s23 = sld [smem:[%s5826_s0 + %s4777_s16]]  }
  0x31   :  { %5857 = sst [smem:[#allocation65_spill]] %s4946_s4 }
  0x32   :  { %s4966_s4 = sld [smem:[%s5826_s0 + %s4775_s1]]  }
  0x33   :  { %5858 = sst [smem:[#allocation66_spill]] %s4951_s21 }
  0x34   :  { %5859 = sst [smem:[#allocation67_spill]] %s4961_s30 }
  0x35   :  { %5861 = sst [smem:[#allocation69_spill]] %s4971_s15 }
  0x36   :  { %s4981_s1 = sld [smem:[%s5826_s0 + %s4778_s22]]  }
  0x37   :  { %s4986_s7 = sld [smem:[%s5826_s0 + %s4779_s25]]  }
  0x38   :  { %5860 = sst [smem:[#allocation68_spill]] %s4966_s4 }
  0x39   :  { %s4991_s15 = sld [smem:[%s5826_s0 + %s4780_s10]]  }
  0x3f   :  { %5862 = sst [smem:[#allocation70_spill]] %s4991_s15 }
  0x40   :  { %77 = vsyncpa [#allocation7], 0 }
  0x41   :  { %78 = vsyncpa [#allocation10], 0 }
  0x42   :  { %79 = vsyncpa [#allocation13], 0 }
  0x43   :  { %80 = vsyncpa [#allocation16], 0 }
  0x44   :  { %81 = vsyncpa [#allocation19], 0 }
  0x45   :  { %82 = vsyncpa [#allocation22], 0 }
  0x46   :  { %83 = vsyncpa [#allocation25], 0 }
  0x47   :  { %84 = vsyncpa [#allocation28], 0 }
  0x48   :  { %85 = vsyncpa [#allocation8], 0 }
  0x49   :  { %86 = vsyncpa [#allocation32], 0 }
  0x4a   :  { %87 = vsyncpa [#allocation35], 0 }
  0x4b   :  { %88 = vsyncpa [#allocation38], 0  ;;  %s4993_s21 = smov 0   ;;  %s4995_s30 = smov 0  }
  0x4c   :  { %s4997_s16 = smov 0  }
  0x4d LB: > { %s5863_s17 = sld [smem:[#allocation52_spill]]  ;;  %s5864_s9 = sld [smem:[#allocation51_spill]]  ;;  %s4741_s16 = sphi %s4997_s16, %s5912_s16   ;;  %s4737_s30 = sphi %s4995_s30, %s5915_s30   ;;  %s4733_s21 = sphi %s4993_s21, %s5914_s21  }
  0x4e   : > { %s5865_s3 = sld [smem:[#allocation55_spill]]  ;;  %s5009_s0 = sadd.s32 4294967295, %s4741_s16  }
  0x4f   : > { %s5012_s4 = sadd.s32 1, %s4741_s16   ;;  %s668_s22 = sadd.s32 1, %s4737_s30 }
  0x50   : > { %5866 = sst [smem:[#allocation71_spill]] %s5012_s4  ;;  %s665_s18 = ssub.s32 %s4741_s16, %s5012_s4 }
  0x51   : > { %p666_p0 = scmp.eq.s32.totalorder %s665_s18, 0  ;;  %p675_p1 = scmp.ne.s32.totalorder %s4737_s30, %s4733_s21 }
  0x52   : > { %p676_p2 = scmp.eq.s32.totalorder %s4741_s16, 0  ;;  %p3494_p3 = scmp.ge.s32.totalorder %s4741_s16, 1 }
  0x53   : > { %s5022_s26 = scalar_select %p666_p0, %s4737_s30, %s668_s22  }
  0x54   : > { %p5024_p4 = por %p676_p2, %p675_p1  ;;  %p844_p5 = scmp.lt.s32.totalorder %s4741_s16, 3 }
  0x55   : > { %5867 = sst [smem:[#allocation72_spill]] %s5022_s26  ;;  %p5838_p7 = scmp.eq.s32.totalorder %s5009_s0, 0 }
  0x56   : > { %s5868_s25 = scalar_select %p5024_p4, 1, 0 }
  0x57   : > { %p5031_p8 = pnand %p3494_p3, %p844_p5  ;;  %s4781_s2 = smov [#allocation9]  }
  0x58   : > { %s868_s10 = sshll.u32 %s4781_s2, 4  ;;  %s4782_s11 = smov [#allocation12]   ;;  %s869_s10 = int_to_ptr.vmem [resolvable:$true] %s868_s10 }
  0x59   : > { %s5869_s28 = scalar_select %p5031_p8, 1, 0 }
  0x5a   : > { %p3878_p9 = pneg %p5031_p8  ;;  %s890_s18 = sshll.u32 %s4782_s11, 4  ;;  %s5043_s18 = int_to_ptr.vmem [resolvable:$true] %s890_s18 }
  0x5b   : > { %s4783_s26 = smov [#allocation15]   ;;  %s4119_s15 = scalar_lea.hbm %s5864_s9, 128 }
  0x5c   : > { %p5039_p10 = pnand %p5838_p7, %p3878_p9  ;;  %s918_s4 = sshll.u32 %s4783_s26, 4  ;;  %s5045_s4 = int_to_ptr.vmem [resolvable:$true] %s918_s4 }
  0x5d   : > { %p4120_p11 = scmp.ne.s32.totalorder %s5864_s9, %s4119_s15  ;;  %p4126_p1 = scmp.lt.u32.totalorder %s4119_s15, %s5864_s9 }
  0x5e   : > { %p5051_p12 = pneg %p5039_p10 }
  0x60   : > { %p4122_p13 = pnand %p5051_p12, %p4120_p11 }
  0x62   : > { %p4123_p0 = pneg %p4122_p13 }
  0x64   : > { %p4128_p2 = pnand %p4126_p1, %p4123_p0 }
  0x66   : > { %4131 = shalt.err (!%p4128_p2)
}
  0x67   : > { %s4132_s11 = scalar_lea.vmem %s869_s10, 128  ;;  %p4140_p6 = scmp.lt.s32.totalorder %s869_s10, %s869_s10 }
  0x68   : > { %p4133_p3 = scmp.ne.s32.totalorder %s869_s10, %s4132_s11  ;;  %p4141_p7 = scmp.lt.s32.totalorder %s4132_s11, %s4132_s11 }
  0x6a   : > { %p4135_p5 = pnand %p4133_p3, %p5051_p12  ;;  %p4142_p8 = por %p4141_p7, %p4140_p6 }
  0x6c   : > { %p4136_p9 = pneg %p4135_p5 }
  0x6e   : > { %p4143_p4 = pnand %p4142_p8, %p4136_p9 }
  0x70   : > { %4146 = shalt.err (!%p4143_p4)
}
  0x71   : > { %3884 = dma.hbm_to_vmem [thread:$0]  (!%p5039_p10), %s5864_s9, 128, %s869_s10, [#allocation10]  }
  0x72   : > { %s4147_s15 = scalar_lea.hbm %s5863_s17, 128 }
  0x73   : > { %p4148_p11 = scmp.ne.s32.totalorder %s5863_s17, %s4147_s15  ;;  %p4154_p1 = scmp.lt.u32.totalorder %s4147_s15, %s5863_s17 }
  0x75   : > { %p4150_p13 = pnand %p4148_p11, %p5051_p12 }
  0x77   : > { %p4151_p0 = pneg %p4150_p13 }
  0x79   : > { %p4156_p2 = pnand %p4154_p1, %p4151_p0 }
  0x7b   : > { %4159 = shalt.err (!%p4156_p2)
}
  0x7c   : > { %s4160_s26 = scalar_lea.vmem %s5043_s18, 128  ;;  %p4168_p8 = scmp.lt.s32.totalorder %s5043_s18, %s5043_s18 }
  0x7d   : > { %p4161_p4 = scmp.ne.s32.totalorder %s5043_s18, %s4160_s26  ;;  %p4169_p3 = scmp.lt.s32.totalorder %s4160_s26, %s4160_s26 }
  0x7f   : > { %p4163_p6 = pnand %p4161_p4, %p5051_p12  ;;  %p4170_p5 = por %p4169_p3, %p4168_p8 }
  0x81   : > { %p4164_p7 = pneg %p4163_p6 }
  0x83   : > { %p4171_p9 = pnand %p4170_p5, %p4164_p7 }
  0x85   : > { %4174 = shalt.err (!%p4171_p9)
}
  0x86   : > { %3890 = dma.hbm_to_vmem [thread:$0]  (!%p5039_p10), %s5863_s17, 128, %s5043_s18, [#allocation13]  }
  0x87   : > { %s4175_s10 = scalar_lea.hbm %s5865_s3, 128 }
  0x88   : > { %p4176_p11 = scmp.ne.s32.totalorder %s5865_s3, %s4175_s10  ;;  %p4182_p1 = scmp.lt.u32.totalorder %s4175_s10, %s5865_s3 }
  0x8a   : > { %p4178_p13 = pnand %p4176_p11, %p5051_p12 }
  0x8c   : > { %p4179_p0 = pneg %p4178_p13 }
  0x8e   : > { %p4184_p2 = pnand %p4182_p1, %p4179_p0 }
  0x90   : > { %4187 = shalt.err (!%p4184_p2)
}
  0x91   : > { %s4188_s11 = scalar_lea.vmem %s5045_s4, 128  ;;  %p4196_p8 = scmp.lt.s32.totalorder %s5045_s4, %s5045_s4 }
  0x92   : > { %p4189_p4 = scmp.ne.s32.totalorder %s5045_s4, %s4188_s11  ;;  %p4197_p3 = scmp.lt.s32.totalorder %s4188_s11, %s4188_s11 }
  0x94   : > { %p4191_p6 = pnand %p4189_p4, %p5051_p12  ;;  %p4198_p5 = por %p4197_p3, %p4196_p8 }
  0x96   : > { %p4192_p7 = pneg %p4191_p6 }
  0x98   : > { %p4199_p9 = pnand %p4198_p5, %p4192_p7 }
  0x9a   : > { %4202 = shalt.err (!%p4199_p9)
}
  0x9b   : > { %3896 = dma.hbm_to_vmem [thread:$0]  (!%p5039_p10), %s5865_s3, 128, %s5045_s4, [#allocation16]  }
  0x9c   : > { %s4784_s18 = smov [#allocation18]   ;;  %s4203_s26 = scalar_lea.hbm %s4873_s19, 512 }
  0x9d   : > { %s942_s15 = sshll.u32 %s4784_s18, 4  ;;  %p4204_p11 = scmp.ne.s32.totalorder %s4873_s19, %s4203_s26  ;;  %s943_s15 = int_to_ptr.vmem [resolvable:$true] %s942_s15 }
  0x9e   : > { %p4210_p1 = scmp.lt.u32.totalorder %s4203_s26, %s4873_s19 }
  0x9f   : > { %p4206_p13 = pnand %p4204_p11, %p5051_p12 }
  0xa1   : > { %p4207_p0 = pneg %p4206_p13 }
  0xa3   : > { %p4212_p2 = pnand %p4210_p1, %p4207_p0 }
  0xa5   : > { %4215 = shalt.err (!%p4212_p2)
}
  0xa6   : > { %s4216_s10 = scalar_lea.vmem %s943_s15, 512  ;;  %p4224_p8 = scmp.lt.s32.totalorder %s943_s15, %s943_s15 }
  0xa7   : > { %p4217_p4 = scmp.ne.s32.totalorder %s943_s15, %s4216_s10  ;;  %p4225_p3 = scmp.lt.s32.totalorder %s4216_s10, %s4216_s10 }
  0xa9   : > { %p4219_p6 = pnand %p4217_p4, %p5051_p12  ;;  %p4226_p5 = por %p4225_p3, %p4224_p8 }
  0xab   : > { %p4220_p7 = pneg %p4219_p6 }
  0xad   : > { %p4227_p9 = pnand %p4226_p5, %p4220_p7 }
  0xaf   : > { %4230 = shalt.err (!%p4227_p9)
}
  0xb0   : > { %s4785_s4 = smov 128   ;;  %s4786_s11 = smov 8  }
  0xb1   : > { %3902 = dma.hbm_to_vmem [thread:$0]  (!%p5039_p10), %s4873_s19, 512, %s943_s15, [#allocation19], %s4785_s4, %s4785_s4, %s4786_s11  }
  0xb2   : > { %s4787_s18 = smov [#allocation21]   ;;  %s4788_s3 = smov [#allocation24]  }
  0xb3   : > { %s970_s26 = sshll.u32 %s4787_s18, 4  ;;  %s993_s10 = sshll.u32 %s4788_s3, 4  ;;  %s971_s26 = int_to_ptr.vmem [resolvable:$true] %s970_s26  ;;  %s5106_s10 = int_to_ptr.vmem [resolvable:$true] %s993_s10 }
  0xb4   : > { %s4231_s9 = scalar_lea.hbm %s4888_s6, 16 }
  0xb5   : > { %p4232_p11 = scmp.ne.s32.totalorder %s4888_s6, %s4231_s9  ;;  %p4238_p1 = scmp.lt.u32.totalorder %s4231_s9, %s4888_s6 }
  0xb7   : > { %p4234_p13 = pnand %p4232_p11, %p5051_p12 }
  0xb9   : > { %p4235_p0 = pneg %p4234_p13 }
  0xbb   : > { %p4240_p2 = pnand %p4238_p1, %p4235_p0 }
  0xbd   : > { %4243 = shalt.err (!%p4240_p2)
}
  0xbe   : > { %s4244_s17 = scalar_lea.vmem %s971_s26, 16  ;;  %s4251_s15 = scalar_lea.vmem %s971_s26, 32 }
  0xbf   : > { %p4245_p4 = scmp.ne.s32.totalorder %s971_s26, %s4244_s17  ;;  %p4252_p8 = scmp.lt.s32.totalorder %s971_s26, %s971_s26 }
  0xc0   : > { %p4253_p3 = scmp.lt.s32.totalorder %s4251_s15, %s4244_s17 }
  0xc1   : > { %p4247_p6 = pnand %p4245_p4, %p5051_p12 }
  0xc2   : > { %p4254_p5 = por %p4253_p3, %p4252_p8 }
  0xc3   : > { %p4248_p7 = pneg %p4247_p6 }
  0xc5   : > { %p4255_p9 = pnand %p4254_p5, %p4248_p7 }
  0xc7   : > { %4258 = shalt.err (!%p4255_p9)
}
  0xc8   : > { %3908 = dma.hbm_to_vmem [thread:$0]  (!%p5039_p10), %s4888_s6, 16, %s971_s26, [#allocation22]  }
  0xc9   : > { %s4259_s9 = scalar_lea.hbm %s4898_s20, 512 }
  0xca   : > { %p4260_p11 = scmp.ne.s32.totalorder %s4898_s20, %s4259_s9  ;;  %p4266_p1 = scmp.lt.u32.totalorder %s4259_s9, %s4898_s20 }
  0xcc   : > { %p4262_p13 = pnand %p4260_p11, %p5051_p12 }
  0xce   : > { %p4263_p0 = pneg %p4262_p13 }
  0xd0   : > { %p4268_p2 = pnand %p4266_p1, %p4263_p0 }
  0xd2   : > { %4271 = shalt.err (!%p4268_p2)
}
  0xd3   : > { %s4272_s17 = scalar_lea.vmem %s5106_s10, 512  ;;  %p4280_p8 = scmp.lt.s32.totalorder %s5106_s10, %s5106_s10 }
  0xd4   : > { %p4273_p4 = scmp.ne.s32.totalorder %s5106_s10, %s4272_s17  ;;  %p4281_p3 = scmp.lt.s32.totalorder %s4272_s17, %s4272_s17 }
  0xd6   : > { %p4275_p6 = pnand %p4273_p4, %p5051_p12  ;;  %p4282_p5 = por %p4281_p3, %p4280_p8 }
  0xd8   : > { %p4276_p7 = pneg %p4275_p6 }
  0xda   : > { %p4283_p9 = pnand %p4282_p5, %p4276_p7 }
  0xdc   : > { %4286 = shalt.err (!%p4283_p9)
}
  0xdd   : > { %3914 = dma.hbm_to_vmem [thread:$0]  (!%p5039_p10), %s4898_s20, 512, %s5106_s10, [#allocation25], %s4785_s4, %s4785_s4, %s4786_s11  }
  0xde   : > { %s4789_s3 = smov [#allocation6]   ;;  %s4790_s26 = smov [#allocation11]  }
  0xdf   : > { %s857_s18 = sshll.u32 %s4789_s3, 4  ;;  %s879_s15 = sshll.u32 %s4790_s26, 4  ;;  %s858_s18 = int_to_ptr.vmem [resolvable:$true] %s857_s18  ;;  %s5136_s15 = int_to_ptr.vmem [resolvable:$true] %s879_s15 }
  0xe0   : > { %s4287_s9 = scalar_lea.hbm %s4823_s5, 128 }
  0xe1   : > { %p4288_p11 = scmp.ne.s32.totalorder %s4823_s5, %s4287_s9  ;;  %p4294_p1 = scmp.lt.u32.totalorder %s4287_s9, %s4823_s5 }
  0xe3   : > { %p4290_p13 = pnand %p4288_p11, %p5051_p12 }
  0xe5   : > { %p4291_p0 = pneg %p4290_p13 }
  0xe7   : > { %p4296_p2 = pnand %p4294_p1, %p4291_p0 }
  0xe9   : > { %4299 = shalt.err (!%p4296_p2)
}
  0xea   : > { %s4300_s17 = scalar_lea.vmem %s858_s18, 128  ;;  %p4308_p8 = scmp.lt.s32.totalorder %s858_s18, %s858_s18 }
  0xeb   : > { %p4301_p4 = scmp.ne.s32.totalorder %s858_s18, %s4300_s17  ;;  %p4309_p3 = scmp.lt.s32.totalorder %s4300_s17, %s4300_s17 }
  0xed   : > { %p4303_p6 = pnand %p4301_p4, %p5051_p12  ;;  %p4310_p5 = por %p4309_p3, %p4308_p8 }
  0xef   : > { %p4304_p7 = pneg %p4303_p6 }
  0xf1   : > { %p4311_p9 = pnand %p4310_p5, %p4304_p7 }
  0xf3   : > { %4314 = shalt.err (!%p4311_p9)
}
  0xf4   : > { %3881 = dma.hbm_to_vmem [thread:$0]  (!%p5039_p10), %s4823_s5, 128, %s858_s18, [#allocation7]  }
  0xf5   : > { %s4315_s10 = scalar_lea.hbm %s4833_s13, 128 }
  0xf6   : > { %p4316_p11 = scmp.ne.s32.totalorder %s4833_s13, %s4315_s10  ;;  %p4322_p1 = scmp.lt.u32.totalorder %s4315_s10, %s4833_s13 }
  0xf8   : > { %p4318_p13 = pnand %p4316_p11, %p5051_p12 }
  0xfa   : > { %p4319_p0 = pneg %p4318_p13 }
  0xfc   : > { %p4324_p2 = pnand %p4322_p1, %p4319_p0 }
  0xfe   : > { %4327 = shalt.err (!%p4324_p2)
}
  0xff   : > { %s4328_s3 = scalar_lea.vmem %s5136_s15, 128  ;;  %p4336_p8 = scmp.lt.s32.totalorder %s5136_s15, %s5136_s15 }
 0x100   : > { %p4329_p4 = scmp.ne.s32.totalorder %s5136_s15, %s4328_s3  ;;  %p4337_p3 = scmp.lt.s32.totalorder %s4328_s3, %s4328_s3 }
 0x102   : > { %p4331_p6 = pnand %p4329_p4, %p5051_p12  ;;  %p4338_p5 = por %p4337_p3, %p4336_p8 }
 0x104   : > { %p4332_p7 = pneg %p4331_p6 }
 0x106   : > { %p4339_p9 = pnand %p4338_p5, %p4332_p7 }
 0x108   : > { %4342 = shalt.err (!%p4339_p9)
}
 0x109   : > { %3887 = dma.hbm_to_vmem [thread:$0]  (!%p5039_p10), %s4833_s13, 128, %s5136_s15, [#allocation10]  }
 0x10a   : > { %s4791_s18 = smov [#allocation14]   ;;  %s4792_s9 = smov [#allocation17]  }
 0x10b   : > { %s907_s26 = sshll.u32 %s4791_s18, 4  ;;  %s929_s17 = sshll.u32 %s4792_s9, 4  ;;  %s908_s26 = int_to_ptr.vmem [resolvable:$true] %s907_s26  ;;  %s5163_s17 = int_to_ptr.vmem [resolvable:$true] %s929_s17 }
 0x10c   : > { %s4343_s10 = scalar_lea.hbm %s4853_s29, 128 }
 0x10d   : > { %p4344_p11 = scmp.ne.s32.totalorder %s4853_s29, %s4343_s10  ;;  %p4350_p1 = scmp.lt.u32.totalorder %s4343_s10, %s4853_s29 }
 0x10f   : > { %p4346_p13 = pnand %p4344_p11, %p5051_p12 }
 0x111   : > { %p4347_p0 = pneg %p4346_p13 }
 0x113   : > { %p4352_p2 = pnand %p4350_p1, %p4347_p0 }
 0x115   : > { %4355 = shalt.err (!%p4352_p2)
}
 0x116   : > { %s4356_s3 = scalar_lea.vmem %s908_s26, 128  ;;  %p4364_p8 = scmp.lt.s32.totalorder %s908_s26, %s908_s26 }
 0x117   : > { %p4357_p4 = scmp.ne.s32.totalorder %s908_s26, %s4356_s3  ;;  %p4365_p3 = scmp.lt.s32.totalorder %s4356_s3, %s4356_s3 }
 0x119   : > { %p4359_p6 = pnand %p4357_p4, %p5051_p12  ;;  %p4366_p5 = por %p4365_p3, %p4364_p8 }
 0x11b   : > { %p4360_p7 = pneg %p4359_p6 }
 0x11d   : > { %p4367_p9 = pnand %p4366_p5, %p4360_p7 }
 0x11f   : > { %4370 = shalt.err (!%p4367_p9)
}
 0x120   : > { %3893 = dma.hbm_to_vmem [thread:$0]  (!%p5039_p10), %s4853_s29, 128, %s908_s26, [#allocation13]  }
 0x121   : > { %s4371_s15 = scalar_lea.hbm %s4863_s8, 128 }
 0x122   : > { %p4372_p11 = scmp.ne.s32.totalorder %s4863_s8, %s4371_s15  ;;  %p4378_p1 = scmp.lt.u32.totalorder %s4371_s15, %s4863_s8 }
 0x124   : > { %p4374_p13 = pnand %p4372_p11, %p5051_p12 }
 0x126   : > { %p4375_p0 = pneg %p4374_p13 }
 0x128   : > { %p4380_p2 = pnand %p4378_p1, %p4375_p0 }
 0x12a   : > { %4383 = shalt.err (!%p4380_p2)
}
 0x12b   : > { %s4384_s18 = scalar_lea.vmem %s5163_s17, 128  ;;  %p4392_p8 = scmp.lt.s32.totalorder %s5163_s17, %s5163_s17 }
 0x12c   : > { %p4385_p4 = scmp.ne.s32.totalorder %s5163_s17, %s4384_s18  ;;  %p4393_p3 = scmp.lt.s32.totalorder %s4384_s18, %s4384_s18 }
 0x12e   : > { %p4387_p6 = pnand %p4385_p4, %p5051_p12  ;;  %p4394_p5 = por %p4393_p3, %p4392_p8 }
 0x130   : > { %p4388_p7 = pneg %p4387_p6 }
 0x132   : > { %p4395_p9 = pnand %p4394_p5, %p4388_p7 }
 0x134   : > { %4398 = shalt.err (!%p4395_p9)
}
 0x135   : > { %3899 = dma.hbm_to_vmem [thread:$0]  (!%p5039_p10), %s4863_s8, 128, %s5163_s17, [#allocation16]  }
 0x136   : > { %s4793_s26 = smov [#allocation20]   ;;  %s4794_s10 = smov [#allocation23]  }
 0x137   : > { %s956_s9 = sshll.u32 %s4793_s26, 4  ;;  %s980_s3 = sshll.u32 %s4794_s10, 4  ;;  %s957_s9 = int_to_ptr.vmem [resolvable:$true] %s956_s9  ;;  %s5190_s3 = int_to_ptr.vmem [resolvable:$true] %s980_s3 }
 0x138   : > { %s4399_s15 = scalar_lea.hbm %s4878_s24, 16 }
 0x139   : > { %p4400_p11 = scmp.ne.s32.totalorder %s4878_s24, %s4399_s15  ;;  %p4406_p1 = scmp.lt.u32.totalorder %s4399_s15, %s4878_s24 }
 0x13b   : > { %p4402_p13 = pnand %p4400_p11, %p5051_p12 }
 0x13d   : > { %p4403_p0 = pneg %p4402_p13 }
 0x13f   : > { %p4408_p2 = pnand %p4406_p1, %p4403_p0 }
 0x141   : > { %4411 = shalt.err (!%p4408_p2)
}
 0x142   : > { %s4412_s18 = scalar_lea.vmem %s957_s9, 16  ;;  %s4419_s17 = scalar_lea.vmem %s957_s9, 32 }
 0x143   : > { %p4413_p4 = scmp.ne.s32.totalorder %s957_s9, %s4412_s18  ;;  %p4420_p8 = scmp.lt.s32.totalorder %s957_s9, %s957_s9 }
 0x144   : > { %p4421_p3 = scmp.lt.s32.totalorder %s4419_s17, %s4412_s18 }
 0x145   : > { %p4415_p6 = pnand %p4413_p4, %p5051_p12 }
 0x146   : > { %p4422_p5 = por %p4421_p3, %p4420_p8 }
 0x147   : > { %p4416_p7 = pneg %p4415_p6 }
 0x149   : > { %p4423_p9 = pnand %p4422_p5, %p4416_p7 }
 0x14b   : > { %4426 = shalt.err (!%p4423_p9)
}
 0x14c   : > { %3905 = dma.hbm_to_vmem [thread:$0]  (!%p5039_p10), %s4878_s24, 16, %s957_s9, [#allocation19]  }
 0x14d   : > { %s4427_s26 = scalar_lea.hbm %s4893_s12, 512 }
 0x14e   : > { %p4428_p11 = scmp.ne.s32.totalorder %s4893_s12, %s4427_s26  ;;  %p4434_p1 = scmp.lt.u32.totalorder %s4427_s26, %s4893_s12 }
 0x150   : > { %p4430_p13 = pnand %p4428_p11, %p5051_p12 }
 0x152   : > { %p4431_p0 = pneg %p4430_p13 }
 0x154   : > { %p4436_p2 = pnand %p4434_p1, %p4431_p0 }
 0x156   : > { %4439 = shalt.err (!%p4436_p2)
}
 0x157   : > { %s4440_s10 = scalar_lea.vmem %s5190_s3, 512  ;;  %p4448_p8 = scmp.lt.s32.totalorder %s5190_s3, %s5190_s3 }
 0x158   : > { %p4441_p4 = scmp.ne.s32.totalorder %s5190_s3, %s4440_s10  ;;  %p4449_p3 = scmp.lt.s32.totalorder %s4440_s10, %s4440_s10 }
 0x15a   : > { %p4443_p6 = pnand %p4441_p4, %p5051_p12  ;;  %p4450_p5 = por %p4449_p3, %p4448_p8 }
 0x15c   : > { %p4444_p7 = pneg %p4443_p6 }
 0x15e   : > { %p4451_p9 = pnand %p4450_p5, %p4444_p7 }
 0x160   : > { %4454 = shalt.err (!%p4451_p9)
}
 0x161   : > { %3911 = dma.hbm_to_vmem [thread:$0]  (!%p5039_p10), %s4893_s12, 512, %s5190_s3, [#allocation22], %s4785_s4, %s4785_s4, %s4786_s11  }
 0x162   : > { %s4795_s9 = smov [#allocation26]   ;;  %s4796_s18 = smov [#allocation27]  }
 0x163   : > { %s1007_s15 = sshll.u32 %s4795_s9, 4  ;;  %s1038_s17 = sshll.u32 %s4796_s18, 4  ;;  %s1008_s15 = int_to_ptr.vmem [resolvable:$true] %s1007_s15  ;;  %s5220_s17 = int_to_ptr.vmem [resolvable:$true] %s1038_s17 }
 0x164   : > { %s4455_s26 = scalar_lea.hbm %s4903_s27, 16 }
 0x165   : > { %p4456_p11 = scmp.ne.s32.totalorder %s4903_s27, %s4455_s26  ;;  %p4462_p1 = scmp.lt.u32.totalorder %s4455_s26, %s4903_s27 }
 0x167   : > { %p4458_p13 = pnand %p4456_p11, %p5051_p12 }
 0x169   : > { %p4459_p0 = pneg %p4458_p13 }
 0x16b   : > { %p4464_p2 = pnand %p4462_p1, %p4459_p0 }
 0x16d   : > { %4467 = shalt.err (!%p4464_p2)
}
 0x16e   : > { %s4468_s10 = scalar_lea.vmem %s1008_s15, 16  ;;  %s4475_s3 = scalar_lea.vmem %s1008_s15, 32 }
 0x16f   : > { %p4469_p4 = scmp.ne.s32.totalorder %s1008_s15, %s4468_s10  ;;  %p4476_p8 = scmp.lt.s32.totalorder %s1008_s15, %s1008_s15 }
 0x170   : > { %p4477_p3 = scmp.lt.s32.totalorder %s4475_s3, %s4468_s10 }
 0x171   : > { %p4471_p6 = pnand %p4469_p4, %p5051_p12 }
 0x172   : > { %p4478_p5 = por %p4477_p3, %p4476_p8 }
 0x173   : > { %p4472_p7 = pneg %p4471_p6 }
 0x175   : > { %p4479_p9 = pnand %p4478_p5, %p4472_p7 }
 0x177   : > { %4482 = shalt.err (!%p4479_p9)
}
 0x178   : > { %s5872_s9 = sld [smem:[#allocation64_spill]] }
 0x179   : > { %3917 = dma.hbm_to_vmem [thread:$0]  (!%p5039_p10), %s4903_s27, 16, %s1008_s15, [#allocation25]  }
 0x17e   : > { %s4483_s18 = scalar_lea.hbm %s5872_s9, 512 }
 0x17f   : > { %p4484_p11 = scmp.ne.s32.totalorder %s5872_s9, %s4483_s18  ;;  %p4490_p1 = scmp.lt.u32.totalorder %s4483_s18, %s5872_s9 }
 0x181   : > { %p4486_p13 = pnand %p4484_p11, %p5051_p12 }
 0x183   : > { %p4487_p0 = pneg %p4486_p13 }
 0x185   : > { %p4492_p2 = pnand %p4490_p1, %p4487_p0 }
 0x187   : > { %4495 = shalt.err (!%p4492_p2)
}
 0x188   : > { %s4496_s26 = scalar_lea.vmem %s5220_s17, 512  ;;  %p4504_p8 = scmp.lt.s32.totalorder %s5220_s17, %s5220_s17 }
 0x189   : > { %p4497_p4 = scmp.ne.s32.totalorder %s5220_s17, %s4496_s26  ;;  %p4505_p3 = scmp.lt.s32.totalorder %s4496_s26, %s4496_s26 }
 0x18b   : > { %p4499_p6 = pnand %p4497_p4, %p5051_p12  ;;  %p4506_p5 = por %p4505_p3, %p4504_p8 }
 0x18d   : > { %p4500_p7 = pneg %p4499_p6 }
 0x18f   : > { %p4507_p9 = pnand %p4506_p5, %p4500_p7 }
 0x191   : > { %4510 = shalt.err (!%p4507_p9)
}
 0x192   : > { %3920 = dma.hbm_to_vmem [thread:$0]  (!%p5039_p10), %s5872_s9, 512, %s5220_s17, [#allocation28], %s4785_s4, %s4785_s4, %s4786_s11  }
 0x193   : > { %p3509_p11 = scmp.ge.s32.totalorder %s4741_s16, 2 }
 0x194   : > { %p5873_p12 = scmp.ne.s32.totalorder (!%p3509_p11), %s5868_s25, 0 }
 0x195   : > { %1054 = sbr.rel (%p3509_p11) target bundleno = 419 (0x1a3), region = 124 }
 0x19c   : > { %1057 = sbr.rel (!%p5873_p12) target bundleno = 419 (0x1a3), region = 128  ;;  %s1059_s2 = sand.u32 (%p5873_p12), 1, %s4737_s30  }
 0x19d   : > { %s3511_s15 = sshll.u32 (%p5873_p12), %s4741_s16, 3  ;;  %s3510_s10 = sshll.u32 (%p5873_p12), %s1059_s2, 5 }
 0x19e   : > { %s1063_s3 = scalar_lea.vmem (%p5873_p12), %s4956_s14, %s3511_s15  ;;  %s1061_s22 = scalar_lea.vmem (%p5873_p12), [#allocation29], %s3510_s10 }
 0x19f   : > { %v1097_v1 = vld [vmem:[%s1063_s3] sm:$0xff] (%p5873_p12)  ;;  %v1099_v2 = vld [vmem:[%s1063_s3 + $0x10] sm:$0xff] (%p5873_p12) }
 0x1a0   : > { %v1101_v3 = vld [vmem:[%s1063_s3 + $0x20] sm:$0xff] (%p5873_p12)  ;;  %1098 = vst [vmem:[%s1061_s22] sm:$0xff] (%p5873_p12), %v1097_v1  ;;  %1100 = vst [vmem:[%s1061_s22 + $0x8] sm:$0xff] (%p5873_p12), %v1099_v2  ;;  %v1103_v4 = vld [vmem:[%s1063_s3 + $0x30] sm:$0xff] (%p5873_p12) }
 0x1a1   : > { %1102 = vst [vmem:[%s1061_s22 + $0x10] sm:$0xff] (%p5873_p12), %v1101_v3  ;;  %1104 = vst [vmem:[%s1061_s22 + $0x18] sm:$0xff] (%p5873_p12), %v1103_v4 }
 0x1a3 PF: > { %p5874_p10 = scmp.ne.s32.totalorder %s5869_s28, 0 }
 0x1a4   : > { %p5875_p13 = scmp.eq.s32.totalorder (!%p5874_p10), %s5009_s0, 0 }
 0x1a5   : > { %1119 = sbr.rel (%p5874_p10) target bundleno = 4222 (0x107e), region = 170 }
 0x1ac   : > { %4684 = dma.done.wait (%p5875_p13), [#allocation7], 128   ;;  %p5876_p0 = pmov %p5875_p13 }
 0x1ae   : > { %4686 = vsyncadd (%p5876_p0), [#allocation7], 4294967168  ;;  %p5877_p1 = pmov %p5876_p0 }
 0x1af   : > { %p5878_p2 = pmov %p5876_p0 }
 0x1b0   : > { %4688 = dma.done.wait (%p5877_p1), [#allocation10], 256  }
 0x1b1   : > { %4690 = vsyncadd (%p5878_p2), [#allocation10], 4294967040  ;;  %p5879_p4 = pmov %p5876_p0 }
 0x1b2   : > { %p5880_p6 = pmov %p5876_p0 }
 0x1b3   : > { %4692 = dma.done.wait (%p5879_p4), [#allocation13], 256  }
 0x1b4   : > { %4694 = vsyncadd (%p5880_p6), [#allocation13], 4294967040  ;;  %p5881_p7 = pmov %p5876_p0 }
 0x1b5   : > { %p5882_p8 = pmov %p5876_p0 }
 0x1b6   : > { %4696 = dma.done.wait (%p5881_p7), [#allocation16], 256  }
 0x1b7   : > { %4698 = vsyncadd (%p5882_p8), [#allocation16], 4294967040  ;;  %p5883_p3 = pmov %p5876_p0 }
 0x1b8   : > { %p5884_p5 = pmov %p5876_p0 }
 0x1b9   : > { %4700 = dma.done.wait (%p5883_p3), [#allocation19], 528  }
 0x1ba   : > { %4702 = vsyncadd (%p5884_p5), [#allocation19], 4294966768  ;;  %p5885_p9 = pmov %p5876_p0 }
 0x1bb   : > { %p5886_p11 = pmov %p5876_p0 }
 0x1bc   : > { %4704 = dma.done.wait (%p5885_p9), [#allocation22], 528  }
 0x1bd   : > { %4706 = vsyncadd (%p5886_p11), [#allocation22], 4294966768  ;;  %p5887_p12 = pmov %p5876_p0 }
 0x1be   : > { %p5888_p10 = pmov %p5876_p0 }
 0x1bf   : > { %4708 = dma.done.wait (%p5887_p12), [#allocation25], 528  }
 0x1c0   : > { %4710 = vsyncadd (%p5888_p10), [#allocation25], 4294966768  ;;  %p5889_p13 = pmov %p5876_p0 }
 0x1c2   : > { %4712 = dma.done.wait (%p5889_p13), [#allocation28], 512  }
 0x1c3   : > { %4714 = vsyncadd (%p5876_p0), [#allocation28], 4294966784  ;;  %s5890_s16 = sld [smem:[#allocation67_spill]]  ;;  %s1178_s25 = sand.u32 1, %s4733_s21  }
 0x1c4   : > { %p1261_p1 = scmp.lt.s32.totalorder %s5009_s0, 1  ;;  %s3527_s28 = sshll.u32 %s1178_s25, 5 }
 0x1c5   : > { %s5297_s17 = scalar_lea.vmem [#allocation29], %s3527_s28  ;;  %p5891_p2 = scmp.ne.s32.totalorder %s5009_s0, 0 }
 0x1c6   : > { %s5293_s4 = scalar_select %p1261_p1, %s5009_s0, 1 }
 0x1c7   : > { %1267 = sbr.rel (%p5891_p2) target bundleno = 3209 (0xc89), region = 234  ;;  %s5892_s18 = sld [smem:[#allocation56_spill]] (!%p5891_p2)  ;;  %v4797_v8 = vmov (!%p5891_p2), 0.0|0.0   ;;  %v1309_v11 = vld [vmem:[#allocation18] sm:$0xff] (!%p5891_p2)  ;;  %v1310_v12 = vld [vmem:[#allocation18 + $0x8] sm:$0xff] (!%p5891_p2)  ;;  %v1311_v14 = vld [vmem:[#allocation18 + $0x10] sm:$0xff] (!%p5891_p2) }
 0x1c8   : > { %3738 = vmatprep.subr.bf16.mxu1 (!%p5891_p2), %v4797_v8  ;;  %3732 = vmatprep.subr.bf16.mxu0 (!%p5891_p2), %v4797_v8  ;;  %v3733_v13 = vpack.c.bf16 (!%p5891_p2), %v1310_v12, %v1309_v11  ;;  %vm4798_vm0 = vmmov (!%p5891_p2), 0   ;;  %s5893_s21 = sld [smem:[#allocation57_spill]] (!%p5891_p2)  ;;  %v4799_v15 = vmov (!%p5891_p2), 0.0   ;;  %v1312_v17 = vld [vmem:[#allocation18 + $0x18] sm:$0xff] (!%p5891_p2)  ;;  %s4800_s2 = smov (!%p5891_p2), 32   ;;  %v1308_v27 = vld [vmem:[#allocation6] sm:$0xff] (!%p5891_p2) }
 0x1c9   : > { %s1263_s11 = scalar_lea.vmem %s5890_s16, %s5293_s4  ;;  %3628 = vmatprep.mubr.msk.f32.mxu0 (!%p5891_p2), %vm4798_vm0, %v4799_v15  ;;  %3647 = vmatprep.mubr.msk.f32.mxu1 (!%p5891_p2), %vm4798_vm0, %v4799_v15  ;;  %v3736_v20 = vpack.c.bf16 (!%p5891_p2), %v1312_v17, %v1311_v14  ;;  %v1268_v21 = vld [vmem:[#allocation11] sm:$0xff] (!%p5891_p2)  ;;  %vm1313_vm1 = vcmask (!%p5891_p2), 261120   ;;  %v1299_v33 = vld [vmem:[#allocation9] sm:$0xff] (!%p5891_p2)  ;;  %vm1387_vm2 = vcmask (!%p5891_p2), 523264   ;;  %v1269_v40 = vld [vmem:[#allocation12] sm:$0xff] (!%p5891_p2)  ;;  %s4801_s15 = smov (!%p5891_p2), 64  }
 0x1ca   : > { %3734 = vmatpush3.bf16.msra.mxu0 (!%p5891_p2), %v3733_v13  ;;  %1470 = vrot.lane.b32.xlu0 (!%p5891_p2), %v1268_v21, %s4800_s2  ;;  %v3531_v44 = vld [vmem:[#allocation20] ss:$0 sm:$0xff] (!%p5891_p2)  ;;  %v3532_v50 = vld [vmem:[#allocation21] ss:$0 sm:$0xff] (!%p5891_p2)  ;;  %v1292_v61 = vld [vmem:[#allocation24] sm:$0xff] (!%p5891_p2)  ;;  %s4802_s10 = smov (!%p5891_p2), 96  }
 0x1cb   : > { %3735 = vmatprep.subr.bf16.mxu0 (!%p5891_p2), %v4797_v8  ;;  %1570 = vrot.lane.b32.xlu1 (!%p5891_p2), %v1269_v40, %s4800_s2  ;;  %v1293_v62 = vld [vmem:[#allocation24 + $0x8] sm:$0xff] (!%p5891_p2)  ;;  %v1294_v63 = vld [vmem:[#allocation24 + $0x10] sm:$0xff] (!%p5891_p2)  ;;  %v1295_v1 = vld [vmem:[#allocation24 + $0x18] sm:$0xff] (!%p5891_p2)  ;;  %s5895_s3 = sld [smem:[#allocation59_spill]] (!%p5891_p2)  ;;  %s5896_s22 = sld [smem:[#allocation54_spill]] (!%p5891_p2)  ;;  %vm2011_vm3 = vcmask (!%p5891_p2), 1041409  }
 0x1cc   : > { %v3763_v0 = vpack.c.bf16 (!%p5891_p2), %v1293_v62, %v1292_v61  ;;  %v3766_v2 = vpack.c.bf16 (!%p5891_p2), %v1295_v1, %v1294_v63  ;;  %v1291_v12 = vld [vmem:[#allocation23 + $0x18] sm:$0xff] (!%p5891_p2)  ;;  %v5371_v21 = vld [vmem:[#allocation15] sm:$0xff] (!%p5891_p2)  ;;  %s5897_s16 = sld [smem:[#allocation58_spill]] (!%p5891_p2)  ;;  %vm2013_vm4 = vcmask (!%p5891_p2), 1042434   ;;  %vm2015_vm5 = vcmask (!%p5891_p2), 1043459   ;;  %s5898_s25 = sld [smem:[#allocation61_spill]] (!%p5891_p2) }
 0x1cd   : > { %v1300_v5 = vld [vmem:[%s5892_s18] sm:$0xff] (!%p5891_p2)  ;;  %v1301_v6 = vld [vmem:[%s5892_s18 + $0x8] sm:$0xff] (!%p5891_p2)  ;;  %v1302_v7 = vld [vmem:[%s5892_s18 + $0x10] sm:$0xff] (!%p5891_p2)  ;;  %vm2017_vm6 = vcmask (!%p5891_p2), 1044484   ;;  %vm2019_vm7 = vcmask (!%p5891_p2), 1045509   ;;  %vm2021_vm8 = vcmask (!%p5891_p2), 1046534  }
 0x1ce   : > { %v3739_v9 = vpack.c.bf16 %v1301_v6, %v1300_v5  ;;  %v1303_v10 = vld [vmem:[%s5892_s18 + $0x18] sm:$0xff]  ;;  %s5894_s26 = smov %s5893_s21  ;;  %v1304_v18 = vld [vmem:[%s5892_s18 + $0x20] sm:$0xff]  ;;  %v1305_v19 = vld [vmem:[%s5892_s18 + $0x28] sm:$0xff]  ;;  %3737 = vmatpush3.bf16.msra.mxu0 %v3736_v20  ;;  %vm2023_vm9 = vcmask 1047559   ;;  %vm2026_vm10 = vcmask 64512   ;;  %s5899_s28 = sld [smem:[#allocation62_spill]] }
 0x1cf   : > { %v3742_v16 = vpack.c.bf16 %v1303_v10, %v1302_v7  ;;  %v1474_v22 = vld [vmem:[%s5893_s21] sm:$0xff]  ;;  %v1475_v23 = vld [vmem:[%s5894_s26 + $0x8] sm:$0xff]  ;;  %v3745_v24 = vpack.c.bf16 %v1305_v19, %v1304_v18  ;;  %v1306_v25 = vld [vmem:[%s5892_s18 + $0x30] sm:$0xff]  ;;  %3750 = vmatprep.subr.bf16.mxu0 %v4797_v8  ;;  %v1752_v19 = vlaneseq  ;;  %s5900_s21 = sld [smem:[#allocation65_spill]]  ;;  %vm2844_vm11 = vcmask 7168  }
 0x1d0   : > { %3740 = vmatpush3.bf16.msra.mxu1 %v3739_v9  ;;  %v1307_v26 = vld [vmem:[%s5892_s18 + $0x38] sm:$0xff]  ;;  %v3751_v28 = vpack.c.bf16 %v1475_v23, %v1474_v22  ;;  %v1476_v29 = vld [vmem:[%s5894_s26 + $0x10] sm:$0xff]  ;;  %v1478_v34 = vld [vmem:[%s5894_s26 + $0x20] sm:$0xff] }
 0x1d1   : > { %3741 = vmatprep.subr.bf16.mxu1 %v4797_v8  ;;  %v1477_v30 = vld [vmem:[%s5894_s26 + $0x18] sm:$0xff]  ;;  %v3748_v31 = vpack.c.bf16 %v1307_v26, %v1306_v25  ;;  %3629 = vmatmul.mubr.msk.f32.vlgmr.msra.gmra.mrb[0].mxu0 %vm1313_vm1, %v1308_v27  ;;  %v1479_v35 = vld [vmem:[%s5894_s26 + $0x28] sm:$0xff]  ;;  %v1480_v37 = vld [vmem:[%s5894_s26 + $0x30] sm:$0xff]  ;;  %v5369_v20 = vshrl.u32 %v1752_v19, 7 }
 0x1d2   : > { %3752 = vmatpush3.bf16.msra.mxu0 %v3751_v28  ;;  %v3754_v32 = vpack.c.bf16 %v1477_v30, %v1476_v29  ;;  %3666 = vmatprep.mubr.msk.f32.mxu0 %vm4798_vm0, %v4799_v15  ;;  %v3757_v36 = vpack.c.bf16 %v1479_v35, %v1478_v34  ;;  %v1481_v38 = vld [vmem:[%s5894_s26 + $0x38] sm:$0xff]  ;;  %v1290_v10 = vld [vmem:[#allocation23 + $0x10] sm:$0xff]  ;;  %v3538_v62 = vld [vmem:[%s5895_s3] ss:$0 sm:$0xff]  ;;  %s5902_s3 = sld [smem:[#allocation53_spill]] }
 0x1d3   : > { %3753 = vmatprep.subr.bf16.mxu0 %v4797_v8  ;;  %v3760_v39 = vpack.c.bf16 %v1481_v38, %v1480_v37  ;;  %v1288_v7 = vld [vmem:[#allocation23] sm:$0xff]  ;;  %v1289_v9 = vld [vmem:[#allocation23 + $0x8] sm:$0xff]  ;;  %v3772_v13 = vpack.c.bf16 %v1291_v12, %v1290_v10  ;;  %v5374_v22 = vsub.s32 0, %v5369_v20  ;;  %v5377_v23 = vsub.s32 1, %v5369_v20 }
 0x1d4   : > { %3743 = vmatpush3.bf16.msra.mxu1 %v3742_v16  ;;  %v3769_v11 = vpack.c.bf16 %v1289_v9, %v1288_v7  ;;  %v5383_v25 = vsub.s32 3, %v5369_v20  ;;  %v5394_v30 = vsub.s32 4, %v5369_v20  ;;  %v5404_v34 = vsub.s32 6, %v5369_v20  ;;  %v2666_v38 = vld [vmem:[#allocation27] sm:$0xff] }
 0x1d5   : > { %3744 = vmatprep.subr.bf16.mxu1 %v4797_v8  ;;  %v1848_v26 = vrot.slane %v5371_v21, %v5374_v22  ;;  %v1855_v27 = vrot.slane %v5371_v21, %v5377_v23  ;;  %v5407_v35 = vsub.s32 7, %v5369_v20 }
 0x1d6   : > { %3755 = vmatpush3.bf16.msra.mxu0 %v3754_v32  ;;  %v1869_v29 = vrot.slane %v5371_v21, %v5383_v25  ;;  %v1876_v32 = vrot.slane %v5371_v21, %v5394_v30 }
 0x1d7   : > { %3756 = vmatprep.subr.bf16.mxu0 %v4797_v8  ;;  %v1897_v37 = vrot.slane %v5371_v21, %v5407_v35 }
 0x1d8   : > { %3746 = vmatpush3.bf16.msra.mxu1 %v3745_v24  ;;  %v5380_v24 = vsub.s32 2, %v5369_v20 }
 0x1d9   : > { %3747 = vmatprep.subr.bf16.mxu1 %v4797_v8 }
 0x1da   : > { %3758 = vmatpush3.bf16.msra.mxu0 %v3757_v36  ;;  %v1862_v28 = vrot.slane %v5371_v21, %v5380_v24  ;;  %v1890_v36 = vrot.slane %v5371_v21, %v5404_v34 }
 0x1db   : > { %3759 = vmatprep.subr.bf16.mxu0 %v4797_v8 }
 0x1dc   : > { %3749 = vmatpush3.bf16.msra.mxu1 %v3748_v31  ;;  %v5397_v31 = vsub.s32 5, %v5369_v20 }
 0x1dd   : > { %3762 = vmatprep.subr.bf16.mxu1 %v4797_v8 }
 0x1de   : > { %3761 = vmatpush3.bf16.msra.mxu0 %v3760_v39  ;;  %v2667_v39 = vld [vmem:[#allocation27 + $0x8] sm:$0xff] }
 0x1df   : > { %3648 = vmatmul.mubr.msk.f32.vlgmr.msra.gmra.mrb[0].mxu1 %vm1387_vm2, %v1299_v33  ;;  %3768 = vmatprep.subr.bf16.mxu0 %v4797_v8  ;;  %v1883_v33 = vrot.slane %v5371_v21, %v5397_v31  ;;  %v3787_v40 = vpack.c.bf16 %v2667_v39, %v2666_v38  ;;  %v1282_v38 = vld [vmem:[%s5896_s22 + $0x20] sm:$0xff]  ;;  %v1281_v39 = vld [vmem:[%s5896_s22 + $0x18] sm:$0xff] }
 0x1e0   : > { %3677 = vmatprep.mubr.msk.f32.mxu1 %vm4798_vm0, %v4799_v15  ;;  %3764 = vmatpush3.bf16.msra.mxu1 %v3763_v0 }
 0x1e1   : > { %3765 = vmatprep.subr.bf16.mxu1 %v4797_v8 }
 0x1e4   : > { %3767 = vmatpush3.bf16.msra.mxu1 %v3766_v2 }
 0x1e5   : > { %3774 = vmatprep.subr.bf16.mxu1 %v4797_v8 }
 0x23c   : > { %v1471_v47 = vpop.permute.xlu0 %1470 }
 0x23d   : > { %v1571_v3 = vpop.permute.xlu1 %1570 }
 0x2a4   : > { %v1383_v41 = vpop.f32.mrb[0].mxu0 }
 0x2a5   : > { %v3630_v42 = vpop.f32.mrb[1].mxu0 }
 0x2a6   : > { %v2669_v42 = vld [vmem:[#allocation27 + $0x18] sm:$0xff] }
 0x2b2   : > { %v1457_v43 = vpop.f32.mrb[0].mxu1 }
 0x2b3   : > { %v1458_v45 = vadd.f32 %v1457_v43, %v1383_v41  ;;  %v3649_v46 = vpop.f32.mrb[1].mxu1  ;;  %v2668_v41 = vld [vmem:[#allocation27 + $0x10] sm:$0xff] }
 0x2b5   : > { %v5341_v48 = vadd.f32 %v3531_v44, %v1458_v45  ;;  %v3790_v44 = vpack.c.bf16 %v2669_v42, %v2668_v41 }
 0x2b7   : > { %v1473_v49 = vsel %vm1313_vm1, %v5341_v48, %v1471_v47  ;;  %v4803_v47 = vmov 1966171168  }
 0x2b8   : > { %3667 = vmatmul.mubr.msk.f32.vlgmr.msra.gmra.mrb[2].mxu0 %vm1387_vm2, %v1473_v49  ;;  %v1750_v49 = vunpack.c.l.s4 %v4803_v47 }
 0x2b9   : > { %3688 = vmatprep.mubr.msk.f32.mxu0 %vm4798_vm0, %v4799_v15  ;;  %3770 = vmatpush3.bf16.msra.mxu0 %v3769_v11 }
 0x2ba   : > { %3771 = vmatprep.subr.bf16.mxu0 %v4797_v8 }
 0x2bd   : > { %3773 = vmatpush3.bf16.msra.mxu0 %v3772_v13 }
 0x2be   : > { %3786 = vmatprep.subr.bf16.mxu0 %v4797_v8 }
 0x38b   : > { %v1558_v51 = vpop.f32.mrb[2].mxu0 }
 0x38c   : > { %v1559_v52 = vadd.f32 %v3532_v50, %v1558_v51  ;;  %v3668_v53 = vpop.f32.mrb[3].mxu0 }
 0x38d   : > { %v3537_v53 = vld [vmem:[#allocation26] ss:$0 sm:$0xff] }
 0x38e   : > { %4063 = vtanh.f32 %v1559_v52  ;;  %v3534_v55 = vmul.f32 -1.442695, %v1559_v52  ;;  %v1751_v52 = vunpack.c.0.s8 %v1750_v49  ;;  %v1283_v49 = vld [vmem:[%s5896_s22 + $0x28] sm:$0xff] }
 0x390   : > { %4065 = vpow2.f32 %v3534_v55 }
 0x398   : > { %v4064_v54 = vpop.eup %4063 }
 0x399   : > { %1575 = vrot.lane.b32.xlu0 %v4064_v54, %s4801_s15 }
 0x39a   : > { %v4066_v56 = vpop.eup %4065 }
 0x39b   : > { %v1565_v57 = vadd.f32 1.0, %v4066_v56  ;;  %v1754_v56 = vsub.s32 %v1751_v52, %v5369_v20 }
 0x39d   : > { %4067 = vrcp.f32 %v1565_v57 }
 0x3a7   : > { %v4068_v58 = vpop.eup %4067 }
 0x3a8   : > { %v1573_v4 = vmul.f32 %v4068_v58, %v1571_v3  ;;  %v1278_v3 = vld [vmem:[%s5896_s22] sm:$0xff] }
 0x40b   : > { %v1576_v59 = vpop.permute.xlu0 %1575 }
 0x40c   : > { %v1578_v60 = vmul.f32 %v4068_v58, %v1576_v59 }
 0x40e   : > { %1580 = vrot.lane.b32.xlu1 %v1578_v60, %s4800_s2 }
 0x480   : > { %v1581_v5 = vpop.permute.xlu1 %1580 }
 0x481   : > { %v5352_v6 = vadd.f32 %v1581_v5, %v1573_v4 }
 0x483   : > { %4069 = vtanh.f32 %v5352_v6  ;;  %1591 = vrot.lane.b32.xlu1 %v5352_v6, %s4802_s10 }
 0x487   : > { %1850 = vbcast.lane.b32.xlu1 %v1848_v26, 256 }
 0x48b   : > { %1864 = vbcast.lane.b32.xlu1 %v1862_v28, 256 }
 0x48d   : > { %v4070_v14 = vpop.eup %4069 }
 0x48e   : > { %1586 = vrot.lane.b32.xlu0 %v4070_v14, %s4801_s15  ;;  %s5901_s15 = smov %s5900_s21 }
 0x48f   : > { %1878 = vbcast.lane.b32.xlu1 %v1876_v32, 256 }
 0x493   : > { %1892 = vbcast.lane.b32.xlu1 %v1890_v36, 256 }
 0x4f5   : > { %v1592_v16 = vpop.permute.xlu1 %1591 }
 0x4f6   : > { %2975 = vst.msk [vmem:[#allocation33] sm:$0xff] %vm1313_vm1, %v1592_v16  ;;  %3678 = vmatmul.mubr.msk.f32.vlgmr.msra.gmra.mrb[2].mxu1 %vm1313_vm1, %v1592_v16  ;;  %v1279_v16 = vld [vmem:[%s5896_s22 + $0x8] sm:$0xff] }
 0x4f7   : > { %3707 = vmatprep.mubr.msk.f32.mxu1 %vm4798_vm0, %v4799_v15 }
 0x4f9   : > { %v1851_v51 = vpop.permute.xlu1 %1850 }
 0x4fa   : > { %v1907_v4 = vmul.f32 %v3538_v62, %v1851_v51 }
 0x500   : > { %v1587_v17 = vpop.permute.xlu0 %1586 }
 0x501   : > { %v5364_v18 = vmul.f32 %v4068_v58, %v1587_v17  ;;  %v1865_v58 = vpop.permute.xlu1 %1864  ;;  %v1280_v17 = vld [vmem:[%s5896_s22 + $0x10] sm:$0xff] }
 0x502   : > { %v1909_v26 = vmul.f32 %v3538_v62, %v1865_v58 }
 0x503   : > { %1666 = vrot.lane.b32.xlu0 %v5364_v18, %s4800_s2 }
 0x505   : > { %v1879_v9 = vpop.permute.xlu1 %1878 }
 0x507   : > { %1857 = vbcast.lane.b32.xlu0 %v1855_v27, 256 }
 0x50b   : > { %1871 = vbcast.lane.b32.xlu0 %v1869_v29, 256  ;;  %v1911_v29 = vmul.f32 %v3538_v62, %v1879_v9 }
 0x50f   : > { %1885 = vbcast.lane.b32.xlu0 %v1883_v33, 256 }
 0x513   : > { %1899 = vbcast.lane.b32.xlu0 %v1897_v37, 256 }
 0x575   : > { %v1667_v43 = vpop.permute.xlu0 %1666 }
 0x576   : > { %2973 = vst.msk [vmem:[#allocation31] sm:$0xff] %vm1313_vm1, %v1667_v43  ;;  %3689 = vmatmul.mubr.msk.f32.vlgmr.msra.gmra.mrb[4].mxu0 %vm1313_vm1, %v1667_v43 }
 0x577   : > { %3788 = vmatpush3.bf16.msra.mxu0 %v3787_v40  ;;  %3718 = vmatprep.mubr.msk.f32.mxu0 %vm4798_vm0, %v4799_v15 }
 0x578   : > { %3789 = vmatprep.subr.bf16.mxu0 %v4797_v8 }
 0x579   : > { %v1858_v50 = vpop.permute.xlu0 %1857 }
 0x57a   : > { %v1908_v5 = vmul.f32 %v3538_v62, %v1858_v50 }
 0x57b   : > { %3791 = vmatpush3.bf16.msra.mxu0 %v3790_v44 }
 0x57d   : > { %v1872_v57 = vpop.permute.xlu0 %1871 }
 0x57e   : > { %3719 = vmatmul.mubr.msk.f32.vlgmr.msra.gmra.mrb[6].mxu0 %vm1313_vm1, %v1667_v43  ;;  %v1910_v27 = vmul.f32 %v3538_v62, %v1872_v57 }
 0x581   : > { %v1886_v2 = vpop.permute.xlu0 %1885 }
 0x582   : > { %v1912_v42 = vmul.f32 %v3538_v62, %v1886_v2 }
 0x585   : > { %v1900_v50 = vpop.permute.xlu0 %1899 }
 0x5c9   : > { %v1661_v45 = vpop.f32.mrb[2].mxu1 }
 0x5ca   : > { %v3679_v46 = vpop.f32.mrb[3].mxu1 }
 0x649   : > { %v1736_v54 = vpop.f32.mrb[4].mxu0 }
 0x64a   : > { %v1737_v55 = vadd.f32 %v1736_v54, %v1661_v45  ;;  %v3690_v15 = vpop.f32.mrb[5].mxu0  ;;  %v1893_v54 = vpop.permute.xlu1 %1892 }
 0x64c   : > { %v1746_v59 = vadd.f32 %v3537_v53, %v1737_v55  ;;  %v1284_v53 = vld [vmem:[%s5896_s22 + $0x30] sm:$0xff] }
 0x64e   : > { %v1748_v60 = vcombine.high %v1746_v59, %v1746_v59  ;;  %v1755_v61 = vrot.slane %v1746_v59, %v1754_v56  ;;  %v1285_v59 = vld [vmem:[%s5896_s22 + $0x38] sm:$0xff] }
 0x650   : > { %v1762_v63 = vrot.slane %v1748_v60, %v1754_v56  ;;  %v1763_v0 = vcombine.high %v1755_v61, %v1755_v61  ;;  %v1771_v1 = vrot.slane %v1755_v61, %v1754_v56 }
 0x651   : > { %v5422_v7 = vpop.f32.mrb[6].mxu0 }
 0x652   : > { %v1764_v10 = vcombine.high %v1762_v63, %v1762_v63  ;;  %v1800_v11 = vrot.slane %v1771_v1, %v5374_v22  ;;  %v1785_v12 = vrot.slane %v1763_v0, %v1754_v56  ;;  %v1793_v13 = vcombine.high %v1771_v1, %v1771_v1  ;;  %v3720_v14 = vpop.f32.mrb[7].mxu0 }
 0x653   : > { %v1778_v28 = vrot.slane %v1762_v63, %v1754_v56  ;;  %v1914_v0 = vmul.f32 %v3538_v62, %v1900_v50 }
 0x654   : > { %v1837_v32 = vadd.f32 %v1800_v11, %v1278_v3  ;;  %v1804_v33 = vrot.slane %v1785_v12, %v5374_v22  ;;  %v1808_v36 = vrot.slane %v1793_v13, %v5374_v22  ;;  %v1795_v37 = vcombine.high %v1785_v12, %v1785_v12  ;;  %v3539_v11 = vld [vmem:[%s5897_s16] ss:$0 sm:$0xff]  ;;  %s5905_s16 = sld [smem:[#allocation66_spill]] }
 0x655   : > { %v1816_v40 = vrot.slane %v1778_v28, %v5374_v22  ;;  %v1792_v41 = vrot.slane %v1764_v10, %v1754_v56  ;;  %v1794_v43 = vcombine.high %v1778_v28, %v1778_v28  ;;  %v1913_v3 = vmul.f32 %v3538_v62, %v1893_v54 }
 0x656   : > { %v1915_v44 = vadd.f32 %v1907_v4, %v1837_v32  ;;  %v1838_v45 = vadd.f32 %v1804_v33, %v1279_v16  ;;  %v1839_v46 = vadd.f32 %v1808_v36, %v1280_v17  ;;  %v1812_v47 = vrot.slane %v1795_v37, %v5374_v22 }
 0x657   : > { %v1841_v51 = vadd.f32 %v1816_v40, %v1282_v38  ;;  %v1820_v52 = vrot.slane %v1792_v41, %v5374_v22  ;;  %v1824_v55 = vrot.slane %v1794_v43, %v5374_v22  ;;  %v1796_v15 = vcombine.high %v1792_v41, %v1792_v41 }
 0x658   : > { %4071 = vtanh.f32 %v1915_v44  ;;  %v1916_v56 = vadd.f32 %v1908_v5, %v1838_v45  ;;  %v1917_v57 = vadd.f32 %v1909_v26, %v1839_v46  ;;  %v1840_v58 = vadd.f32 %v1812_v47, %v1281_v39 }
 0x659   : > { %v1919_v60 = vadd.f32 %v1911_v29, %v1841_v51  ;;  %v1842_v61 = vadd.f32 %v1820_v52, %v1283_v49  ;;  %v1828_v63 = vrot.slane %v1796_v15, %v5374_v22  ;;  %v1843_v2 = vadd.f32 %v1824_v55, %v1284_v53 }
 0x65a   : > { %4073 = vtanh.f32 %v1916_v56  ;;  %v1918_v1 = vadd.f32 %v1910_v27, %v1840_v58  ;;  %v1978_v49 = vand.u32 127, %v1752_v19 }
 0x65b   : > { %4075 = vtanh.f32 %v1917_v57  ;;  %v1920_v4 = vadd.f32 %v1912_v42, %v1842_v61  ;;  %v1844_v9 = vadd.f32 %v1828_v63, %v1285_v59  ;;  %v1921_v5 = vadd.f32 %v1913_v3, %v1843_v2 }
 0x65c   : > { %4077 = vtanh.f32 %v1918_v1  ;;  %v5450_v51 = vsub.s32 %v1978_v49, %v5369_v20 }
 0x65d   : > { %4079 = vtanh.f32 %v1919_v60  ;;  %v1922_v10 = vadd.f32 %v1914_v0, %v1844_v9 }
 0x65e   : > { %4081 = vtanh.f32 %v1920_v4 }
 0x65f   : > { %4083 = vtanh.f32 %v1922_v10 }
 0x660   : > { %4085 = vtanh.f32 %v1921_v5 }
 0x662   : > { %v4072_v12 = vpop.eup %4071 }
 0x663   : > { %v1937_v13 = vmul.f32 %v4072_v12, %v3539_v11  ;;  %v4804_v12 = vmov 0  }
 0x664   : > { %v4074_v14 = vpop.eup %4073  ;;  %4062 = vset.pattern.permute.xlu0 %v4804_v12  ;;  %4061 = vset.pattern.permute.xlu1 %v4804_v12 }
 0x665   : > { %v4076_v16 = vpop.eup %4075  ;;  %v1945_v17 = vsel %vm1387_vm2, %v1937_v13, 0.0  ;;  %v1938_v26 = vmul.f32 %v4074_v14, %v3539_v11 }
 0x666   : > { %v4078_v27 = vpop.eup %4077  ;;  %1946 = vadd.xlane.f32.xlu1 %v1945_v17  ;;  %v1939_v32 = vmul.f32 %v4076_v16, %v3539_v11 }
 0x667   : > { %v4080_v62 = vpop.eup %4079  ;;  %v1948_v28 = vsel %vm1387_vm2, %v1938_v26, 0.0  ;;  %v1940_v29 = vmul.f32 %v4078_v27, %v3539_v11 }
 0x668   : > { %v4082_v33 = vpop.eup %4081  ;;  %1949 = vadd.xlane.f32.xlu0 %v1948_v28  ;;  %v1951_v39 = vsel %vm1387_vm2, %v1939_v32, 0.0  ;;  %v1941_v40 = vmul.f32 %v4080_v62, %v3539_v11 }
 0x669   : > { %v1954_v36 = vsel %vm1387_vm2, %v1940_v29, 0.0  ;;  %v1942_v37 = vmul.f32 %v4082_v33, %v3539_v11  ;;  %v4084_v38 = vpop.eup %4083 }
 0x66a   : > { %1955 = vadd.xlane.f32.xlu1 %v1954_v36  ;;  %v4086_v41 = vpop.eup %4085  ;;  %v1944_v43 = vmul.f32 %v4084_v38, %v3539_v11  ;;  %v1957_v44 = vsel %vm1387_vm2, %v1941_v40, 0.0 }
 0x66b   : > { %v1960_v42 = vsel %vm1387_vm2, %v1942_v37, 0.0  ;;  %v1943_v45 = vmul.f32 %v4086_v41, %v3539_v11 }
 0x66c   : > { %1952 = vadd.xlane.f32.xlu0 %v1951_v39  ;;  %v1966_v46 = vsel %vm1387_vm2, %v1944_v43, 0.0 }
 0x66d   : > { %v1963_v47 = vsel %vm1387_vm2, %v1943_v45, 0.0 }
 0x66e   : > { %1961 = vadd.xlane.f32.xlu1 %v1960_v42 }
 0x670   : > { %1958 = vadd.xlane.f32.xlu0 %v1957_v44 }
 0x672   : > { %1967 = vadd.xlane.f32.xlu1 %v1966_v46 }
 0x674   : > { %1964 = vadd.xlane.f32.xlu0 %v1963_v47 }
 0x6f3   : > { %v1947_v50 = vpop.xlane.xlu1 %1946 }
 0x6f4   : > { %v1982_v55 = vrot.slane %v1947_v50, %v5450_v51 }
 0x6f5   : > { %v1950_v52 = vpop.xlane.xlu0 %1949 }
 0x6f6   : > { %v1986_v53 = vrot.slane %v1950_v52, %v5450_v51 }
 0x6f7   : > { %v1956_v54 = vpop.xlane.xlu1 %1955 }
 0x6f8   : > { %v2012_v57 = vsel %vm2011_vm3, %v1986_v53, %v1982_v55  ;;  %v1994_v20 = vrot.slane %v1956_v54, %v5450_v51 }
 0x6f9   : > { %v1953_v15 = vpop.xlane.xlu0 %1952 }
 0x6fa   : > { %v1990_v56 = vrot.slane %v1953_v15, %v5450_v51 }
 0x6fb   : > { %v1962_v58 = vpop.xlane.xlu1 %1961 }
 0x6fc   : > { %v2014_v19 = vsel %vm2013_vm4, %v1990_v56, %v2012_v57  ;;  %v2002_v1 = vrot.slane %v1962_v58, %v5450_v51 }
 0x6fd   : > { %v1959_v59 = vpop.xlane.xlu0 %1958  ;;  %v2016_v61 = vsel %vm2015_vm5, %v1994_v20, %v2014_v19  ;;  %v1286_v19 = vld [vmem:[#allocation14] sm:$0xff] }
 0x6fe   : > { %v1998_v60 = vrot.slane %v1959_v59, %v5450_v51  ;;  %v2224_v20 = vrot.slane %v1286_v19, %v5374_v22 }
 0x6ff   : > { %v1968_v0 = vpop.xlane.xlu1 %1967 }
 0x700   : > { %v2018_v63 = vsel %vm2017_vm6, %v1998_v60, %v2016_v61  ;;  %v2010_v4 = vrot.slane %v1968_v0, %v5450_v51  ;;  %v2238_v60 = vrot.slane %v1286_v19, %v5380_v24  ;;  %v2245_v61 = vrot.slane %v1286_v19, %v5383_v25 }
 0x701   : > { %v1965_v2 = vpop.xlane.xlu0 %1964  ;;  %v2020_v9 = vsel %vm2019_vm7, %v2002_v1, %v2018_v63  ;;  %v2252_v63 = vrot.slane %v1286_v19, %v5394_v30  ;;  %v2266_v1 = vrot.slane %v1286_v19, %v5404_v34 }
 0x702   : > { %v2006_v3 = vrot.slane %v1965_v2, %v5450_v51 }
 0x704   : > { %v2022_v10 = vsel %vm2021_vm8, %v2006_v3, %v2020_v9 }
 0x705   : > { %v2024_v5 = vsel %vm2023_vm9, %v2010_v4, %v2022_v10 }
 0x706   : > { %v2027_v11 = vsel %vm2026_vm10, %v2024_v5, -inf }
 0x707   : > { %2028 = vmax.xlane.f32.xlu0 %v2027_v11 }
 0x794   : > { %v2029_v13 = vpop.xlane.xlu0 %2028 }
 0x795   : > { %v2034_v14 = vrot.slane %v2029_v13, %v5374_v22  ;;  %v2038_v16 = vrot.slane %v2029_v13, %v5377_v23  ;;  %v2042_v17 = vrot.slane %v2029_v13, %v5380_v24  ;;  %v2046_v26 = vrot.slane %v2029_v13, %v5383_v25 }
 0x796   : > { %v2050_v33 = vrot.slane %v2029_v13, %v5394_v30  ;;  %v2054_v38 = vrot.slane %v2029_v13, %v5397_v31  ;;  %v2058_v41 = vrot.slane %v2029_v13, %v5404_v34  ;;  %v2062_v46 = vrot.slane %v2029_v13, %v5407_v35 }
 0x797   : > { %v2071_v27 = vsub.f32 %v1947_v50, %v2034_v14  ;;  %v2072_v62 = vsub.f32 %v1950_v52, %v2038_v16  ;;  %v2073_v28 = vsub.f32 %v1953_v15, %v2042_v17  ;;  %v2074_v36 = vsub.f32 %v1956_v54, %v2046_v26 }
 0x798   : > { %v2075_v39 = vsub.f32 %v1959_v59, %v2050_v33  ;;  %v2076_v42 = vsub.f32 %v1962_v58, %v2054_v38  ;;  %v2077_v47 = vsub.f32 %v1965_v2, %v2058_v41  ;;  %v2078_v52 = vsub.f32 %v1968_v0, %v2062_v46 }
 0x799   : > { %v2079_v29 = vmul.f32 1.442695, %v2071_v27  ;;  %v2081_v32 = vmul.f32 1.442695, %v2072_v62  ;;  %v2083_v37 = vmul.f32 1.442695, %v2073_v28  ;;  %v2231_v59 = vrot.slane %v1286_v19, %v5377_v23 }
 0x79a   : > { %v2085_v40 = vmul.f32 1.442695, %v2074_v36  ;;  %v2087_v43 = vmul.f32 1.442695, %v2075_v39  ;;  %v2089_v49 = vmul.f32 1.442695, %v2076_v42  ;;  %v2259_v0 = vrot.slane %v1286_v19, %v5397_v31 }
 0x79b   : > { %4087 = vpow2.f32 %v2079_v29  ;;  %v2091_v53 = vmul.f32 1.442695, %v2077_v47  ;;  %v2093_v55 = vmul.f32 1.442695, %v2078_v52  ;;  %v2273_v2 = vrot.slane %v1286_v19, %v5407_v35 }
 0x79c   : > { %4089 = vpow2.f32 %v2081_v32 }
 0x79d   : > { %4091 = vpow2.f32 %v2083_v37 }
 0x79e   : > { %4093 = vpow2.f32 %v2085_v40 }
 0x79f   : > { %4095 = vpow2.f32 %v2087_v43 }
 0x7a0   : > { %4097 = vpow2.f32 %v2089_v49 }
 0x7a1   : > { %4099 = vpow2.f32 %v2091_v53 }
 0x7a2   : > { %4101 = vpow2.f32 %v2093_v55 }
 0x7a5   : > { %v5475_v44 = vpop.eup %4087 }
 0x7a6   : > { %v5477_v45 = vpop.eup %4089  ;;  %2104 = vperm.xlu1 %4061, %v5475_v44  }
 0x7a7   : > { %2107 = vperm.xlu0 %4062, %v5477_v45   ;;  %v5482_v50 = vpop.eup %4091 }
 0x7a8   : > { %v5485_v54 = vpop.eup %4093 }
 0x7a9   : > { %v5488_v15 = vpop.eup %4095 }
 0x7aa   : > { %2110 = vperm.xlu1 %4061, %v5482_v50   ;;  %v5491_v56 = vpop.eup %4097 }
 0x7ab   : > { %v5494_v57 = vpop.eup %4099  ;;  %2226 = vbcast.lane.b32.xlu0 %v2224_v20, 256 }
 0x7ac   : > { %v5497_v58 = vpop.eup %4101 }
 0x7ae   : > { %2113 = vperm.xlu1 %4061, %v5485_v54  }
 0x7af   : > { %2233 = vbcast.lane.b32.xlu0 %v2231_v59, 256 }
 0x7b2   : > { %2116 = vperm.xlu1 %4061, %v5488_v15  }
 0x7b3   : > { %2240 = vbcast.lane.b32.xlu0 %v2238_v60, 256 }
 0x7b6   : > { %2119 = vperm.xlu1 %4061, %v5491_v56  }
 0x7b7   : > { %2247 = vbcast.lane.b32.xlu0 %v2245_v61, 256 }
 0x7ba   : > { %2122 = vperm.xlu1 %4061, %v5494_v57  }
 0x7bb   : > { %2254 = vbcast.lane.b32.xlu0 %v2252_v63, 256 }
 0x7be   : > { %2125 = vperm.xlu1 %4061, %v5497_v58  }
 0x7bf   : > { %2261 = vbcast.lane.b32.xlu0 %v2259_v0, 256 }
 0x7c3   : > { %2268 = vbcast.lane.b32.xlu0 %v2266_v1, 256 }
 0x7c7   : > { %2275 = vbcast.lane.b32.xlu0 %v2273_v2, 256 }
 0x825   : > { %v2105_v3 = vpop.permute.xlu1 %2104 }
 0x826   : > { %v2108_v5 = vpop.permute.xlu0 %2107  ;;  %v2130_v13 = vrot.slane %v2105_v3, %v5450_v51 }
 0x827   : > { %v2134_v12 = vrot.slane %v2108_v5, %v5450_v51 }
 0x829   : > { %v2111_v4 = vpop.permute.xlu1 %2110  ;;  %v2159_v27 = vsel %vm2011_vm3, %v2134_v12, %v2130_v13 }
 0x82a   : > { %v2138_v14 = vrot.slane %v2111_v4, %v5450_v51  ;;  %v2227_v42 = vpop.permute.xlu0 %2226 }
 0x82c   : > { %v2160_v28 = vsel %vm2013_vm4, %v2138_v14, %v2159_v27 }
 0x82d   : > { %v2114_v9 = vpop.permute.xlu1 %2113 }
 0x82e   : > { %v2142_v16 = vrot.slane %v2114_v9, %v5450_v51  ;;  %v2234_v43 = vpop.permute.xlu0 %2233 }
 0x830   : > { %v2161_v32 = vsel %vm2015_vm5, %v2142_v16, %v2160_v28 }
 0x831   : > { %v2117_v10 = vpop.permute.xlu1 %2116 }
 0x832   : > { %v2146_v17 = vrot.slane %v2117_v10, %v5450_v51  ;;  %v2241_v46 = vpop.permute.xlu0 %2240 }
 0x834   : > { %v2162_v33 = vsel %vm2017_vm6, %v2146_v17, %v2161_v32  ;;  %v3541_v17 = vld [vmem:[%s5898_s25] ss:$0 sm:$0xff] }
 0x835   : > { %v2120_v11 = vpop.permute.xlu1 %2119 }
 0x836   : > { %v2150_v62 = vrot.slane %v2120_v11, %v5450_v51  ;;  %v2248_v47 = vpop.permute.xlu0 %2247 }
 0x838   : > { %v2163_v37 = vsel %vm2019_vm7, %v2150_v62, %v2162_v33 }
 0x839   : > { %v2123_v26 = vpop.permute.xlu1 %2122 }
 0x83a   : > { %v2154_v29 = vrot.slane %v2123_v26, %v5450_v51  ;;  %v2255_v52 = vpop.permute.xlu0 %2254 }
 0x83c   : > { %v2164_v39 = vsel %vm2021_vm8, %v2154_v29, %v2163_v37 }
 0x83d   : > { %v2126_v36 = vpop.permute.xlu1 %2125 }
 0x83e   : > { %v2158_v38 = vrot.slane %v2126_v36, %v5450_v51  ;;  %v2262_v53 = vpop.permute.xlu0 %2261 }
 0x840   : > { %v2165_v40 = vsel %vm2023_vm9, %v2158_v38, %v2164_v39 }
 0x841   : > { %v2167_v41 = vsel %vm2026_vm10, %v2165_v40, 0.0 }
 0x842   : > { %2168 = vadd.xlane.f32.xlu1 %v2167_v41  ;;  %v2269_v0 = vpop.permute.xlu0 %2268 }
 0x846   : > { %v2276_v13 = vpop.permute.xlu0 %2275 }
 0x8cf   : > { %v2169_v49 = vpop.xlane.xlu1 %2168 }
 0x8d0   : > { %4103 = vrcp.f32 %v2169_v49 }
 0x8da   : > { %v4104_v55 = vpop.eup %4103 }
 0x8db   : > { %v2195_v19 = vrot.slane %v4104_v55, %v5397_v31  ;;  %v2179_v20 = vrot.slane %v4104_v55, %v5377_v23  ;;  %v2175_v59 = vrot.slane %v4104_v55, %v5374_v22  ;;  %v2183_v60 = vrot.slane %v4104_v55, %v5380_v24 }
 0x8dc   : > { %v2203_v1 = vrot.slane %v4104_v55, %v5407_v35  ;;  %v2187_v2 = vrot.slane %v4104_v55, %v5383_v25 }
 0x8dd   : > { %v2213_v61 = vmul.f32 %v5477_v45, %v2179_v20  ;;  %v2212_v63 = vmul.f32 %v5475_v44, %v2175_v59  ;;  %v2217_v3 = vmul.f32 %v5491_v56, %v2195_v19  ;;  %v2214_v10 = vmul.f32 %v5482_v50, %v2183_v60 }
 0x8de   : > { %v2191_v45 = vrot.slane %v4104_v55, %v5394_v30  ;;  %v2219_v44 = vmul.f32 %v5497_v58, %v2203_v1  ;;  %v2215_v12 = vmul.f32 %v5485_v54, %v2187_v2  ;;  %v2199_v50 = vrot.slane %v4104_v55, %v5404_v34  ;;  %v3542_v54 = vld [vmem:[%s5899_s28] ss:$0 sm:$0xff] }
 0x8df   : > { %v2286_v4 = vmul.f32 %v2234_v43, %v2213_v61  ;;  %v5533_v9 = vmul.f32 %v2227_v42, %v2212_v63  ;;  %v2290_v5 = vmul.f32 %v2262_v53, %v2217_v3  ;;  %v2287_v11 = vmul.f32 %v2241_v46, %v2214_v10 }
 0x8e0   : > { %v2216_v56 = vmul.f32 %v5488_v15, %v2191_v45  ;;  %v5542_v14 = vmul.f32 %v2276_v13, %v2219_v44  ;;  %v2288_v16 = vmul.f32 %v2248_v47, %v2215_v12  ;;  %v2218_v58 = vmul.f32 %v5494_v57, %v2199_v50 }
 0x8e1   : > { %2305 = vperm.xlu0 %4062, %v2286_v4   ;;  %2302 = vperm.xlu1 %4061, %v5533_v9  }
 0x8e2   : > { %v2289_v26 = vmul.f32 %v2255_v52, %v2216_v56  ;;  %v2291_v27 = vmul.f32 %v2269_v0, %v2218_v58  ;;  %v2670_v58 = vld [vmem:[%s5900_s21] sm:$0xff] }
 0x8e5   : > { %2308 = vperm.xlu0 %4062, %v2287_v11   ;;  %2317 = vperm.xlu1 %4061, %v2290_v5  }
 0x8e9   : > { %2311 = vperm.xlu0 %4062, %v2288_v16   ;;  %2323 = vperm.xlu1 %4061, %v5542_v14  }
 0x8ed   : > { %2314 = vperm.xlu0 %4062, %v2289_v26   ;;  %2610 = vrot.lane.b32.xlu1 %v3541_v17, %s4802_s10 }
 0x8f1   : > { %2320 = vperm.xlu0 %4062, %v2291_v27   ;;  %2628 = vrot.lane.b32.xlu1 %v3542_v54, %s4800_s2  ;;  %v2671_v54 = vld [vmem:[%s5901_s15 + $0x8] sm:$0xff] }
 0x960   : > { %v2306_v15 = vpop.permute.xlu0 %2305  ;;  %v2303_v62 = vpop.permute.xlu1 %2302 }
 0x961   : > { %v2332_v29 = vrot.slane %v2306_v15, %v5450_v51  ;;  %v2328_v32 = vrot.slane %v2303_v62, %v5450_v51 }
 0x963   : > { %v2357_v38 = vsel %vm2011_vm3, %v2332_v29, %v2328_v32  ;;  %v2675_v29 = vld [vmem:[%s5901_s15 + $0x28] sm:$0xff] }
 0x964   : > { %v2309_v28 = vpop.permute.xlu0 %2308  ;;  %v2318_v37 = vpop.permute.xlu1 %2317 }
 0x965   : > { %v2336_v36 = vrot.slane %v2309_v28, %v5450_v51  ;;  %v2348_v47 = vrot.slane %v2318_v37, %v5450_v51  ;;  %v2674_v28 = vld [vmem:[%s5901_s15 + $0x20] sm:$0xff]  ;;  %v1275_v37 = vld [vmem:[%s5902_s3 + $0x28] sm:$0xff] }
 0x966   : > { %v3781_v32 = vpack.c.bf16 %v2675_v29, %v2674_v28 }
 0x967   : > { %v2358_v40 = vsel %vm2013_vm4, %v2336_v36, %v2357_v38  ;;  %v2677_v36 = vld [vmem:[%s5901_s15 + $0x38] sm:$0xff] }
 0x968   : > { %v2312_v33 = vpop.permute.xlu0 %2311  ;;  %v2324_v43 = vpop.permute.xlu1 %2323 }
 0x969   : > { %v2340_v57 = vrot.slane %v2312_v33, %v5450_v51  ;;  %v2356_v53 = vrot.slane %v2324_v43, %v5450_v51  ;;  %v2676_v33 = vld [vmem:[%s5901_s15 + $0x30] sm:$0xff] }
 0x96b   : > { %v2359_v42 = vsel %vm2015_vm5, %v2340_v57, %v2358_v40  ;;  %v1271_v57 = vld [vmem:[%s5902_s3 + $0x8] sm:$0xff] }
 0x96c   : > { %v2315_v39 = vpop.permute.xlu0 %2314  ;;  %v2611_v50 = vpop.permute.xlu1 %2610 }
 0x96d   : > { %v2344_v41 = vrot.slane %v2315_v39, %v5450_v51  ;;  %v2613_v17 = vmul.f32 %v2611_v50, %v5364_v18  ;;  %v2673_v18 = vld [vmem:[%s5901_s15 + $0x18] sm:$0xff] }
 0x96f   : > { %v2360_v46 = vsel %vm2017_vm6, %v2344_v41, %v2359_v42  ;;  %v1272_v42 = vld [vmem:[%s5902_s3 + $0x10] sm:$0xff] }
 0x970   : > { %v2321_v49 = vpop.permute.xlu0 %2320  ;;  %v2361_v55 = vsel %vm2019_vm7, %v2348_v47, %v2360_v46 }
 0x971   : > { %v2352_v52 = vrot.slane %v2321_v49, %v5450_v51 }
 0x973   : > { %v2362_v19 = vsel %vm2021_vm8, %v2352_v52, %v2361_v55 }
 0x974   : > { %v2363_v20 = vsel %vm2023_vm9, %v2356_v53, %v2362_v19 }
 0x975   : > { %v2365_v59 = vsel %vm2026_vm10, %v2363_v20, 0.0 }
 0x976   : > { %2366 = vadd.xlane.f32.xlu0 %v2365_v59 }
 0xa03   : > { %v2367_v60 = vpop.xlane.xlu0 %2366 }
 0xa04   : > { %4105 = vrcp.f32 %v2367_v60 }
 0xa0e   : > { %v4106_v61 = vpop.eup %4105 }
 0xa0f   : > { %v2393_v63 = vrot.slane %v4106_v61, %v5397_v31  ;;  %v2377_v0 = vrot.slane %v4106_v61, %v5377_v23  ;;  %v2381_v3 = vrot.slane %v4106_v61, %v5380_v24  ;;  %v2373_v45 = vrot.slane %v4106_v61, %v5374_v22 }
 0xa10   : > { %v2389_v12 = vrot.slane %v4106_v61, %v5394_v30  ;;  %v2397_v13 = vrot.slane %v4106_v61, %v5404_v34  ;;  %v2401_v56 = vrot.slane %v4106_v61, %v5407_v35 }
 0xa11   : > { %v5568_v1 = vmul.f32 %v2393_v63, %v2290_v5  ;;  %v5570_v2 = vmul.f32 %v2377_v0, %v2286_v4  ;;  %v5575_v10 = vmul.f32 %v2381_v3, %v2287_v11  ;;  %v5580_v44 = vmul.f32 %v2373_v45, %v5533_v9  ;;  %v1273_v63 = vld [vmem:[%s5902_s3 + $0x18] sm:$0xff] }
 0xa12   : > { %v2385_v5 = vrot.slane %v4106_v61, %v5383_v25  ;;  %v5588_v11 = vmul.f32 %v2389_v12, %v2289_v26  ;;  %v5592_v9 = vmul.f32 %v2397_v13, %v2291_v27  ;;  %v2629_v26 = vpop.permute.xlu1 %2628  ;;  %v3775_v27 = vpack.c.bf16 %v2671_v54, %v2670_v58  ;;  %v1274_v58 = vld [vmem:[%s5902_s3 + $0x20] sm:$0xff] }
 0xa13   : > { %2445 = vperm.xlu0 %4062, %v5568_v1   ;;  %2425 = vperm.xlu1 %4061, %v5570_v2   ;;  %v2631_v15 = vmul.f32 %v2629_v26, %v5352_v6  ;;  %v3784_v6 = vpack.c.bf16 %v2677_v36, %v2676_v33 }
 0xa14   : > { %v5584_v4 = vmul.f32 %v2385_v5, %v2288_v16  ;;  %v5597_v16 = vmul.f32 %v2401_v56, %v5542_v14  ;;  %3776 = vmatpush3.bf16.msra.mxu1 %v3775_v27  ;;  %v2672_v14 = vld [vmem:[%s5901_s15 + $0x10] sm:$0xff] }
 0xa15   : > { %3777 = vmatprep.subr.bf16.mxu1 %v4797_v8  ;;  %v3778_v62 = vpack.c.bf16 %v2673_v18, %v2672_v14 }
 0xa17   : > { %2430 = vperm.xlu1 %4061, %v5575_v10  }
 0xa18   : > { %3779 = vmatpush3.bf16.msra.mxu1 %v3778_v62 }
 0xa19   : > { %3780 = vmatprep.subr.bf16.mxu1 %v4797_v8 }
 0xa1b   : > { %2420 = vperm.xlu1 %4061, %v5580_v44  }
 0xa1c   : > { %3782 = vmatpush3.bf16.msra.mxu1 %v3781_v32 }
 0xa1d   : > { %3783 = vmatprep.subr.bf16.mxu1 %v4797_v8  ;;  %v1270_v8 = vld [vmem:[%s5902_s3] sm:$0xff] }
 0xa1f   : > { %2435 = vperm.xlu1 %4061, %v5584_v4  }
 0xa20   : > { %3785 = vmatpush3.bf16.msra.mxu1 %v3784_v6 }
 0xa23   : > { %2440 = vperm.xlu1 %4061, %v5588_v11  }
 0xa27   : > { %2450 = vperm.xlu1 %4061, %v5592_v9  }
 0xa2b   : > { %2455 = vperm.xlu1 %4061, %v5597_v16  }
 0xa2f   : > { %2615 = vrot.lane.b32.xlu1 %v2613_v17, %s4800_s2  ;;  %s5903_s2 = sld [smem:[#allocation60_spill]] }
 0xa33   : > { %2633 = vrot.lane.b32.xlu1 %v2631_v15, %s4802_s10  ;;  %s5904_s10 = sld [smem:[#allocation63_spill]] }
 0xa92   : > { %v5617_v38 = vpop.permute.xlu0 %2445  ;;  %v2426_v39 = vpop.permute.xlu1 %2425 }
 0xa93   : > { %v2463_v40 = vmul.f32 %v5617_v38, %v1275_v37  ;;  %v2459_v41 = vmul.f32 %v2426_v39, %v1271_v57  ;;  %v2529_v17 = vrot.slane %v2426_v39, %v5450_v51  ;;  %v1276_v57 = vld [vmem:[%s5902_s3 + $0x30] sm:$0xff] }
 0xa95   : > { %v2473_v43 = vsel %vm1387_vm2, %v2459_v41, 0.0  ;;  %v2501_v49 = vsel %vm1387_vm2, %v2463_v40, 0.0 }
 0xa96   : > { %v2474_v46 = vrot.slane %v2473_v43, 4  ;;  %v2431_v47 = vpop.permute.xlu1 %2430  ;;  %v2502_v19 = vrot.slane %v2501_v49, 4 }
 0xa97   : > { %v2460_v52 = vmul.f32 %v2431_v47, %v1272_v42  ;;  %v2533_v29 = vrot.slane %v2431_v47, %v5450_v51 }
 0xa98   : > { %v2475_v53 = vadd.f32 %v2474_v46, %v2473_v43  ;;  %v2503_v45 = vadd.f32 %v2502_v19, %v2501_v49  ;;  %v2545_v19 = vrot.slane %v5617_v38, %v5450_v51 }
 0xa99   : > { %v2480_v55 = vsel %vm1387_vm2, %v2460_v52, 0.0 }
 0xa9a   : > { %v2481_v20 = vrot.slane %v2480_v55, 4  ;;  %v2421_v59 = vpop.permute.xlu1 %2420  ;;  %v2476_v61 = vrot.slane %v2475_v53, 2  ;;  %v2504_v15 = vrot.slane %v2503_v45, 2 }
 0xa9b   : > { %v2458_v60 = vmul.f32 %v2421_v59, %v1270_v8  ;;  %v2525_v12 = vrot.slane %v2421_v59, %v5450_v51 }
 0xa9c   : > { %v2482_v0 = vadd.f32 %v2481_v20, %v2480_v55  ;;  %v2477_v50 = vadd.f32 %v2476_v61, %v2475_v53  ;;  %v2505_v43 = vadd.f32 %v2504_v15, %v2503_v45  ;;  %v1277_v61 = vld [vmem:[%s5902_s3 + $0x38] sm:$0xff] }
 0xa9d   : > { %v2466_v3 = vsel %vm1387_vm2, %v2458_v60, 0.0  ;;  %v2554_v18 = vsel %vm2011_vm3, %v2529_v17, %v2525_v12 }
 0xa9e   : > { %v2467_v5 = vrot.slane %v2466_v3, 4  ;;  %v2436_v13 = vpop.permute.xlu1 %2435  ;;  %v2483_v54 = vrot.slane %v2482_v0, 2  ;;  %v2478_v6 = vrot.slane %v2477_v50, 1  ;;  %v2555_v40 = vsel %vm2013_vm4, %v2533_v29, %v2554_v18  ;;  %v3543_v18 = vld [vmem:[%s5904_s10] ss:$0 sm:$0xff] }
 0xa9f   : > { %v2461_v56 = vmul.f32 %v2436_v13, %v1273_v63  ;;  %v2537_v62 = vrot.slane %v2436_v13, %v5450_v51  ;;  %v5645_v63 = vld [vmem:[%s5903_s2] ss:$0 sm:$0xff] }
 0xaa0   : > { %v2468_v26 = vadd.f32 %v2467_v5, %v2466_v3  ;;  %v2484_v39 = vadd.f32 %v2483_v54, %v2482_v0  ;;  %v2479_v20 = vadd.f32 %v2478_v6, %v2477_v50  ;;  %v2506_v5 = vrot.slane %v2505_v43, 1 }
 0xaa1   : > { %v2487_v27 = vsel %vm1387_vm2, %v2461_v56, 0.0  ;;  %v2556_v46 = vsel %vm2015_vm5, %v2537_v62, %v2555_v40 }
 0xaa2   : > { %v2469_v14 = vrot.slane %v2468_v26, 2  ;;  %v2441_v28 = vpop.permute.xlu1 %2440  ;;  %v2488_v32 = vrot.slane %v2487_v27, 4  ;;  %v2485_v0 = vrot.slane %v2484_v39, 1  ;;  %v2571_v54 = vmul.f32 %v5645_v63, %v2479_v20 }
 0xaa3   : > { %v2462_v33 = vmul.f32 %v2441_v28, %v1274_v58  ;;  %v2541_v36 = vrot.slane %v2441_v28, %v5450_v51 }
 0xaa4   : > { %v2470_v37 = vadd.f32 %v2469_v14, %v2468_v26  ;;  %v2489_v41 = vadd.f32 %v2488_v32, %v2487_v27  ;;  %v2486_v62 = vadd.f32 %v2485_v0, %v2484_v39  ;;  %v2647_v39 = vmul.f32 %v3543_v18, %v5341_v48 }
 0xaa5   : > { %v2494_v42 = vsel %vm1387_vm2, %v2462_v33, 0.0  ;;  %v2557_v8 = vsel %vm2017_vm6, %v2541_v36, %v2556_v46 }
 0xaa6   : > { %v2495_v49 = vrot.slane %v2494_v42, 4  ;;  %v2451_v47 = vpop.permute.xlu1 %2450  ;;  %v2471_v52 = vrot.slane %v2470_v37, 1  ;;  %v2490_v53 = vrot.slane %v2489_v41, 2  ;;  %v2558_v13 = vsel %vm2019_vm7, %v2545_v19, %v2557_v8 }
 0xaa7   : > { %v2464_v55 = vmul.f32 %v2451_v47, %v1276_v57  ;;  %v2549_v60 = vrot.slane %v2451_v47, %v5450_v51  ;;  %v2507_v8 = vadd.f32 %v2506_v5, %v2505_v43  ;;  %v2648_v48 = vsel %vm1313_vm1, %v2647_v39, 0.0 }
 0xaa8   : > { %v2496_v59 = vadd.f32 %v2495_v49, %v2494_v42  ;;  %v2491_v3 = vadd.f32 %v2490_v53, %v2489_v41  ;;  %v2472_v26 = vadd.f32 %v2471_v52, %v2470_v37  ;;  %v2572_v53 = vmul.f32 %v5645_v63, %v2486_v62 }
 0xaa9   : > { %v2508_v45 = vsel %vm1387_vm2, %v2464_v55, 0.0  ;;  %v2559_v14 = vsel %vm2021_vm8, %v2549_v60, %v2558_v13  ;;  %v2575_v5 = vmul.f32 %v5645_v63, %v2507_v8 }
 0xaaa   : > { %v2497_v12 = vrot.slane %v2496_v59, 2  ;;  %v2509_v56 = vrot.slane %v2508_v45, 4  ;;  %v2456_v17 = vpop.permute.xlu1 %2455  ;;  %v2492_v38 = vrot.slane %v2491_v3, 1  ;;  %v2570_v40 = vmul.f32 %v5645_v63, %v2472_v26 }
 0xaab   : > { %v2465_v50 = vmul.f32 %v2456_v17, %v1277_v61  ;;  %v2553_v58 = vrot.slane %v2456_v17, %v5450_v51  ;;  %v2686_v41 = vsel %vm2011_vm3, %v2479_v20, %v2472_v26 }
 0xaac   : > { %v2498_v27 = vadd.f32 %v2497_v12, %v2496_v59  ;;  %v2510_v15 = vadd.f32 %v2509_v56, %v2508_v45  ;;  %v2493_v28 = vadd.f32 %v2492_v38, %v2491_v3  ;;  %v2687_v59 = vsel %vm2013_vm4, %v2486_v62, %v2686_v41 }
 0xaad   : > { %v2515_v29 = vsel %vm1387_vm2, %v2465_v50, 0.0  ;;  %v2560_v32 = vsel %vm2023_vm9, %v2553_v58, %v2559_v14  ;;  %v2588_v12 = vrot.slane %v2572_v53, 6  ;;  %v2594_v62 = vrot.slane %v2575_v5, 3 }
 0xaae   : > { %v2499_v33 = vrot.slane %v2498_v27, 1  ;;  %v2511_v36 = vrot.slane %v2510_v15, 2  ;;  %v2516_v6 = vrot.slane %v2515_v29, 4  ;;  %v2562_v37 = vadd.f32 %v2560_v32, %v5371_v21  ;;  %2978 = vst.msk [vmem:[#allocation36] sm:$0xff] %vm2026_vm10, %v2560_v32  ;;  %v2616_v57 = vpop.permute.xlu1 %2615 }
 0xaaf   : > { %v2618_v42 = vsel %vm1313_vm1, %v2616_v57, 0.0  ;;  %v2573_v46 = vmul.f32 %v5645_v63, %v2493_v28  ;;  %v2586_v21 = vrot.slane %v2571_v54, 7  ;;  %v2688_v0 = vsel %vm2015_vm5, %v2493_v28, %v2687_v59 }
 0xab0   : > { %v2500_v49 = vadd.f32 %v2499_v33, %v2498_v27  ;;  %v2512_v47 = vadd.f32 %v2511_v36, %v2510_v15  ;;  %v2517_v52 = vadd.f32 %v2516_v6, %v2515_v29  ;;  %2979 = vst.msk [vmem:[#allocation37] sm:$0xff] %vm2026_vm10, %v2562_v37  ;;  %2619 = vadd.xlane.f32.xlu0 %v2618_v42 }
 0xab1   : > { %v2587_v60 = vsel %vm2011_vm3, %v2586_v21, %v2570_v40  ;;  %v2590_v61 = vrot.slane %v2573_v46, 5  ;;  %v3544_v46 = vld [vmem:[#allocation5] ss:$0 sm:$0xff] }
 0xab2   : > { %v2574_v55 = vmul.f32 %v5645_v63, %v2500_v49  ;;  %v2513_v19 = vrot.slane %v2512_v47, 1  ;;  %v2518_v20 = vrot.slane %v2517_v52, 2  ;;  %v2689_v43 = vsel %vm2017_vm6, %v2500_v49, %v2688_v0  ;;  %v2634_v6 = vpop.permute.xlu1 %2633 }
 0xab3   : > { %v2589_v26 = vsel %vm2013_vm4, %v2588_v12, %v2587_v60  ;;  %v2690_v50 = vsel %vm2019_vm7, %v2507_v8, %v2689_v43  ;;  %v2636_v37 = vsel %vm1313_vm1, %v2634_v6, 0.0 }
 0xab4   : > { %v2514_v3 = vadd.f32 %v2513_v19, %v2512_v47  ;;  %v2519_v45 = vadd.f32 %v2518_v20, %v2517_v52  ;;  %2649 = vadd.xlane.f32.xlu0 %v2648_v48  ;;  %v2592_v13 = vrot.slane %v2574_v55, 4  ;;  %v2591_v58 = vsel %vm2015_vm5, %v2590_v61, %v2589_v26  ;;  %v3548_v20 = vld [vmem:[%s5905_s16] ss:$0 sm:$0xff] }
 0xab6   : > { %v2520_v56 = vrot.slane %v2519_v45, 1  ;;  %v2576_v17 = vmul.f32 %v5645_v63, %v2514_v3  ;;  %v2691_v54 = vsel %vm2021_vm8, %v2514_v3, %v2690_v50  ;;  %v2593_v27 = vsel %vm2017_vm6, %v2592_v13, %v2591_v58 }
 0xab7   : > { %v2595_v28 = vsel %vm2019_vm7, %v2594_v62, %v2593_v27 }
 0xab8   : > { %v2521_v38 = vadd.f32 %v2520_v56, %v2519_v45  ;;  %v2596_v15 = vrot.slane %v2576_v17, 2 }
 0xaba   : > { %v2692_v14 = vsel %vm2023_vm9, %v2521_v38, %v2691_v54  ;;  %v2577_v18 = vmul.f32 %v5645_v63, %v2521_v38  ;;  %v2597_v32 = vsel %vm2021_vm8, %v2596_v15, %v2595_v28 }
 0xabb   : > { %3708 = vmatmul.mubr.msk.f32.vlgmr.msra.gmra.mrb[4].mxu1 %vm1387_vm2, %v2692_v14  ;;  %2977 = vst.msk [vmem:[#allocation34] sm:$0xff] %vm1387_vm2, %v2692_v14 }
 0xabc   : > { %v2598_v29 = vrot.slane %v2577_v18, 1 }
 0xabe   : > { %v2599_v33 = vsel %vm2023_vm9, %v2598_v29, %v2597_v32 }
 0xabf   : > { %v2601_v36 = vsel %vm1387_vm2, %v2599_v33, 0.0 }
 0xac0   : > { %2602 = vadd.xlane.f32.xlu1 %v2601_v36 }
 0xac4   : > { %2637 = vadd.xlane.f32.xlu1 %v2636_v37 }
 0xb3d   : > { %v2620_v63 = vpop.xlane.xlu0 %2619 }
 0xb41   : > { %v2650_v39 = vpop.xlane.xlu0 %2649 }
 0xb4d   : > { %v2603_v57 = vpop.xlane.xlu1 %2602 }
 0xb4e   : > { %v2621_v40 = vadd.f32 %v2620_v63, %v2603_v57 }
 0xb51   : > { %v2638_v41 = vpop.xlane.xlu1 %2637 }
 0xb52   : > { %v2639_v42 = vadd.f32 %v2638_v41, %v2621_v40 }
 0xb54   : > { %v2651_v49 = vadd.f32 %v2650_v39, %v2639_v42 }
 0xb56   : > { %v2659_v47 = vadd.f32 %v3544_v46, %v2651_v49 }
 0xb58   : > { %v3545_v52 = vmul.f32 -1.442695, %v2659_v47 }
 0xb5a   : > { %4107 = vpow2.f32 %v3545_v52 }
 0xb64   : > { %v4108_v21 = vpop.eup %4107 }
 0xb65   : > { %v2663_v53 = vadd.f32 1.0, %v4108_v21 }
 0xb67   : > { %4109 = vrcp.f32 %v2663_v53 }
 0xb71   : > { %v4110_v8 = vpop.eup %4109 }
 0xb72   : > { %2845 = vst.msk [vmem:[#allocation3] sm:$0xff] %vm2844_vm11, %v4110_v8  ;;  %v2846_v55 = vsub.f32 1.0, %v4110_v8 }
 0xb74   : > { %2849 = vperm.xlu1 %4061, %v2846_v55  }
 0xb8e   : > { %v2761_v19 = vpop.f32.mrb[4].mxu1 }
 0xb8f   : > { %v2832_v59 = vadd.f32 %v5422_v7, %v2761_v19  ;;  %v3709_v48 = vpop.f32.mrb[5].mxu1 }
 0xb91   : > { %v2842_v60 = vadd.f32 %v3548_v20, %v2832_v59 }
 0xb93   : > { %2843 = vst.msk [vmem:[#allocation2] sm:$0xff] %vm1313_vm1, %v2842_v60 }
 0xbf3   : > { %v2850_v61 = vpop.permute.xlu1 %2849 }
 0xbf4   : > { %v2858_v0 = vrot.slane %v2850_v61, %v5377_v23  ;;  %v2854_v3 = vrot.slane %v2850_v61, %v5374_v22  ;;  %v2862_v13 = vrot.slane %v2850_v61, %v5380_v24  ;;  %v2866_v43 = vrot.slane %v2850_v61, %v5383_v25 }
 0xbf5   : > { %v2870_v56 = vrot.slane %v2850_v61, %v5394_v30  ;;  %v2874_v23 = vrot.slane %v2850_v61, %v5397_v31  ;;  %v2878_v24 = vrot.slane %v2850_v61, %v5404_v34  ;;  %v2882_v25 = vrot.slane %v2850_v61, %v5407_v35 }
 0xbf6   : > { %v2892_v45 = vmul.f32 %v2858_v0, %v5570_v2  ;;  %v2891_v12 = vmul.f32 %v2854_v3, %v5580_v44  ;;  %v2893_v7 = vmul.f32 %v2862_v13, %v5575_v10  ;;  %v2894_v5 = vmul.f32 %v2866_v43, %v5584_v4 }
 0xbf7   : > { %v2895_v22 = vmul.f32 %v2870_v56, %v5588_v11  ;;  %v2896_v2 = vmul.f32 %v2874_v23, %v5568_v1  ;;  %v2897_v10 = vmul.f32 %v2878_v24, %v5592_v9  ;;  %v2898_v44 = vmul.f32 %v2882_v25, %v5597_v16 }
 0xbf8   : > { %2911 = vperm.xlu1 %4061, %v2892_v45   ;;  %2908 = vperm.xlu0 %4062, %v2891_v12  }
 0xbfc   : > { %2914 = vperm.xlu1 %4061, %v2893_v7   ;;  %2917 = vperm.xlu0 %4062, %v2894_v5  }
 0xc00   : > { %2920 = vperm.xlu1 %4061, %v2895_v22   ;;  %2923 = vperm.xlu0 %4062, %v2896_v2  }
 0xc04   : > { %2926 = vperm.xlu1 %4061, %v2897_v10   ;;  %2929 = vperm.xlu0 %4062, %v2898_v44  }
 0xc77   : > { %v2912_v30 = vpop.permute.xlu1 %2911  ;;  %v2909_v31 = vpop.permute.xlu0 %2908 }
 0xc78   : > { %v2938_v4 = vrot.slane %v2912_v30, %v5450_v51  ;;  %v2934_v11 = vrot.slane %v2909_v31, %v5450_v51 }
 0xc7a   : > { %v2963_v35 = vsel %vm2011_vm3, %v2938_v4, %v2934_v11 }
 0xc7b   : > { %v2915_v17 = vpop.permute.xlu1 %2914  ;;  %v2918_v1 = vpop.permute.xlu0 %2917 }
 0xc7c   : > { %v2942_v34 = vrot.slane %v2915_v17, %v5450_v51  ;;  %v2946_v26 = vrot.slane %v2918_v1, %v5450_v51 }
 0xc7e   : > { %v2964_v9 = vsel %vm2013_vm4, %v2942_v34, %v2963_v35 }
 0xc7f   : > { %v2921_v38 = vpop.permute.xlu1 %2920  ;;  %v2924_v16 = vpop.permute.xlu0 %2923  ;;  %v2965_v58 = vsel %vm2015_vm5, %v2946_v26, %v2964_v9 }
 0xc80   : > { %v2950_v50 = vrot.slane %v2921_v38, %v5450_v51  ;;  %v2954_v54 = vrot.slane %v2924_v16, %v5450_v51 }
 0xc82   : > { %v2966_v27 = vsel %vm2017_vm6, %v2950_v50, %v2965_v58 }
 0xc83   : > { %v2927_v15 = vpop.permute.xlu1 %2926  ;;  %v2930_v14 = vpop.permute.xlu0 %2929  ;;  %v2967_v28 = vsel %vm2019_vm7, %v2954_v54, %v2966_v27 }
 0xc84   : > { %v2958_v18 = vrot.slane %v2927_v15, %v5450_v51  ;;  %v2962_v62 = vrot.slane %v2930_v14, %v5450_v51 }
 0xc86   : > { %v2968_v29 = vsel %vm2021_vm8, %v2958_v18, %v2967_v28 }
 0xc87   : > { %v2969_v32 = vsel %vm2023_vm9, %v2962_v62, %v2968_v29 }
 0xc88   : > { %2971 = vst.msk [vmem:[#allocation4] sm:$0xff] %vm2026_vm10, %v2969_v32 }
 0xc89 PF: > { %v2982_v33 = vld [vmem:[%s5297_s17] sm:$0xff]  ;;  %v2983_v36 = vld [vmem:[%s5297_s17 + $0x8] sm:$0xff]  ;;  %v2984_v6 = vld [vmem:[%s5297_s17 + $0x10] sm:$0xff]  ;;  %v4805_v37 = vmov 0.0|0.0   ;;  %vm4806_vm12 = vmmov 0   ;;  %v4807_v57 = vmov 0.0  }
 0xc8a   : > { %3792 = vmatprep.subr.bf16.mxu0 %v4805_v37  ;;  %v3793_v51 = vpack.c.bf16 %v2983_v36, %v2982_v33  ;;  %v2985_v63 = vld [vmem:[%s5297_s17 + $0x18] sm:$0xff]  ;;  %3729 = vmatprep.mubr.msk.f32.mxu0 %vm4806_vm12, %v4807_v57  ;;  %v2981_v41 = vld [vmem:[#allocation2] sm:$0xff]  ;;  %vm2993_vm13 = vcmask 261120   ;;  %s3549_s28 = sshll.u32 %s5009_s0, 7  ;;  %p3553_p4 = scmp.ne.s32.totalorder %s5009_s0, 1 }
 0xc8b   : > { %v3796_v40 = vpack.c.bf16 %v2985_v63, %v2984_v6  ;;  %s3067_s21 = sshra.s32 %s3549_s28, 7  ;;  %v3550_v42 = vld [vmem:[%s1263_s11] ss:$0 sm:$0xff]  ;;  %v3093_v53 = vld [vmem:[#allocation3] sm:$0xff] (!%p3553_p4)  ;;  %v4808_v8 = vmov (!%p3553_p4), 0   ;;  %v3105_v3 = vlaneseq (!%p3553_p4)  ;;  %s5730_s4 = smov (!%p3553_p4), 0  }
 0xc8c   : > { %3794 = vmatpush3.bf16.msra.mxu0 %v3793_v51  ;;  %s3552_s2 = sshll.u32 %s3067_s21, 3  ;;  %4111 = vset.pattern.permute.xlu1 (!%p3553_p4), %v4808_v8  ;;  %v3103_v12 = vld [vmem:[#allocation17] sm:$0xff] (!%p3553_p4) }
 0xc8d   : > { %3795 = vmatprep.subr.bf16.mxu0 %v4805_v37  ;;  %s3070_s10 = scalar_lea.vmem [#allocation30], %s3552_s2  ;;  %4112 = vset.pattern.permute.xlu0 (!%p3553_p4), %v4808_v8  ;;  %v3106_v45 = vand.u32 (!%p3553_p4), 127, %v3105_v3 }
 0xc8e   : > { %3096 = vperm.xlu1 (!%p3553_p4), %4111, %v3093_v53  }
 0xc8f   : > { %v3104_v13 = vld [vmem:[#allocation4] sm:$0xff] (!%p3553_p4)  ;;  %v3107_v43 = vadd.s32 (!%p3553_p4), 128, %v3106_v45 }
 0xc90   : > { %3797 = vmatpush3.bf16.msra.mxu0 %v3796_v40 }
 0xc93   : > { %3730 = vmatmul.mubr.msk.f32.vlgmr.msra.gmra.mrb[0].mxu0 %vm2993_vm13, %v2981_v41 }
 0xd0d   : > { %v3097_v56 = vpop.permute.xlu1 (!%p3553_p4), %3096 }
 0xd63   : > { %3075 = sbr.rel (%p3553_p4) target bundleno = 4064 (0xfe0), region = 238 }
 0xd66   : > { %v3063_v39 = vpop.f32.mrb[0].mxu0 }
 0xd67   : > { %v3064_v46 = vadd.f32 %v3550_v42, %v3063_v39  ;;  %v3731_v49 = vpop.f32.mrb[1].mxu0 }
 0xd69   : > { %3071 = vst [vmem:[%s3070_s10] sm:$0xff] %v3064_v46 }
 0xd70   : > { %v3076_v47 = vld [vmem:[#allocation30] sm:$0xff]  ;;  %v3077_v52 = vld [vmem:[#allocation30 + $0x8] sm:$0xff] }
 0xd71   : > { %v3078_v21 = vmax.f32 %v3076_v47, %v3077_v52 }
 0xd73   : > { %3079 = vmax.xlane.f32.xlu0 %v3078_v21 }
 0xe00   : > { %v3080_v55 = vpop.xlane.xlu0 %3079 }
 0xe01   : > { %v3081_v19 = vsub.f32 %v3076_v47, %v3080_v55  ;;  %v3082_v20 = vsub.f32 %v3077_v52, %v3080_v55 }
 0xe03   : > { %v3083_v59 = vmul.f32 1.442695, %v3081_v19  ;;  %v3085_v48 = vmul.f32 1.442695, %v3082_v20 }
 0xe05   : > { %4113 = vpow2.f32 %v3083_v59 }
 0xe06   : > { %4115 = vpow2.f32 %v3085_v48 }
 0xe0f   : > { %v4114_v60 = vpop.eup %4113 }
 0xe10   : > { %v4116_v61 = vpop.eup %4115 }
 0xe11   : > { %v3087_v0 = vadd.f32 %v4116_v61, %v4114_v60 }
 0xe13   : > { %3088 = vadd.xlane.f32.xlu0 %v3087_v0 }
 0xea0   : > { %v3089_v7 = vpop.xlane.xlu0 %3088 }
 0xea1   : > { %4117 = vrcp.f32 %v3089_v7 }
 0xeab   : > { %v4118_v5 = vpop.eup %4117 }
 0xeac   : > { %v3091_v23 = vmul.f32 %v4118_v5, %v4114_v60  ;;  %v3092_v22 = vmul.f32 %v4118_v5, %v4116_v61 }
 0xeae   : > { %v3099_v2 = vmul.f32 %v3097_v56, %v3091_v23  ;;  %v3100_v24 = vmul.f32 %v3097_v56, %v3092_v22 }
 0xeb0   : > { %3101 = vst [vmem:[#allocation30] sm:$0xff] %v3099_v2  ;;  %3102 = vst [vmem:[#allocation30 + $0x8] sm:$0xff] %v3100_v24 }
 0xeb1 LB: >> { %v3114_v25 = vstv %s4745_s4  ;;  %vm3117_vm14 = vcmask 64512   ;;  %s3113_s4 = sadd.s32 1, %s4745_s4   ;;  %s4745_s4 = sphi %s5730_s4, %s3113_s4  }
 0xeb2   : >> { %vm3115_vm15 = vcmp.eq.s32.totalorder %v3106_v45, %v3114_v25  ;;  %p3110_p6 = scmp.ge.s32.totalorder %s3113_s4, 8  }
 0xeb3   : >> { %v3116_v10 = vsel %vm3115_vm15, %v3103_v12, 4294967295  ;;  %v3133_v4 = vsel %vm3115_vm15, %v3104_v13, 0.0 }
 0xeb4   : >> { %v3118_v44 = vsel %vm3117_vm14, %v3116_v10, 2147483648  ;;  %v3134_v11 = vsel %vm3117_vm14, %v3133_v4, 0.0 }
 0xeb5   : >> { %v3120_v30 = vshra.s32 %v3118_v44, 16  ;;  %3135 = vadd.xlane.f32.xlu1 %v3134_v11  ;;  %v3119_v17 = vand.u32 65535, %v3118_v44 }
 0xeb7   : >> { %v3122_v31 = vcvt.s32.f32 %v3120_v30  ;;  %v3121_v1 = vcvt.s32.f32 %v3119_v17  ;;  %v3137_v54 = vld [vmem:[#allocation30] sm:$0xff]  ;;  %v3138_v27 = vld [vmem:[#allocation30 + $0x8] sm:$0xff] }
 0xeb9   : >> { %3123 = vmax.xlane.f32.xlu0 %v3122_v31 }
 0xf42   : >> { %v3136_v58 = vpop.xlane.xlu1 %3135 }
 0xf46   : >> { %v3124_v34 = vpop.xlane.xlu0 %3123 }
 0xf47   : >> { %vm3125_vm0 = vcmp.eq.f32.partialorder %v3122_v31, %v3124_v34  ;;  %v3130_v26 = vcvt.f32.s32 %v3124_v34 }
 0xf48   : >> { %v3126_v35 = vsel %vm3125_vm0, %v3121_v1, -inf }
 0xf49   : >> { %3127 = vmax.xlane.f32.xlu0 %v3126_v35  ;;  %v3131_v38 = vshll.u32 %v3130_v26, 16 }
 0xfd6   : >> { %v3128_v9 = vpop.xlane.xlu0 %3127 }
 0xfd7   : >> { %v3129_v16 = vcvt.f32.s32 %v3128_v9 }
 0xfd9   : >> { %v3132_v50 = vadd.s32 %v3131_v38, %v3129_v16  ;;  %3112 = sbr.rel (!%p3110_p6) target bundleno = 3761 (0xeb1), region = 356 }
 0xfdb   : >> { %vm3139_vm1 = vcmp.eq.s32.totalorder %v3132_v50, %v3106_v45  ;;  %vm3140_vm2 = vcmp.eq.s32.totalorder %v3132_v50, %v3107_v43 }
 0xfdc   : >> { %v3141_v15 = vsel %vm3139_vm1, %v3136_v58, 0.0  ;;  %v3142_v14 = vsel %vm3140_vm2, %v3136_v58, 0.0 }
 0xfdd   : >> { %v3143_v18 = vadd.f32 %v3141_v15, %v3137_v54  ;;  %v3144_v62 = vadd.f32 %v3142_v14, %v3138_v27 }
 0xfdf   : >> { %3145 = vst [vmem:[#allocation30] sm:$0xff] %v3143_v18  ;;  %3146 = vst [vmem:[#allocation30 + $0x8] sm:$0xff] %v3144_v62 }
 0xfe0 PF: > { %p3949_p7 = scmp.eq.s32.totalorder %s5009_s0, 1  ;;  %s4809_s11 = smov [#allocation31]  }
 0xfe1   : > { %s3165_s17 = sshll.u32 %s4809_s11, 4  ;;  %s4810_s16 = smov [#allocation34]   ;;  %s3166_s17 = int_to_ptr.vmem [resolvable:$true] %s3165_s17 }
 0xfe2   : > { %s3187_s25 = sshll.u32 %s4810_s16, 4  ;;  %s4511_s28 = scalar_lea.vmem %s3166_s17, 128  ;;  %s3188_s25 = int_to_ptr.vmem [resolvable:$true] %s3187_s25 }
 0xfe3   : > { %p4512_p8 = scmp.ne.s32.totalorder %s3166_s17, %s4511_s28  ;;  %p4518_p9 = scmp.lt.s32.totalorder %s3166_s17, %s3166_s17 }
 0xfe4   : > { %p4519_p11 = scmp.lt.s32.totalorder %s4511_s28, %s4511_s28 }
 0xfe5   : > { %p4513_p3 = pnand %p4512_p8, %p3949_p7 }
 0xfe6   : > { %p4520_p12 = por %p4519_p11, %p4518_p9 }
 0xfe7   : > { %p4514_p5 = pneg %p4513_p3 }
 0xfe9   : > { %p4521_p10 = pnand %p4520_p12, %p4514_p5 }
 0xfeb   : > { %4524 = shalt.err (!%p4521_p10)
}
 0xfec   : > { %s5907_s21 = sld [smem:[#allocation69_spill]] }
 0xff2   : > { %s5908_s2 = smov %s5907_s21  ;;  %s4525_s10 = scalar_lea.hbm %s5907_s21, 128 }
 0xff3   : > { %p4526_p13 = scmp.ne.s32.totalorder %s5908_s2, %s4525_s10  ;;  %p4531_p2 = scmp.lt.u32.totalorder %s4525_s10, %s5908_s2 }
 0xff5   : > { %p4527_p0 = pnand %p4526_p13, %p3949_p7 }
 0xff7   : > { %p4528_p1 = pneg %p4527_p0 }
 0xff9   : > { %p4533_p4 = pnand %p4531_p2, %p4528_p1 }
 0xffb   : > { %4536 = shalt.err (!%p4533_p4)
}
 0xffc   : > { %3857 = dma.vmem_to_hbm [thread:$0]  (%p3949_p7), %s3166_s17, 128, %s5908_s2, [#allocation32]  }
 0xffd   : > { %s4537_s4 = scalar_lea.vmem %s3188_s25, 128  ;;  %p4544_p5 = scmp.lt.s32.totalorder %s3188_s25, %s3188_s25 }
 0xffe   : > { %p4538_p6 = scmp.ne.s32.totalorder %s3188_s25, %s4537_s4  ;;  %p4545_p9 = scmp.lt.s32.totalorder %s4537_s4, %s4537_s4 }
0x1000   : > { %p4539_p8 = pnand %p4538_p6, %p3949_p7  ;;  %p4546_p11 = por %p4545_p9, %p4544_p5 }
0x1002   : > { %p4540_p3 = pneg %p4539_p8 }
0x1004   : > { %p4547_p12 = pnand %p4546_p11, %p4540_p3 }
0x1006   : > { %4550 = shalt.err (!%p4547_p12)
}
0x1007   : > { %s4551_s11 = scalar_lea.hbm %s4981_s1, 128 }
0x1008   : > { %p4552_p10 = scmp.ne.s32.totalorder %s4981_s1, %s4551_s11  ;;  %p4557_p1 = scmp.lt.u32.totalorder %s4551_s11, %s4981_s1 }
0x100a   : > { %p4553_p13 = pnand %p4552_p10, %p3949_p7 }
0x100c   : > { %p4554_p0 = pneg %p4553_p13 }
0x100e   : > { %p4559_p2 = pnand %p4557_p1, %p4554_p0 }
0x1010   : > { %4562 = shalt.err (!%p4559_p2)
}
0x1011   : > { %3861 = dma.vmem_to_hbm [thread:$0]  (%p3949_p7), %s3188_s25, 128, %s4981_s1, [#allocation35]  }
0x1012   : > { %s4811_s17 = smov [#allocation30]   ;;  %s4812_s28 = smov [#allocation33]  }
0x1013   : > { %s3154_s16 = sshll.u32 %s4811_s17, 4  ;;  %s3176_s21 = sshll.u32 %s4812_s28, 4  ;;  %s3155_s16 = int_to_ptr.vmem [resolvable:$true] %s3154_s16  ;;  %s3177_s21 = int_to_ptr.vmem [resolvable:$true] %s3176_s21 }
0x1014   : > { %s4563_s10 = scalar_lea.vmem %s3155_s16, 256  ;;  %p4570_p3 = scmp.lt.s32.totalorder %s3155_s16, %s3155_s16 }
0x1015   : > { %p4564_p4 = scmp.ne.s32.totalorder %s3155_s16, %s4563_s10  ;;  %p4571_p5 = scmp.lt.s32.totalorder %s4563_s10, %s4563_s10 }
0x1017   : > { %p4565_p6 = pnand %p4564_p4, %p3949_p7  ;;  %p4572_p9 = por %p4571_p5, %p4570_p3 }
0x1019   : > { %p4566_p8 = pneg %p4565_p6 }
0x101b   : > { %p4573_p11 = pnand %p4572_p9, %p4566_p8 }
0x101d   : > { %4576 = shalt.err (!%p4573_p11)
}
0x101e   : > { %s5909_s4 = sld [smem:[#allocation68_spill]] }
0x1024   : > { %s4577_s25 = scalar_lea.hbm %s5909_s4, 256 }
0x1025   : > { %p4578_p12 = scmp.ne.s32.totalorder %s5909_s4, %s4577_s25  ;;  %p4583_p0 = scmp.lt.u32.totalorder %s4577_s25, %s5909_s4 }
0x1027   : > { %p4579_p10 = pnand %p4578_p12, %p3949_p7 }
0x1029   : > { %p4580_p13 = pneg %p4579_p10 }
0x102b   : > { %p4585_p1 = pnand %p4583_p0, %p4580_p13 }
0x102d   : > { %4588 = shalt.err (!%p4585_p1)
}
0x102e   : > { %3855 = dma.vmem_to_hbm [thread:$0]  (%p3949_p7), %s3155_s16, 256, %s5909_s4, [#allocation8]  }
0x102f   : > { %s4589_s11 = scalar_lea.vmem %s3177_s21, 128  ;;  %p4596_p8 = scmp.lt.s32.totalorder %s3177_s21, %s3177_s21 }
0x1030   : > { %p4590_p2 = scmp.ne.s32.totalorder %s3177_s21, %s4589_s11  ;;  %p4597_p3 = scmp.lt.s32.totalorder %s4589_s11, %s4589_s11 }
0x1032   : > { %p4591_p4 = pnand %p4590_p2, %p3949_p7  ;;  %p4598_p5 = por %p4597_p3, %p4596_p8 }
0x1034   : > { %p4592_p6 = pneg %p4591_p4 }
0x1036   : > { %p4599_p9 = pnand %p4598_p5, %p4592_p6 }
0x1038   : > { %4602 = shalt.err (!%p4599_p9)
}
0x1039   : > { %s4603_s17 = scalar_lea.hbm %s4976_s23, 128 }
0x103a   : > { %p4604_p11 = scmp.ne.s32.totalorder %s4976_s23, %s4603_s17  ;;  %p4609_p13 = scmp.lt.u32.totalorder %s4603_s17, %s4976_s23 }
0x103c   : > { %p4605_p12 = pnand %p4604_p11, %p3949_p7 }
0x103e   : > { %p4606_p10 = pneg %p4605_p12 }
0x1040   : > { %p4611_p0 = pnand %p4609_p13, %p4606_p10 }
0x1042   : > { %4614 = shalt.err (!%p4611_p0)
}
0x1043   : > { %3859 = dma.vmem_to_hbm [thread:$0]  (%p3949_p7), %s3177_s21, 128, %s4976_s23, [#allocation32]  }
0x1044   : > { %s4813_s16 = smov [#allocation36]   ;;  %s4814_s10 = smov [#allocation37]  }
0x1045   : > { %s3198_s28 = sshll.u32 %s4813_s16, 4  ;;  %s3209_s25 = sshll.u32 %s4814_s10, 4  ;;  %s3199_s28 = int_to_ptr.vmem [resolvable:$true] %s3198_s28  ;;  %s3210_s25 = int_to_ptr.vmem [resolvable:$true] %s3209_s25 }
0x1046   : > { %s4615_s11 = scalar_lea.vmem %s3199_s28, 128  ;;  %p4622_p6 = scmp.lt.s32.totalorder %s3199_s28, %s3199_s28 }
0x1047   : > { %p4616_p1 = scmp.ne.s32.totalorder %s3199_s28, %s4615_s11  ;;  %p4623_p8 = scmp.lt.s32.totalorder %s4615_s11, %s4615_s11 }
0x1049   : > { %p4617_p2 = pnand %p4616_p1, %p3949_p7  ;;  %p4624_p3 = por %p4623_p8, %p4622_p6 }
0x104b   : > { %p4618_p4 = pneg %p4617_p2 }
0x104d   : > { %p4625_p5 = pnand %p4624_p3, %p4618_p4 }
0x104f   : > { %4628 = shalt.err (!%p4625_p5)
}
0x1050   : > { %s4629_s21 = scalar_lea.hbm %s4986_s7, 128 }
0x1051   : > { %p4630_p9 = scmp.ne.s32.totalorder %s4986_s7, %s4629_s21  ;;  %p4635_p10 = scmp.lt.u32.totalorder %s4629_s21, %s4986_s7 }
0x1053   : > { %p4631_p11 = pnand %p4630_p9, %p3949_p7 }
0x1055   : > { %p4632_p12 = pneg %p4631_p11 }
0x1057   : > { %p4637_p13 = pnand %p4635_p10, %p4632_p12 }
0x1059   : > { %4640 = shalt.err (!%p4637_p13)
}
0x105a   : > { %3863 = dma.vmem_to_hbm [thread:$0]  (%p3949_p7), %s3199_s28, 128, %s4986_s7, [#allocation35]  }
0x105b   : > { %s4641_s17 = scalar_lea.vmem %s3210_s25, 128  ;;  %p4648_p4 = scmp.lt.s32.totalorder %s3210_s25, %s3210_s25 }
0x105c   : > { %p4642_p0 = scmp.ne.s32.totalorder %s3210_s25, %s4641_s17  ;;  %p4649_p6 = scmp.lt.s32.totalorder %s4641_s17, %s4641_s17 }
0x105e   : > { %p4643_p1 = pnand %p4642_p0, %p3949_p7  ;;  %p4650_p8 = por %p4649_p6, %p4648_p4 }
0x1060   : > { %p4644_p2 = pneg %p4643_p1 }
0x1062   : > { %p4651_p3 = pnand %p4650_p8, %p4644_p2 }
0x1064   : > { %4654 = shalt.err (!%p4651_p3)
}
0x1065   : > { %s5910_s16 = sld [smem:[#allocation70_spill]] }
0x106b   : > { %s5911_s10 = smov %s5910_s16  ;;  %s4655_s11 = scalar_lea.hbm %s5910_s16, 128 }
0x106c   : > { %p4656_p5 = scmp.ne.s32.totalorder %s5911_s10, %s4655_s11  ;;  %p4661_p12 = scmp.lt.u32.totalorder %s4655_s11, %s5911_s10 }
0x106e   : > { %p4657_p9 = pnand %p4656_p5, %p3949_p7 }
0x1070   : > { %p4658_p11 = pneg %p4657_p9 }
0x1072   : > { %p4663_p10 = pnand %p4661_p12, %p4658_p11 }
0x1074   : > { %4666 = shalt.err (!%p4663_p10)
}
0x1075   : > { %3865 = dma.vmem_to_hbm [thread:$0]  (%p3949_p7), %s3210_s25, 128, %s5911_s10, [#allocation38]  }
0x1076   : > { %4716 = dma.done.wait (%p3949_p7), [#allocation8], 256  }
0x1077   : > { %4718 = vsyncadd (%p3949_p7), [#allocation8], 4294967040 }
0x1078   : > { %4720 = dma.done.wait (%p3949_p7), [#allocation32], 256  }
0x1079   : > { %4722 = vsyncadd (%p3949_p7), [#allocation32], 4294967040 }
0x107a   : > { %4724 = dma.done.wait (%p3949_p7), [#allocation35], 256  }
0x107b   : > { %4726 = vsyncadd (%p3949_p7), [#allocation35], 4294967040 }
0x107c   : > { %4728 = dma.done.wait (%p3949_p7), [#allocation38], 128  }
0x107d   : > { %4730 = vsyncadd (%p3949_p7), [#allocation38], 4294967168 }
0x107e PF: > { %s5912_s16 = sld [smem:[#allocation71_spill]]  ;;  %s5913_s28 = sld [smem:[#allocation72_spill]] }
0x107f   : > { %s5914_s21 = smov %s4737_s30 }
0x1084   : > { %p91_p13 = scmp.ge.s32.totalorder %s5912_s16, 4   ;;  %s5915_s30 = smov %s5913_s28 }
0x1086   :  { %93 = sbr.rel (!%p91_p13) target bundleno = 77 (0x4d), region = 367 }
0x108d   :  { %3242 = vsyncpa [#allocation7], 1 }
0x108e   :  { %3244 = vsyncpa [#allocation7 + $0x1], 1 }
0x108f   :  { %3245 = vsyncpa [#allocation10], 1 }
0x1090   :  { %3246 = vsyncpa [#allocation13], 1 }
0x1091   :  { %3247 = vsyncpa [#allocation16], 1 }
0x1092   :  { %3248 = vsyncpa [#allocation19], 1 }
0x1093   :  { %3249 = vsyncpa [#allocation22], 1 }
0x1094   :  { %3250 = vsyncpa [#allocation25], 1 }
0x1095   :  { %3251 = vsyncpa [#allocation28], 1 }
0x1096   :  { %3252 = vsyncpa [#allocation8], 1 }
0x1097   :  { %3254 = vsyncpa [#allocation8 + $0x1], 1 }
0x1098   :  { %3255 = vsyncpa [#allocation32], 1 }
0x1099   :  { %3256 = vsyncpa [#allocation35], 1 }
0x109a   :  { %3257 = vsyncpa [#allocation38], 1 }

</bundles_post_ra>
